<compile_context>
chip_gen: v7x
topology: tpu7x:2x2x1
jax: 0.10.0
libtpu: 0.0.40
codegen_flags: <defaults>
</compile_context>

<pallas_src>
import functools
import math

import jax
import jax.numpy as jnp
import numpy as np
from jax import lax
from jax.experimental import pallas as pl
from jax.experimental.pallas import tpu as pltpu


def memattn_kernel(q_ref, k_ref, v_ref,
                   wq_ref, bq_ref, wk_ref, bk_ref, wv_ref, bv_ref,
                   wo_ref, bo_ref, mk_ref, mv_ref, o_ref,
                   *, n_heads, n_memories):
    f32 = jnp.float32
    bf16 = jnp.bfloat16
    b_blk, nq, d_model = q_ref.shape
    nk = k_ref.shape[1]
    n_mem_pad = mk_ref.shape[1]
    d_k = d_model // n_heads
    d_out = o_ref.shape[-1]
    mq = b_blk * nq          # folded rows for Q-side matmuls
    mk_rows = b_blk * nk     # folded rows for K/V-side matmuls

    # ---- full-width Q/K/V projections: (b_blk*n, d_model) @ (d_model, d_model)
    #      (lane-dense MXU output), bf16 operands, f32 accumulation + f32 bias.
    q2d = q_ref[...].reshape(mq, d_model)
    k2d = k_ref[...].reshape(mk_rows, d_model)
    v2d = v_ref[...].reshape(mk_rows, d_model)

    q_p = jnp.dot(q2d, wq_ref[...], preferred_element_type=f32) + bq_ref[...]
    k_p = jnp.dot(k2d, wk_ref[...], preferred_element_type=f32) + bk_ref[...]
    v_p = jnp.dot(v2d, wv_ref[...], preferred_element_type=f32) + bv_ref[...]

    # Fold the 1/sqrt(d_k) score scale into Q once, in f32.
    q_p = q_p * f32(1.0 / math.sqrt(d_k))

    # Additive mask for the zero-padded memory slots (padding keeps the memory
    # score / softmax / PV branch lane-dense).
    if n_mem_pad > n_memories:
        lane = lax.broadcasted_iota(jnp.int32, (1, n_mem_pad), 1)
        mem_bias = jnp.where(lane < n_memories, f32(0.0), f32(-1e30))
    else:
        mem_bias = None

    # ---- per-head attention (unrolled loop; heads are independent) ----------
    out_acc = None
    for h in range(n_heads):
        sl = slice(h * d_k, (h + 1) * d_k)          # static lane slice
        qh_f = q_p[:, sl]                           # (mq, d_k) f32
        qh = qh_f.astype(bf16)
        qhb = qh_f.reshape(b_blk, nq, d_k).astype(bf16)
        khb = k_p[:, sl].reshape(b_blk, nk, d_k).astype(bf16)
        vhb = v_p[:, sl].reshape(b_blk, nk, d_k).astype(bf16)

        # data scores, batched over the batch tile, then folded for the softmax
        s_data = jnp.einsum('bqd,bkd->bqk', qhb, khb,
                            preferred_element_type=f32).reshape(mq, nk)
        # memory scores: batch-independent (slots pre-scaled on the host)
        s_mem = jnp.einsum('md,kd->mk', qh, mk_ref[h],
                           preferred_element_type=f32)
        if mem_bias is not None:
            s_mem = s_mem + mem_bias

        # two-block softmax over [data keys ++ memory slots], all f32
        s_max = jnp.maximum(jnp.max(s_data, axis=-1, keepdims=True),
                            jnp.max(s_mem, axis=-1, keepdims=True))
        e_data = jnp.exp(s_data - s_max)
        e_mem = jnp.exp(s_mem - s_max)
        denom = (jnp.sum(e_data, axis=-1, keepdims=True)
                 + jnp.sum(e_mem, axis=-1, keepdims=True))
        r = pl.reciprocal(denom, approx=True)
        # TODO(synk): attention dropout not applied (inference path / p_drop->0).
        p_data = (e_data * r).reshape(b_blk, nq, nk).astype(bf16)
        p_mem = (e_mem * r).astype(bf16)

        # weighted values (data + memory)
        ctx = jnp.einsum('bqk,bkd->bqd', p_data, vhb,
                         preferred_element_type=f32).reshape(mq, d_k)
        ctx = ctx + jnp.dot(p_mem, mv_ref[h], preferred_element_type=f32)

        # per-head output projection, accumulated over heads in f32
        # (== concat-heads @ Wo with the head-sum fused, no (h, mq, d_model)
        #  intermediate and no lane-axis concat).
        part = jnp.dot(ctx.astype(bf16), wo_ref[h], preferred_element_type=f32)
        out_acc = part if out_acc is None else out_acc + part

    out = out_acc + bo_ref[...]
    o_ref[...] = out.reshape(b_blk, nq, d_out).astype(o_ref.dtype)


def _pick_batch_block(batch, seq, target_rows=256, min_grid=2):
    """Pick a divisor of `batch` so the folded row count (block*seq) is close
    to / aligned with the MXU height while keeping >= min_grid grid steps
    (v7x shards the 'parallel' batch axis across its 2 TensorCores)."""
    min_grid = max(1, min(min_grid, batch))
    best, best_key = 1, None
    for cand in range(1, batch + 1):
        if batch % cand or (batch // cand) < min_grid:
            continue
        rows = cand * seq
        key = (rows <= max(target_rows, seq),           # don't overshoot target
               rows % 256 == 0 or rows % 128 == 0,      # MXU-height aligned
               (batch // cand) % 2 == 0,                # even grid for 2-TC
               rows)                                    # then as big as allowed
        if best_key is None or key > best_key:
            best, best_key = cand, key
    return best


def memory_attention(q, k, v, params, *, n_heads, n_memories,
                     batch_block=None, vmem_limit_bytes=None,
                     constant_block_buffering=True):
    """q, k, v: (B, N, d_model). Returns (B, nq, d_model) in q.dtype."""
    # TODO(synk): attention_mask path and the n_memories == 0 branch are not
    # implemented (this kernel covers the memory-augmented vis_att case).
    assert n_memories > 0, "kernel implements the n_memories > 0 branch"
    wq, bq, wk, bk, wv, bv, wo, bo, m_k, m_v = params
    b, nq, d_model = q.shape
    nk = k.shape[1]
    assert d_model % n_heads == 0
    d_k = d_model // n_heads

    if batch_block is None:
        batch_block = _pick_batch_block(b, max(nq, nk))
    assert b % batch_block == 0
    grid = (b // batch_block,)

    # lane-dense output slab: pad Wo columns / bo so the final store is >=128
    # lanes wide; pad lanes are sliced off on the host (free for d_model>=128).
    d_out_pad = -(-d_model // 128) * 128
    # lane-dense memory branch: pad slots to a multiple of 128 with zero rows;
    # a -1e30 additive bias inside the kernel masks the pad slots.
    n_mem_pad = -(-n_memories // 128) * 128

    cdt = jnp.bfloat16   # MXU input dtype (accumulation stays f32 in-kernel)
    f32 = jnp.float32

    # ---- host-side (free) prep: casts, padding, per-head splits -------------
    wq_c, wk_c, wv_c = (w.astype(cdt) for w in (wq, wk, wv))
    bq_f, bk_f, bv_f = (x.astype(f32) for x in (bq, bk, bv))

    wo_h = jnp.pad(wo, ((0, 0), (0, d_out_pad - d_model))) \
              .reshape(n_heads, d_k, d_out_pad).astype(cdt)
    bo_f = jnp.pad(bo, ((0, 0), (0, d_out_pad - d_model))).astype(f32)

    def prep_mem(m, scale):   # (n_mem, d_model) -> (h, n_mem_pad, d_k), bf16
        mp = jnp.pad(m * scale, ((0, n_mem_pad - n_memories), (0, 0)))
        return jnp.transpose(mp.reshape(n_mem_pad, n_heads, d_k),
                             (1, 0, 2)).astype(cdt)

    mk_h = prep_mem(m_k, float(np.sqrt(d_k)))          # sqrt(d_k) hoisted
    mv_h = prep_mem(m_v, float(np.sqrt(n_memories)))   # sqrt(n_mem) hoisted

    qc, kc, vc = q.astype(cdt), k.astype(cdt), v.astype(cdt)

    kernel = functools.partial(memattn_kernel, n_heads=n_heads,
                               n_memories=n_memories)

    # ---- cost estimate -------------------------------------------------------
    flops = (2 * b * d_model * d_model * (nq + 2 * nk)       # Q/K/V projections
             + 4 * b * nq * (nk + n_mem_pad) * d_model       # scores + PV
             + 2 * b * nq * d_model * d_out_pad)             # output projection
    bytes_accessed = (2 * b * (nq + 2 * nk) * d_model                      # acts
                      + 2 * (3 * d_model * d_model + d_model * d_out_pad
                             + 2 * n_heads * n_mem_pad * d_k)              # weights
                      + q.dtype.itemsize * b * nq * d_out_pad)             # output
    cost = pl.CostEstimate(flops=int(flops),
                           transcendentals=int(b * n_heads * nq * (nk + n_mem_pad)),
                           bytes_accessed=int(bytes_accessed))

    # ---- VMEM budgeting (raise the scoped limit only when needed; stay under
    #      v7x's 64 MiB physical VMEM per TensorCore) ---------------------------
    weight_vmem = (2 * (3 * d_model * d_model + d_model * d_out_pad
                        + 2 * n_heads * n_mem_pad * d_k)
                   + 4 * (3 * d_model + d_out_pad))
    act_vmem = 2 * 2 * batch_block * (nq + 2 * nk) * d_model   # dbl-buffered bf16
    out_vmem = 2 * q.dtype.itemsize * batch_block * nq * d_out_pad
    work_vmem = 4 * batch_block * (nq * (3 * d_model + 2 * (nk + n_mem_pad)
                                         + d_out_pad)
                                   + 2 * nk * d_model)
    est = 2 * weight_vmem + act_vmem + out_vmem + work_vmem
    if vmem_limit_bytes is None and est > 12 * 1024 * 1024:
        vmem_limit_bytes = int(min(56 * 1024 * 1024,
                                   max(32 * 1024 * 1024, 2 * est)))

    cp_kwargs = dict(dimension_semantics=("parallel",))
    if vmem_limit_bytes is not None:
        cp_kwargs["vmem_limit_bytes"] = int(vmem_limit_bytes)

    args = (qc, kc, vc, wq_c, bq_f, wk_c, bk_f, wv_c, bv_f,
            wo_h, bo_f, mk_h, mv_h)

    # TODO(synk): for large nq*nk (long captions / many visual tokens) add a
    # kv-block online-softmax loop so the full score tile is never resident.
    def build(buffered):
        def const_spec(shape):
            imap = (lambda i: (0, 0)) if len(shape) == 2 else (lambda i: (0, 0, 0))
            if buffered:
                # Constant-index blocks never change across grid steps ->
                # single-buffered (saves the second copy of every weight).
                return pl.BlockSpec(shape, imap, pipeline_mode=pl.Buffered(1))
            return pl.BlockSpec(shape, imap)

        in_specs = [
            pl.BlockSpec((batch_block, nq, d_model), lambda i: (i, 0, 0)),  # q
            pl.BlockSpec((batch_block, nk, d_model), lambda i: (i, 0, 0)),  # k
            pl.BlockSpec((batch_block, nk, d_model), lambda i: (i, 0, 0)),  # v
            const_spec((d_model, d_model)),          # Wq (full width)
            const_spec((1, d_model)),                # bq
            const_spec((d_model, d_model)),          # Wk
            const_spec((1, d_model)),                # bk
            const_spec((d_model, d_model)),          # Wv
            const_spec((1, d_model)),                # bv
            const_spec((n_heads, d_k, d_out_pad)),   # Wo (per head, padded cols)
            const_spec((1, d_out_pad)),              # bo (padded)
            const_spec((n_heads, n_mem_pad, d_k)),   # m_k (pre-scaled, padded)
            const_spec((n_heads, n_mem_pad, d_k)),   # m_v (pre-scaled, padded)
        ]
        return pl.pallas_call(
            kernel,
            out_shape=jax.ShapeDtypeStruct((b, nq, d_out_pad), q.dtype),
            grid_spec=pltpu.PrefetchScalarGridSpec(
                num_scalar_prefetch=0,
                grid=grid,
                in_specs=in_specs,
                out_specs=pl.BlockSpec((batch_block, nq, d_out_pad),
                                       lambda i: (i, 0, 0)),
            ),
            compiler_params=pltpu.CompilerParams(**cp_kwargs),
            cost_estimate=cost,
        )

    if constant_block_buffering:
        try:
            out = build(True)(*args)
        except Exception:
            # TODO(synk): pl.Buffered(1) rejected by this jax/Mosaic version;
            # fall back to default double-buffered constant blocks.
            out = build(False)(*args)
    else:
        out = build(False)(*args)

    if d_out_pad != d_model:
        out = out[..., :d_model]
    return out


def init_memory_attention_params(key, d_model, n_memories):
    """Deterministic synthetic init mirroring init_params():
       Linear weights: xavier uniform; biases: 0; m_k/m_v: normal(0, 0.01)."""
    keys = jax.random.split(key, 6)
    bound = np.sqrt(6.0 / (d_model + d_model))

    def xavier(k):
        return jax.random.uniform(k, (d_model, d_model), jnp.float32, -bound, bound)

    wq, wk, wv, wo = (xavier(keys[i]) for i in range(4))
    bq = jnp.zeros((1, d_model), jnp.float32)
    bk = jnp.zeros((1, d_model), jnp.float32)
    bv = jnp.zeros((1, d_model), jnp.float32)
    bo = jnp.zeros((1, d_model), jnp.float32)
    m_k = 0.01 * jax.random.normal(keys[4], (n_memories, d_model), jnp.float32)
    m_v = 0.01 * jax.random.normal(keys[5], (n_memories, d_model), jnp.float32)
    return (wq, bq, wk, bk, wv, bv, wo, bo, m_k, m_v)


def memory_attention_ref(q, k, v, params, *, n_heads, n_memories):
    """Pure-JAX f32 reference matching the PyTorch forward (mask=None, eval)."""
    wq, bq, wk, bk, wv, bv, wo, bo, m_k, m_v = params
    b, nq, d_model = q.shape
    d_k = d_model // n_heads

    qp = q @ wq + bq
    kp = jnp.concatenate(
        [k @ wk + bk,
         jnp.broadcast_to(m_k[None], (b, n_memories, d_model)) * np.sqrt(d_k)],
        axis=1)
    vp = jnp.concatenate(
        [v @ wv + bv,
         jnp.broadcast_to(m_v[None], (b, n_memories, d_model)) * np.sqrt(n_memories)],
        axis=1)

    qh = qp.reshape(b, nq, n_heads, d_k).transpose(0, 2, 1, 3)      # b h nq d
    kh = kp.reshape(b, -1, n_heads, d_k).transpose(0, 2, 3, 1)      # b h d nk
    vh = vp.reshape(b, -1, n_heads, d_k).transpose(0, 2, 1, 3)      # b h nk d
    scores = jnp.matmul(qh, kh) / np.sqrt(d_k)
    p = jax.nn.softmax(scores, axis=-1)
    out = jnp.matmul(p, vh)
    out = out.transpose(0, 2, 1, 3).reshape(b, nq, d_model)
    return out @ wo + bo


if __name__ == "__main__":
    d_model, n_heads, n_memories = 32, 4, 8
    batch, nq, nk = 2, 8, 8

    key = jax.random.PRNGKey(0)
    kq, kk, kv, kp = jax.random.split(key, 4)
    q = jax.random.normal(kq, (batch, nq, d_model), jnp.float32)
    k = jax.random.normal(kk, (batch, nk, d_model), jnp.float32)
    v = jax.random.normal(kv, (batch, nk, d_model), jnp.float32)
    params = init_memory_attention_params(kp, d_model, n_memories)

    out = memory_attention(q, k, v, params, n_heads=n_heads, n_memories=n_memories)
    out = jax.block_until_ready(out)

    ref = memory_attention_ref(q, k, v, params, n_heads=n_heads, n_memories=n_memories)
    # bf16 MXU inputs (f32 accumulation) vs. pure-f32 reference -> loose tol.
    np.testing.assert_allclose(np.asarray(out), np.asarray(ref), rtol=5e-2, atol=5e-2)

    print("KERNEL_OK")
</pallas_src>

<mosaic_0001>
module attributes {stable_mosaic.version = 11 : i64} {
  func.func @memattn_kernel(%arg0: i32, %arg1: memref<1x8x32xbf16, #tpu.memory_space<vmem>>, %arg2: memref<1x8x32xbf16, #tpu.memory_space<vmem>>, %arg3: memref<1x8x32xbf16, #tpu.memory_space<vmem>>, %arg4: memref<32x32xbf16, #tpu.memory_space<vmem>>, %arg5: memref<1x32xf32, #tpu.memory_space<vmem>>, %arg6: memref<32x32xbf16, #tpu.memory_space<vmem>>, %arg7: memref<1x32xf32, #tpu.memory_space<vmem>>, %arg8: memref<32x32xbf16, #tpu.memory_space<vmem>>, %arg9: memref<1x32xf32, #tpu.memory_space<vmem>>, %arg10: memref<4x8x128xbf16, #tpu.memory_space<vmem>>, %arg11: memref<1x128xf32, #tpu.memory_space<vmem>>, %arg12: memref<4x128x8xbf16, #tpu.memory_space<vmem>>, %arg13: memref<4x128x8xbf16, #tpu.memory_space<vmem>>, %arg14: memref<1x8x128xf32, #tpu.memory_space<vmem>>) attributes {dimension_semantics = [#tpu.dimension_semantics<parallel>], iteration_bounds = array<i64: 2>, scalar_prefetch = 0 : i64, scratch_operands = 0 : i64, tpu.core_type = #tpu.core_type<tc>, window_params = [{transform_indices = @transform_0, window_bounds = array<i64: 1, 8, 32>}, {transform_indices = @transform_1, window_bounds = array<i64: 1, 8, 32>}, {transform_indices = @transform_2, window_bounds = array<i64: 1, 8, 32>}, {pipeline_mode = #tpu.pipeline_mode<synchronous>, transform_indices = @transform_3, window_bounds = array<i64: 32, 32>}, {pipeline_mode = #tpu.pipeline_mode<synchronous>, transform_indices = @transform_4, window_bounds = array<i64: 1, 32>}, {pipeline_mode = #tpu.pipeline_mode<synchronous>, transform_indices = @transform_5, window_bounds = array<i64: 32, 32>}, {pipeline_mode = #tpu.pipeline_mode<synchronous>, transform_indices = @transform_6, window_bounds = array<i64: 1, 32>}, {pipeline_mode = #tpu.pipeline_mode<synchronous>, transform_indices = @transform_7, window_bounds = array<i64: 32, 32>}, {pipeline_mode = #tpu.pipeline_mode<synchronous>, transform_indices = @transform_8, window_bounds = array<i64: 1, 32>}, {pipeline_mode = #tpu.pipeline_mode<synchronous>, transform_indices = @transform_9, window_bounds = array<i64: 4, 8, 128>}, {pipeline_mode = #tpu.pipeline_mode<synchronous>, transform_indices = @transform_10, window_bounds = array<i64: 1, 128>}, {pipeline_mode = #tpu.pipeline_mode<synchronous>, transform_indices = @transform_11, window_bounds = array<i64: 4, 128, 8>}, {pipeline_mode = #tpu.pipeline_mode<synchronous>, transform_indices = @transform_12, window_bounds = array<i64: 4, 128, 8>}, {transform_indices = @transform_13, window_bounds = array<i64: 1, 8, 128>}]} {
    %c0 = arith.constant 0 : index
    %c0_0 = arith.constant 0 : index
    %c0_1 = arith.constant 0 : index
    %0 = vector.load %arg1[%c0, %c0_0, %c0_1] : memref<1x8x32xbf16, #tpu.memory_space<vmem>>, vector<1x8x32xbf16>
    %1 = vector.shape_cast %0 : vector<1x8x32xbf16> to vector<8x32xbf16>
    %c0_2 = arith.constant 0 : index
    %c0_3 = arith.constant 0 : index
    %c0_4 = arith.constant 0 : index
    %2 = vector.load %arg2[%c0_2, %c0_3, %c0_4] : memref<1x8x32xbf16, #tpu.memory_space<vmem>>, vector<1x8x32xbf16>
    %3 = vector.shape_cast %2 : vector<1x8x32xbf16> to vector<8x32xbf16>
    %c0_5 = arith.constant 0 : index
    %c0_6 = arith.constant 0 : index
    %c0_7 = arith.constant 0 : index
    %4 = vector.load %arg3[%c0_5, %c0_6, %c0_7] : memref<1x8x32xbf16, #tpu.memory_space<vmem>>, vector<1x8x32xbf16>
    %5 = vector.shape_cast %4 : vector<1x8x32xbf16> to vector<8x32xbf16>
    %c0_8 = arith.constant 0 : index
    %c0_9 = arith.constant 0 : index
    %6 = vector.load %arg4[%c0_8, %c0_9] : memref<32x32xbf16, #tpu.memory_space<vmem>>, vector<32x32xbf16>
    %cst = arith.constant dense<0.000000e+00> : vector<8x32xf32>
    %7 = tpu.matmul %1, %6, %cst {dimension_numbers = #tpu.dot_dimension_numbers<[1], [0], [0], [1], [0, 0, 1, 1], [], []>} : vector<8x32xbf16>, vector<32x32xbf16>, vector<8x32xf32> -> vector<8x32xf32>
    %c0_10 = arith.constant 0 : index
    %c0_11 = arith.constant 0 : index
    %8 = vector.load %arg5[%c0_10, %c0_11] : memref<1x32xf32, #tpu.memory_space<vmem>>, vector<1x32xf32>
    %9 = vector.broadcast %8 : vector<1x32xf32> to vector<8x32xf32>
    %10 = arith.addf %7, %9 : vector<8x32xf32>
    %c0_12 = arith.constant 0 : index
    %c0_13 = arith.constant 0 : index
    %11 = vector.load %arg6[%c0_12, %c0_13] : memref<32x32xbf16, #tpu.memory_space<vmem>>, vector<32x32xbf16>
    %cst_14 = arith.constant dense<0.000000e+00> : vector<8x32xf32>
    %12 = tpu.matmul %3, %11, %cst_14 {dimension_numbers = #tpu.dot_dimension_numbers<[1], [0], [0], [1], [0, 0, 1, 1], [], []>} : vector<8x32xbf16>, vector<32x32xbf16>, vector<8x32xf32> -> vector<8x32xf32>
    %c0_15 = arith.constant 0 : index
    %c0_16 = arith.constant 0 : index
    %13 = vector.load %arg7[%c0_15, %c0_16] : memref<1x32xf32, #tpu.memory_space<vmem>>, vector<1x32xf32>
    %14 = vector.broadcast %13 : vector<1x32xf32> to vector<8x32xf32>
    %15 = arith.addf %12, %14 : vector<8x32xf32>
    %c0_17 = arith.constant 0 : index
    %c0_18 = arith.constant 0 : index
    %16 = vector.load %arg8[%c0_17, %c0_18] : memref<32x32xbf16, #tpu.memory_space<vmem>>, vector<32x32xbf16>
    %cst_19 = arith.constant dense<0.000000e+00> : vector<8x32xf32>
    %17 = tpu.matmul %5, %16, %cst_19 {dimension_numbers = #tpu.dot_dimension_numbers<[1], [0], [0], [1], [0, 0, 1, 1], [], []>} : vector<8x32xbf16>, vector<32x32xbf16>, vector<8x32xf32> -> vector<8x32xf32>
    %c0_20 = arith.constant 0 : index
    %c0_21 = arith.constant 0 : index
    %18 = vector.load %arg9[%c0_20, %c0_21] : memref<1x32xf32, #tpu.memory_space<vmem>>, vector<1x32xf32>
    %19 = vector.broadcast %18 : vector<1x32xf32> to vector<8x32xf32>
    %20 = arith.addf %17, %19 : vector<8x32xf32>
    %cst_22 = arith.constant 0.353553385 : f32
    %21 = vector.broadcast %cst_22 : f32 to vector<8x32xf32>
    %22 = arith.mulf %10, %21 : vector<8x32xf32>
    %23 = tpu.iota {dimensions = array<i32: 1>} : vector<1x128xi32>
    %c8_i32 = arith.constant 8 : i32
    %24 = vector.broadcast %c8_i32 : i32 to vector<1x128xi32>
    %25 = arith.cmpi slt, %23, %24 : vector<1x128xi32>
    %cst_23 = arith.constant 0.000000e+00 : f32
    %cst_24 = arith.constant -1.000000e+30 : f32
    %26 = vector.broadcast %cst_23 : f32 to vector<1x128xf32>
    %27 = vector.broadcast %cst_24 : f32 to vector<1x128xf32>
    %28 = arith.select %25, %26, %27 : vector<1x128xi1>, vector<1x128xf32>
    %29 = vector.extract_strided_slice %22 {offsets = [0, 0], sizes = [8, 8], strides = [1, 1]} : vector<8x32xf32> to vector<8x8xf32>
    %30 = arith.truncf %29 : vector<8x8xf32> to vector<8x8xbf16>
    %31 = vector.shape_cast %29 : vector<8x8xf32> to vector<1x8x8xf32>
    %32 = arith.truncf %31 : vector<1x8x8xf32> to vector<1x8x8xbf16>
    %33 = vector.extract_strided_slice %15 {offsets = [0, 0], sizes = [8, 8], strides = [1, 1]} : vector<8x32xf32> to vector<8x8xf32>
    %34 = vector.shape_cast %33 : vector<8x8xf32> to vector<1x8x8xf32>
    %35 = arith.truncf %34 : vector<1x8x8xf32> to vector<1x8x8xbf16>
    %36 = vector.extract_strided_slice %20 {offsets = [0, 0], sizes = [8, 8], strides = [1, 1]} : vector<8x32xf32> to vector<8x8xf32>
    %37 = vector.shape_cast %36 : vector<8x8xf32> to vector<1x8x8xf32>
    %38 = arith.truncf %37 : vector<1x8x8xf32> to vector<1x8x8xbf16>
    "tpu.trace_start"() <{level = 10 : i32, message = "bqd,bkd->bqk"}> : () -> ()
    %cst_25 = arith.constant dense<0.000000e+00> : vector<1x8x8xf32>
    %39 = tpu.matmul %32, %35, %cst_25 {dimension_numbers = #tpu.dot_dimension_numbers<[2], [2], [1], [1], [0, 0, 0, 1, 1, 1], [0], [0]>} : vector<1x8x8xbf16>, vector<1x8x8xbf16>, vector<1x8x8xf32> -> vector<1x8x8xf32>
    "tpu.trace_stop"() : () -> ()
    %40 = vector.shape_cast %39 : vector<1x8x8xf32> to vector<8x8xf32>
    %c0_26 = arith.constant 0 : index
    %c0_27 = arith.constant 0 : index
    %c0_28 = arith.constant 0 : index
    %41 = vector.load %arg12[%c0_26, %c0_27, %c0_28] : memref<4x128x8xbf16, #tpu.memory_space<vmem>>, vector<1x128x8xbf16>
    %42 = vector.shape_cast %41 : vector<1x128x8xbf16> to vector<128x8xbf16>
    "tpu.trace_start"() <{level = 10 : i32, message = "md,kd->mk"}> : () -> ()
    %cst_29 = arith.constant dense<0.000000e+00> : vector<8x128xf32>
    %43 = tpu.matmul %30, %42, %cst_29 {dimension_numbers = #tpu.dot_dimension_numbers<[1], [1], [0], [0], [0, 0, 1, 0], [], []>} : vector<8x8xbf16>, vector<128x8xbf16>, vector<8x128xf32> -> vector<8x128xf32>
    "tpu.trace_stop"() : () -> ()
    %44 = vector.broadcast %28 : vector<1x128xf32> to vector<8x128xf32>
    %45 = arith.addf %43, %44 : vector<8x128xf32>
    %cst_30 = arith.constant dense<0xFF800000> : vector<8xf32>
    %46 = vector.multi_reduction <maximumf>, %40, %cst_30 [1] : vector<8x8xf32> to vector<8xf32>
    %47 = vector.shape_cast %46 : vector<8xf32> to vector<8x1xf32>
    %cst_31 = arith.constant dense<0xFF800000> : vector<8xf32>
    %48 = vector.multi_reduction <maximumf>, %45, %cst_31 [1] : vector<8x128xf32> to vector<8xf32>
    %49 = vector.shape_cast %48 : vector<8xf32> to vector<8x1xf32>
    %50 = arith.maximumf %47, %49 : vector<8x1xf32>
    %51 = vector.broadcast %50 : vector<8x1xf32> to vector<8x8xf32>
    %52 = arith.subf %40, %51 : vector<8x8xf32>
    %53 = math.exp %52 : vector<8x8xf32>
    %54 = vector.broadcast %50 : vector<8x1xf32> to vector<8x128xf32>
    %55 = arith.subf %45, %54 : vector<8x128xf32>
    %56 = math.exp %55 : vector<8x128xf32>
    %cst_32 = arith.constant dense<0.000000e+00> : vector<8xf32>
    %57 = vector.multi_reduction <add>, %53, %cst_32 [1] : vector<8x8xf32> to vector<8xf32>
    %58 = vector.shape_cast %57 : vector<8xf32> to vector<8x1xf32>
    %cst_33 = arith.constant dense<0.000000e+00> : vector<8xf32>
    %59 = vector.multi_reduction <add>, %56, %cst_33 [1] : vector<8x128xf32> to vector<8xf32>
    %60 = vector.shape_cast %59 : vector<8xf32> to vector<8x1xf32>
    %61 = arith.addf %58, %60 : vector<8x1xf32>
    %62 = tpu.reciprocal %61 {approx = true} : vector<8x1xf32> -> vector<8x1xf32>
    %63 = vector.broadcast %62 : vector<8x1xf32> to vector<8x8xf32>
    %64 = arith.mulf %53, %63 : vector<8x8xf32>
    %65 = vector.shape_cast %64 : vector<8x8xf32> to vector<1x8x8xf32>
    %66 = arith.truncf %65 : vector<1x8x8xf32> to vector<1x8x8xbf16>
    %67 = vector.broadcast %62 : vector<8x1xf32> to vector<8x128xf32>
    %68 = arith.mulf %56, %67 : vector<8x128xf32>
    %69 = arith.truncf %68 : vector<8x128xf32> to vector<8x128xbf16>
    "tpu.trace_start"() <{level = 10 : i32, message = "bqk,bkd->bqd"}> : () -> ()
    %cst_34 = arith.constant dense<0.000000e+00> : vector<1x8x8xf32>
    %70 = tpu.matmul %66, %38, %cst_34 {dimension_numbers = #tpu.dot_dimension_numbers<[2], [1], [1], [2], [0, 0, 0, 1, 1, 2], [0], [0]>} : vector<1x8x8xbf16>, vector<1x8x8xbf16>, vector<1x8x8xf32> -> vector<1x8x8xf32>
    "tpu.trace_stop"() : () -> ()
    %71 = vector.shape_cast %70 : vector<1x8x8xf32> to vector<8x8xf32>
    %c0_35 = arith.constant 0 : index
    %c0_36 = arith.constant 0 : index
    %c0_37 = arith.constant 0 : index
    %72 = vector.load %arg13[%c0_35, %c0_36, %c0_37] : memref<4x128x8xbf16, #tpu.memory_space<vmem>>, vector<1x128x8xbf16>
    %73 = vector.shape_cast %72 : vector<1x128x8xbf16> to vector<128x8xbf16>
    %cst_38 = arith.constant dense<0.000000e+00> : vector<8x8xf32>
    %74 = tpu.matmul %69, %73, %cst_38 {dimension_numbers = #tpu.dot_dimension_numbers<[1], [0], [0], [1], [0, 0, 1, 1], [], []>} : vector<8x128xbf16>, vector<128x8xbf16>, vector<8x8xf32> -> vector<8x8xf32>
    %75 = arith.addf %71, %74 : vector<8x8xf32>
    %76 = arith.truncf %75 : vector<8x8xf32> to vector<8x8xbf16>
    %c0_39 = arith.constant 0 : index
    %c0_40 = arith.constant 0 : index
    %c0_41 = arith.constant 0 : index
    %77 = vector.load %arg10[%c0_39, %c0_40, %c0_41] : memref<4x8x128xbf16, #tpu.memory_space<vmem>>, vector<1x8x128xbf16>
    %78 = vector.shape_cast %77 : vector<1x8x128xbf16> to vector<8x128xbf16>
    %cst_42 = arith.constant dense<0.000000e+00> : vector<8x128xf32>
    %79 = tpu.matmul %76, %78, %cst_42 {dimension_numbers = #tpu.dot_dimension_numbers<[1], [0], [0], [1], [0, 0, 1, 1], [], []>} : vector<8x8xbf16>, vector<8x128xbf16>, vector<8x128xf32> -> vector<8x128xf32>
    %80 = vector.extract_strided_slice %22 {offsets = [0, 8], sizes = [8, 8], strides = [1, 1]} : vector<8x32xf32> to vector<8x8xf32>
    %81 = arith.truncf %80 : vector<8x8xf32> to vector<8x8xbf16>
    %82 = vector.shape_cast %80 : vector<8x8xf32> to vector<1x8x8xf32>
    %83 = arith.truncf %82 : vector<1x8x8xf32> to vector<1x8x8xbf16>
    %84 = vector.extract_strided_slice %15 {offsets = [0, 8], sizes = [8, 8], strides = [1, 1]} : vector<8x32xf32> to vector<8x8xf32>
    %85 = vector.shape_cast %84 : vector<8x8xf32> to vector<1x8x8xf32>
    %86 = arith.truncf %85 : vector<1x8x8xf32> to vector<1x8x8xbf16>
    %87 = vector.extract_strided_slice %20 {offsets = [0, 8], sizes = [8, 8], strides = [1, 1]} : vector<8x32xf32> to vector<8x8xf32>
    %88 = vector.shape_cast %87 : vector<8x8xf32> to vector<1x8x8xf32>
    %89 = arith.truncf %88 : vector<1x8x8xf32> to vector<1x8x8xbf16>
    "tpu.trace_start"() <{level = 10 : i32, message = "bqd,bkd->bqk"}> : () -> ()
    %cst_43 = arith.constant dense<0.000000e+00> : vector<1x8x8xf32>
    %90 = tpu.matmul %83, %86, %cst_43 {dimension_numbers = #tpu.dot_dimension_numbers<[2], [2], [1], [1], [0, 0, 0, 1, 1, 1], [0], [0]>} : vector<1x8x8xbf16>, vector<1x8x8xbf16>, vector<1x8x8xf32> -> vector<1x8x8xf32>
    "tpu.trace_stop"() : () -> ()
    %91 = vector.shape_cast %90 : vector<1x8x8xf32> to vector<8x8xf32>
    %c1 = arith.constant 1 : index
    %c0_44 = arith.constant 0 : index
    %c0_45 = arith.constant 0 : index
    %92 = vector.load %arg12[%c1, %c0_44, %c0_45] : memref<4x128x8xbf16, #tpu.memory_space<vmem>>, vector<1x128x8xbf16>
    %93 = vector.shape_cast %92 : vector<1x128x8xbf16> to vector<128x8xbf16>
    "tpu.trace_start"() <{level = 10 : i32, message = "md,kd->mk"}> : () -> ()
    %cst_46 = arith.constant dense<0.000000e+00> : vector<8x128xf32>
    %94 = tpu.matmul %81, %93, %cst_46 {dimension_numbers = #tpu.dot_dimension_numbers<[1], [1], [0], [0], [0, 0, 1, 0], [], []>} : vector<8x8xbf16>, vector<128x8xbf16>, vector<8x128xf32> -> vector<8x128xf32>
    "tpu.trace_stop"() : () -> ()
    %95 = vector.broadcast %28 : vector<1x128xf32> to vector<8x128xf32>
    %96 = arith.addf %94, %95 : vector<8x128xf32>
    %cst_47 = arith.constant dense<0xFF800000> : vector<8xf32>
    %97 = vector.multi_reduction <maximumf>, %91, %cst_47 [1] : vector<8x8xf32> to vector<8xf32>
    %98 = vector.shape_cast %97 : vector<8xf32> to vector<8x1xf32>
    %cst_48 = arith.constant dense<0xFF800000> : vector<8xf32>
    %99 = vector.multi_reduction <maximumf>, %96, %cst_48 [1] : vector<8x128xf32> to vector<8xf32>
    %100 = vector.shape_cast %99 : vector<8xf32> to vector<8x1xf32>
    %101 = arith.maximumf %98, %100 : vector<8x1xf32>
    %102 = vector.broadcast %101 : vector<8x1xf32> to vector<8x8xf32>
    %103 = arith.subf %91, %102 : vector<8x8xf32>
    %104 = math.exp %103 : vector<8x8xf32>
    %105 = vector.broadcast %101 : vector<8x1xf32> to vector<8x128xf32>
    %106 = arith.subf %96, %105 : vector<8x128xf32>
    %107 = math.exp %106 : vector<8x128xf32>
    %cst_49 = arith.constant dense<0.000000e+00> : vector<8xf32>
    %108 = vector.multi_reduction <add>, %104, %cst_49 [1] : vector<8x8xf32> to vector<8xf32>
    %109 = vector.shape_cast %108 : vector<8xf32> to vector<8x1xf32>
    %cst_50 = arith.constant dense<0.000000e+00> : vector<8xf32>
    %110 = vector.multi_reduction <add>, %107, %cst_50 [1] : vector<8x128xf32> to vector<8xf32>
    %111 = vector.shape_cast %110 : vector<8xf32> to vector<8x1xf32>
    %112 = arith.addf %109, %111 : vector<8x1xf32>
    %113 = tpu.reciprocal %112 {approx = true} : vector<8x1xf32> -> vector<8x1xf32>
    %114 = vector.broadcast %113 : vector<8x1xf32> to vector<8x8xf32>
    %115 = arith.mulf %104, %114 : vector<8x8xf32>
    %116 = vector.shape_cast %115 : vector<8x8xf32> to vector<1x8x8xf32>
    %117 = arith.truncf %116 : vector<1x8x8xf32> to vector<1x8x8xbf16>
    %118 = vector.broadcast %113 : vector<8x1xf32> to vector<8x128xf32>
    %119 = arith.mulf %107, %118 : vector<8x128xf32>
    %120 = arith.truncf %119 : vector<8x128xf32> to vector<8x128xbf16>
    "tpu.trace_start"() <{level = 10 : i32, message = "bqk,bkd->bqd"}> : () -> ()
    %cst_51 = arith.constant dense<0.000000e+00> : vector<1x8x8xf32>
    %121 = tpu.matmul %117, %89, %cst_51 {dimension_numbers = #tpu.dot_dimension_numbers<[2], [1], [1], [2], [0, 0, 0, 1, 1, 2], [0], [0]>} : vector<1x8x8xbf16>, vector<1x8x8xbf16>, vector<1x8x8xf32> -> vector<1x8x8xf32>
    "tpu.trace_stop"() : () -> ()
    %122 = vector.shape_cast %121 : vector<1x8x8xf32> to vector<8x8xf32>
    %c1_52 = arith.constant 1 : index
    %c0_53 = arith.constant 0 : index
    %c0_54 = arith.constant 0 : index
    %123 = vector.load %arg13[%c1_52, %c0_53, %c0_54] : memref<4x128x8xbf16, #tpu.memory_space<vmem>>, vector<1x128x8xbf16>
    %124 = vector.shape_cast %123 : vector<1x128x8xbf16> to vector<128x8xbf16>
    %cst_55 = arith.constant dense<0.000000e+00> : vector<8x8xf32>
    %125 = tpu.matmul %120, %124, %cst_55 {dimension_numbers = #tpu.dot_dimension_numbers<[1], [0], [0], [1], [0, 0, 1, 1], [], []>} : vector<8x128xbf16>, vector<128x8xbf16>, vector<8x8xf32> -> vector<8x8xf32>
    %126 = arith.addf %122, %125 : vector<8x8xf32>
    %127 = arith.truncf %126 : vector<8x8xf32> to vector<8x8xbf16>
    %c1_56 = arith.constant 1 : index
    %c0_57 = arith.constant 0 : index
    %c0_58 = arith.constant 0 : index
    %128 = vector.load %arg10[%c1_56, %c0_57, %c0_58] : memref<4x8x128xbf16, #tpu.memory_space<vmem>>, vector<1x8x128xbf16>
    %129 = vector.shape_cast %128 : vector<1x8x128xbf16> to vector<8x128xbf16>
    %cst_59 = arith.constant dense<0.000000e+00> : vector<8x128xf32>
    %130 = tpu.matmul %127, %129, %cst_59 {dimension_numbers = #tpu.dot_dimension_numbers<[1], [0], [0], [1], [0, 0, 1, 1], [], []>} : vector<8x8xbf16>, vector<8x128xbf16>, vector<8x128xf32> -> vector<8x128xf32>
    %131 = arith.addf %79, %130 : vector<8x128xf32>
    %132 = vector.extract_strided_slice %22 {offsets = [0, 16], sizes = [8, 8], strides = [1, 1]} : vector<8x32xf32> to vector<8x8xf32>
    %133 = arith.truncf %132 : vector<8x8xf32> to vector<8x8xbf16>
    %134 = vector.shape_cast %132 : vector<8x8xf32> to vector<1x8x8xf32>
    %135 = arith.truncf %134 : vector<1x8x8xf32> to vector<1x8x8xbf16>
    %136 = vector.extract_strided_slice %15 {offsets = [0, 16], sizes = [8, 8], strides = [1, 1]} : vector<8x32xf32> to vector<8x8xf32>
    %137 = vector.shape_cast %136 : vector<8x8xf32> to vector<1x8x8xf32>
    %138 = arith.truncf %137 : vector<1x8x8xf32> to vector<1x8x8xbf16>
    %139 = vector.extract_strided_slice %20 {offsets = [0, 16], sizes = [8, 8], strides = [1, 1]} : vector<8x32xf32> to vector<8x8xf32>
    %140 = vector.shape_cast %139 : vector<8x8xf32> to vector<1x8x8xf32>
    %141 = arith.truncf %140 : vector<1x8x8xf32> to vector<1x8x8xbf16>
    "tpu.trace_start"() <{level = 10 : i32, message = "bqd,bkd->bqk"}> : () -> ()
    %cst_60 = arith.constant dense<0.000000e+00> : vector<1x8x8xf32>
    %142 = tpu.matmul %135, %138, %cst_60 {dimension_numbers = #tpu.dot_dimension_numbers<[2], [2], [1], [1], [0, 0, 0, 1, 1, 1], [0], [0]>} : vector<1x8x8xbf16>, vector<1x8x8xbf16>, vector<1x8x8xf32> -> vector<1x8x8xf32>
    "tpu.trace_stop"() : () -> ()
    %143 = vector.shape_cast %142 : vector<1x8x8xf32> to vector<8x8xf32>
    %c2 = arith.constant 2 : index
    %c0_61 = arith.constant 0 : index
    %c0_62 = arith.constant 0 : index
    %144 = vector.load %arg12[%c2, %c0_61, %c0_62] : memref<4x128x8xbf16, #tpu.memory_space<vmem>>, vector<1x128x8xbf16>
    %145 = vector.shape_cast %144 : vector<1x128x8xbf16> to vector<128x8xbf16>
    "tpu.trace_start"() <{level = 10 : i32, message = "md,kd->mk"}> : () -> ()
    %cst_63 = arith.constant dense<0.000000e+00> : vector<8x128xf32>
    %146 = tpu.matmul %133, %145, %cst_63 {dimension_numbers = #tpu.dot_dimension_numbers<[1], [1], [0], [0], [0, 0, 1, 0], [], []>} : vector<8x8xbf16>, vector<128x8xbf16>, vector<8x128xf32> -> vector<8x128xf32>
    "tpu.trace_stop"() : () -> ()
    %147 = vector.broadcast %28 : vector<1x128xf32> to vector<8x128xf32>
    %148 = arith.addf %146, %147 : vector<8x128xf32>
    %cst_64 = arith.constant dense<0xFF800000> : vector<8xf32>
    %149 = vector.multi_reduction <maximumf>, %143, %cst_64 [1] : vector<8x8xf32> to vector<8xf32>
    %150 = vector.shape_cast %149 : vector<8xf32> to vector<8x1xf32>
    %cst_65 = arith.constant dense<0xFF800000> : vector<8xf32>
    %151 = vector.multi_reduction <maximumf>, %148, %cst_65 [1] : vector<8x128xf32> to vector<8xf32>
    %152 = vector.shape_cast %151 : vector<8xf32> to vector<8x1xf32>
    %153 = arith.maximumf %150, %152 : vector<8x1xf32>
    %154 = vector.broadcast %153 : vector<8x1xf32> to vector<8x8xf32>
    %155 = arith.subf %143, %154 : vector<8x8xf32>
    %156 = math.exp %155 : vector<8x8xf32>
    %157 = vector.broadcast %153 : vector<8x1xf32> to vector<8x128xf32>
    %158 = arith.subf %148, %157 : vector<8x128xf32>
    %159 = math.exp %158 : vector<8x128xf32>
    %cst_66 = arith.constant dense<0.000000e+00> : vector<8xf32>
    %160 = vector.multi_reduction <add>, %156, %cst_66 [1] : vector<8x8xf32> to vector<8xf32>
    %161 = vector.shape_cast %160 : vector<8xf32> to vector<8x1xf32>
    %cst_67 = arith.constant dense<0.000000e+00> : vector<8xf32>
    %162 = vector.multi_reduction <add>, %159, %cst_67 [1] : vector<8x128xf32> to vector<8xf32>
    %163 = vector.shape_cast %162 : vector<8xf32> to vector<8x1xf32>
    %164 = arith.addf %161, %163 : vector<8x1xf32>
    %165 = tpu.reciprocal %164 {approx = true} : vector<8x1xf32> -> vector<8x1xf32>
    %166 = vector.broadcast %165 : vector<8x1xf32> to vector<8x8xf32>
    %167 = arith.mulf %156, %166 : vector<8x8xf32>
    %168 = vector.shape_cast %167 : vector<8x8xf32> to vector<1x8x8xf32>
    %169 = arith.truncf %168 : vector<1x8x8xf32> to vector<1x8x8xbf16>
    %170 = vector.broadcast %165 : vector<8x1xf32> to vector<8x128xf32>
    %171 = arith.mulf %159, %170 : vector<8x128xf32>
    %172 = arith.truncf %171 : vector<8x128xf32> to vector<8x128xbf16>
    "tpu.trace_start"() <{level = 10 : i32, message = "bqk,bkd->bqd"}> : () -> ()
    %cst_68 = arith.constant dense<0.000000e+00> : vector<1x8x8xf32>
    %173 = tpu.matmul %169, %141, %cst_68 {dimension_numbers = #tpu.dot_dimension_numbers<[2], [1], [1], [2], [0, 0, 0, 1, 1, 2], [0], [0]>} : vector<1x8x8xbf16>, vector<1x8x8xbf16>, vector<1x8x8xf32> -> vector<1x8x8xf32>
    "tpu.trace_stop"() : () -> ()
    %174 = vector.shape_cast %173 : vector<1x8x8xf32> to vector<8x8xf32>
    %c2_69 = arith.constant 2 : index
    %c0_70 = arith.constant 0 : index
    %c0_71 = arith.constant 0 : index
    %175 = vector.load %arg13[%c2_69, %c0_70, %c0_71] : memref<4x128x8xbf16, #tpu.memory_space<vmem>>, vector<1x128x8xbf16>
    %176 = vector.shape_cast %175 : vector<1x128x8xbf16> to vector<128x8xbf16>
    %cst_72 = arith.constant dense<0.000000e+00> : vector<8x8xf32>
    %177 = tpu.matmul %172, %176, %cst_72 {dimension_numbers = #tpu.dot_dimension_numbers<[1], [0], [0], [1], [0, 0, 1, 1], [], []>} : vector<8x128xbf16>, vector<128x8xbf16>, vector<8x8xf32> -> vector<8x8xf32>
    %178 = arith.addf %174, %177 : vector<8x8xf32>
    %179 = arith.truncf %178 : vector<8x8xf32> to vector<8x8xbf16>
    %c2_73 = arith.constant 2 : index
    %c0_74 = arith.constant 0 : index
    %c0_75 = arith.constant 0 : index
    %180 = vector.load %arg10[%c2_73, %c0_74, %c0_75] : memref<4x8x128xbf16, #tpu.memory_space<vmem>>, vector<1x8x128xbf16>
    %181 = vector.shape_cast %180 : vector<1x8x128xbf16> to vector<8x128xbf16>
    %cst_76 = arith.constant dense<0.000000e+00> : vector<8x128xf32>
    %182 = tpu.matmul %179, %181, %cst_76 {dimension_numbers = #tpu.dot_dimension_numbers<[1], [0], [0], [1], [0, 0, 1, 1], [], []>} : vector<8x8xbf16>, vector<8x128xbf16>, vector<8x128xf32> -> vector<8x128xf32>
    %183 = arith.addf %131, %182 : vector<8x128xf32>
    %184 = vector.extract_strided_slice %22 {offsets = [0, 24], sizes = [8, 8], strides = [1, 1]} : vector<8x32xf32> to vector<8x8xf32>
    %185 = arith.truncf %184 : vector<8x8xf32> to vector<8x8xbf16>
    %186 = vector.shape_cast %184 : vector<8x8xf32> to vector<1x8x8xf32>
    %187 = arith.truncf %186 : vector<1x8x8xf32> to vector<1x8x8xbf16>
    %188 = vector.extract_strided_slice %15 {offsets = [0, 24], sizes = [8, 8], strides = [1, 1]} : vector<8x32xf32> to vector<8x8xf32>
    %189 = vector.shape_cast %188 : vector<8x8xf32> to vector<1x8x8xf32>
    %190 = arith.truncf %189 : vector<1x8x8xf32> to vector<1x8x8xbf16>
    %191 = vector.extract_strided_slice %20 {offsets = [0, 24], sizes = [8, 8], strides = [1, 1]} : vector<8x32xf32> to vector<8x8xf32>
    %192 = vector.shape_cast %191 : vector<8x8xf32> to vector<1x8x8xf32>
    %193 = arith.truncf %192 : vector<1x8x8xf32> to vector<1x8x8xbf16>
    "tpu.trace_start"() <{level = 10 : i32, message = "bqd,bkd->bqk"}> : () -> ()
    %cst_77 = arith.constant dense<0.000000e+00> : vector<1x8x8xf32>
    %194 = tpu.matmul %187, %190, %cst_77 {dimension_numbers = #tpu.dot_dimension_numbers<[2], [2], [1], [1], [0, 0, 0, 1, 1, 1], [0], [0]>} : vector<1x8x8xbf16>, vector<1x8x8xbf16>, vector<1x8x8xf32> -> vector<1x8x8xf32>
    "tpu.trace_stop"() : () -> ()
    %195 = vector.shape_cast %194 : vector<1x8x8xf32> to vector<8x8xf32>
    %c3 = arith.constant 3 : index
    %c0_78 = arith.constant 0 : index
    %c0_79 = arith.constant 0 : index
    %196 = vector.load %arg12[%c3, %c0_78, %c0_79] : memref<4x128x8xbf16, #tpu.memory_space<vmem>>, vector<1x128x8xbf16>
    %197 = vector.shape_cast %196 : vector<1x128x8xbf16> to vector<128x8xbf16>
    "tpu.trace_start"() <{level = 10 : i32, message = "md,kd->mk"}> : () -> ()
    %cst_80 = arith.constant dense<0.000000e+00> : vector<8x128xf32>
    %198 = tpu.matmul %185, %197, %cst_80 {dimension_numbers = #tpu.dot_dimension_numbers<[1], [1], [0], [0], [0, 0, 1, 0], [], []>} : vector<8x8xbf16>, vector<128x8xbf16>, vector<8x128xf32> -> vector<8x128xf32>
    "tpu.trace_stop"() : () -> ()
    %199 = vector.broadcast %28 : vector<1x128xf32> to vector<8x128xf32>
    %200 = arith.addf %198, %199 : vector<8x128xf32>
    %cst_81 = arith.constant dense<0xFF800000> : vector<8xf32>
    %201 = vector.multi_reduction <maximumf>, %195, %cst_81 [1] : vector<8x8xf32> to vector<8xf32>
    %202 = vector.shape_cast %201 : vector<8xf32> to vector<8x1xf32>
    %cst_82 = arith.constant dense<0xFF800000> : vector<8xf32>
    %203 = vector.multi_reduction <maximumf>, %200, %cst_82 [1] : vector<8x128xf32> to vector<8xf32>
    %204 = vector.shape_cast %203 : vector<8xf32> to vector<8x1xf32>
    %205 = arith.maximumf %202, %204 : vector<8x1xf32>
    %206 = vector.broadcast %205 : vector<8x1xf32> to vector<8x8xf32>
    %207 = arith.subf %195, %206 : vector<8x8xf32>
    %208 = math.exp %207 : vector<8x8xf32>
    %209 = vector.broadcast %205 : vector<8x1xf32> to vector<8x128xf32>
    %210 = arith.subf %200, %209 : vector<8x128xf32>
    %211 = math.exp %210 : vector<8x128xf32>
    %cst_83 = arith.constant dense<0.000000e+00> : vector<8xf32>
    %212 = vector.multi_reduction <add>, %208, %cst_83 [1] : vector<8x8xf32> to vector<8xf32>
    %213 = vector.shape_cast %212 : vector<8xf32> to vector<8x1xf32>
    %cst_84 = arith.constant dense<0.000000e+00> : vector<8xf32>
    %214 = vector.multi_reduction <add>, %211, %cst_84 [1] : vector<8x128xf32> to vector<8xf32>
    %215 = vector.shape_cast %214 : vector<8xf32> to vector<8x1xf32>
    %216 = arith.addf %213, %215 : vector<8x1xf32>
    %217 = tpu.reciprocal %216 {approx = true} : vector<8x1xf32> -> vector<8x1xf32>
    %218 = vector.broadcast %217 : vector<8x1xf32> to vector<8x8xf32>
    %219 = arith.mulf %208, %218 : vector<8x8xf32>
    %220 = vector.shape_cast %219 : vector<8x8xf32> to vector<1x8x8xf32>
    %221 = arith.truncf %220 : vector<1x8x8xf32> to vector<1x8x8xbf16>
    %222 = vector.broadcast %217 : vector<8x1xf32> to vector<8x128xf32>
    %223 = arith.mulf %211, %222 : vector<8x128xf32>
    %224 = arith.truncf %223 : vector<8x128xf32> to vector<8x128xbf16>
    "tpu.trace_start"() <{level = 10 : i32, message = "bqk,bkd->bqd"}> : () -> ()
    %cst_85 = arith.constant dense<0.000000e+00> : vector<1x8x8xf32>
    %225 = tpu.matmul %221, %193, %cst_85 {dimension_numbers = #tpu.dot_dimension_numbers<[2], [1], [1], [2], [0, 0, 0, 1, 1, 2], [0], [0]>} : vector<1x8x8xbf16>, vector<1x8x8xbf16>, vector<1x8x8xf32> -> vector<1x8x8xf32>
    "tpu.trace_stop"() : () -> ()
    %226 = vector.shape_cast %225 : vector<1x8x8xf32> to vector<8x8xf32>
    %c3_86 = arith.constant 3 : index
    %c0_87 = arith.constant 0 : index
    %c0_88 = arith.constant 0 : index
    %227 = vector.load %arg13[%c3_86, %c0_87, %c0_88] : memref<4x128x8xbf16, #tpu.memory_space<vmem>>, vector<1x128x8xbf16>
    %228 = vector.shape_cast %227 : vector<1x128x8xbf16> to vector<128x8xbf16>
    %cst_89 = arith.constant dense<0.000000e+00> : vector<8x8xf32>
    %229 = tpu.matmul %224, %228, %cst_89 {dimension_numbers = #tpu.dot_dimension_numbers<[1], [0], [0], [1], [0, 0, 1, 1], [], []>} : vector<8x128xbf16>, vector<128x8xbf16>, vector<8x8xf32> -> vector<8x8xf32>
    %230 = arith.addf %226, %229 : vector<8x8xf32>
    %231 = arith.truncf %230 : vector<8x8xf32> to vector<8x8xbf16>
    %c3_90 = arith.constant 3 : index
    %c0_91 = arith.constant 0 : index
    %c0_92 = arith.constant 0 : index
    %232 = vector.load %arg10[%c3_90, %c0_91, %c0_92] : memref<4x8x128xbf16, #tpu.memory_space<vmem>>, vector<1x8x128xbf16>
    %233 = vector.shape_cast %232 : vector<1x8x128xbf16> to vector<8x128xbf16>
    %cst_93 = arith.constant dense<0.000000e+00> : vector<8x128xf32>
    %234 = tpu.matmul %231, %233, %cst_93 {dimension_numbers = #tpu.dot_dimension_numbers<[1], [0], [0], [1], [0, 0, 1, 1], [], []>} : vector<8x8xbf16>, vector<8x128xbf16>, vector<8x128xf32> -> vector<8x128xf32>
    %235 = arith.addf %183, %234 : vector<8x128xf32>
    %c0_94 = arith.constant 0 : index
    %c0_95 = arith.constant 0 : index
    %236 = vector.load %arg11[%c0_94, %c0_95] : memref<1x128xf32, #tpu.memory_space<vmem>>, vector<1x128xf32>
    %237 = vector.broadcast %236 : vector<1x128xf32> to vector<8x128xf32>
    %238 = arith.addf %235, %237 : vector<8x128xf32>
    %239 = vector.shape_cast %238 : vector<8x128xf32> to vector<1x8x128xf32>
    %c0_96 = arith.constant 0 : index
    %c0_97 = arith.constant 0 : index
    %c0_98 = arith.constant 0 : index
    %240 = vector.load %arg14[%c0_96, %c0_97, %c0_98] : memref<1x8x128xf32, #tpu.memory_space<vmem>>, vector<1x8x128xf32>
    tpu.vector_store %arg14[%c0_96, %c0_97, %c0_98], %239 {strides = array<i32>} : memref<1x8x128xf32, #tpu.memory_space<vmem>>, vector<1x8x128xf32>,
    return
  }
  func.func @transform_0(%arg0: i32) -> (i32, i32, i32) {
    %c0_i32 = arith.constant 0 : i32
    %c0_i32_0 = arith.constant 0 : i32
    %c0_i32_1 = arith.constant 0 : i32
    return %arg0, %c0_i32, %c0_i32_0 : i32, i32, i32
  }
  func.func @transform_1(%arg0: i32) -> (i32, i32, i32) {
    %c0_i32 = arith.constant 0 : i32
    %c0_i32_0 = arith.constant 0 : i32
    %c0_i32_1 = arith.constant 0 : i32
    return %arg0, %c0_i32, %c0_i32_0 : i32, i32, i32
  }
  func.func @transform_2(%arg0: i32) -> (i32, i32, i32) {
    %c0_i32 = arith.constant 0 : i32
    %c0_i32_0 = arith.constant 0 : i32
    %c0_i32_1 = arith.constant 0 : i32
    return %arg0, %c0_i32, %c0_i32_0 : i32, i32, i32
  }
  func.func @transform_3(%arg0: i32) -> (i32, i32) {
    %c0_i32 = arith.constant 0 : i32
    %c0_i32_0 = arith.constant 0 : i32
    %c0_i32_1 = arith.constant 0 : i32
    return %c0_i32, %c0_i32_0 : i32, i32
  }
  func.func @transform_4(%arg0: i32) -> (i32, i32) {
    %c0_i32 = arith.constant 0 : i32
    %c0_i32_0 = arith.constant 0 : i32
    %c0_i32_1 = arith.constant 0 : i32
    return %c0_i32, %c0_i32_0 : i32, i32
  }
  func.func @transform_5(%arg0: i32) -> (i32, i32) {
    %c0_i32 = arith.constant 0 : i32
    %c0_i32_0 = arith.constant 0 : i32
    %c0_i32_1 = arith.constant 0 : i32
    return %c0_i32, %c0_i32_0 : i32, i32
  }
  func.func @transform_6(%arg0: i32) -> (i32, i32) {
    %c0_i32 = arith.constant 0 : i32
    %c0_i32_0 = arith.constant 0 : i32
    %c0_i32_1 = arith.constant 0 : i32
    return %c0_i32, %c0_i32_0 : i32, i32
  }
  func.func @transform_7(%arg0: i32) -> (i32, i32) {
    %c0_i32 = arith.constant 0 : i32
    %c0_i32_0 = arith.constant 0 : i32
    %c0_i32_1 = arith.constant 0 : i32
    return %c0_i32, %c0_i32_0 : i32, i32
  }
  func.func @transform_8(%arg0: i32) -> (i32, i32) {
    %c0_i32 = arith.constant 0 : i32
    %c0_i32_0 = arith.constant 0 : i32
    %c0_i32_1 = arith.constant 0 : i32
    return %c0_i32, %c0_i32_0 : i32, i32
  }
  func.func @transform_9(%arg0: i32) -> (i32, i32, i32) {
    %c0_i32 = arith.constant 0 : i32
    %c0_i32_0 = arith.constant 0 : i32
    %c0_i32_1 = arith.constant 0 : i32
    %c0_i32_2 = arith.constant 0 : i32
    return %c0_i32, %c0_i32_0, %c0_i32_1 : i32, i32, i32
  }
  func.func @transform_10(%arg0: i32) -> (i32, i32) {
    %c0_i32 = arith.constant 0 : i32
    %c0_i32_0 = arith.constant 0 : i32
    %c0_i32_1 = arith.constant 0 : i32
    return %c0_i32, %c0_i32_0 : i32, i32
  }
  func.func @transform_11(%arg0: i32) -> (i32, i32, i32) {
    %c0_i32 = arith.constant 0 : i32
    %c0_i32_0 = arith.constant 0 : i32
    %c0_i32_1 = arith.constant 0 : i32
    %c0_i32_2 = arith.constant 0 : i32
    return %c0_i32, %c0_i32_0, %c0_i32_1 : i32, i32, i32
  }
  func.func @transform_12(%arg0: i32) -> (i32, i32, i32) {
    %c0_i32 = arith.constant 0 : i32
    %c0_i32_0 = arith.constant 0 : i32
    %c0_i32_1 = arith.constant 0 : i32
    %c0_i32_2 = arith.constant 0 : i32
    return %c0_i32, %c0_i32_0, %c0_i32_1 : i32, i32, i32
  }
  func.func @transform_13(%arg0: i32) -> (i32, i32, i32) {
    %c0_i32 = arith.constant 0 : i32
    %c0_i32_0 = arith.constant 0 : i32
    %c0_i32_1 = arith.constant 0 : i32
    return %arg0, %c0_i32, %c0_i32_0 : i32, i32, i32
  }
}

module attributes {stable_mosaic.version = 11 : i64} {
  func.func @memattn_kernel(%arg0: i32, %arg1: memref<1x8x32xbf16, #tpu.memory_space<vmem>>, %arg2: memref<1x8x32xbf16, #tpu.memory_space<vmem>>, %arg3: memref<1x8x32xbf16, #tpu.memory_space<vmem>>, %arg4: memref<32x32xbf16, #tpu.memory_space<vmem>>, %arg5: memref<1x32xf32, #tpu.memory_space<vmem>>, %arg6: memref<32x32xbf16, #tpu.memory_space<vmem>>, %arg7: memref<1x32xf32, #tpu.memory_space<vmem>>, %arg8: memref<32x32xbf16, #tpu.memory_space<vmem>>, %arg9: memref<1x32xf32, #tpu.memory_space<vmem>>, %arg10: memref<4x8x128xbf16, #tpu.memory_space<vmem>>, %arg11: memref<1x128xf32, #tpu.memory_space<vmem>>, %arg12: memref<4x128x8xbf16, #tpu.memory_space<vmem>>, %arg13: memref<4x128x8xbf16, #tpu.memory_space<vmem>>, %arg14: memref<1x8x128xf32, #tpu.memory_space<vmem>>) attributes {dimension_semantics = [#tpu.dimension_semantics<parallel>], iteration_bounds = array<i64: 2>, scalar_prefetch = 0 : i64, scratch_operands = 0 : i64, tpu.core_type = #tpu.core_type<tc>, window_params = [{transform_indices = @transform_0, window_bounds = array<i64: 1, 8, 32>}, {transform_indices = @transform_1, window_bounds = array<i64: 1, 8, 32>}, {transform_indices = @transform_2, window_bounds = array<i64: 1, 8, 32>}, {pipeline_mode = #tpu.pipeline_mode<synchronous>, transform_indices = @transform_3, window_bounds = array<i64: 32, 32>}, {pipeline_mode = #tpu.pipeline_mode<synchronous>, transform_indices = @transform_4, window_bounds = array<i64: 1, 32>}, {pipeline_mode = #tpu.pipeline_mode<synchronous>, transform_indices = @transform_5, window_bounds = array<i64: 32, 32>}, {pipeline_mode = #tpu.pipeline_mode<synchronous>, transform_indices = @transform_6, window_bounds = array<i64: 1, 32>}, {pipeline_mode = #tpu.pipeline_mode<synchronous>, transform_indices = @transform_7, window_bounds = array<i64: 32, 32>}, {pipeline_mode = #tpu.pipeline_mode<synchronous>, transform_indices = @transform_8, window_bounds = array<i64: 1, 32>}, {pipeline_mode = #tpu.pipeline_mode<synchronous>, transform_indices = @transform_9, window_bounds = array<i64: 4, 8, 128>}, {pipeline_mode = #tpu.pipeline_mode<synchronous>, transform_indices = @transform_10, window_bounds = array<i64: 1, 128>}, {pipeline_mode = #tpu.pipeline_mode<synchronous>, transform_indices = @transform_11, window_bounds = array<i64: 4, 128, 8>}, {pipeline_mode = #tpu.pipeline_mode<synchronous>, transform_indices = @transform_12, window_bounds = array<i64: 4, 128, 8>}, {transform_indices = @transform_13, window_bounds = array<i64: 1, 8, 128>}]} {
    %c0 = arith.constant 0 : index
    %c0_0 = arith.constant 0 : index
    %c0_1 = arith.constant 0 : index
    %0 = vector.load %arg1[%c0, %c0_0, %c0_1] : memref<1x8x32xbf16, #tpu.memory_space<vmem>>, vector<1x8x32xbf16>
    %1 = vector.shape_cast %0 : vector<1x8x32xbf16> to vector<8x32xbf16>
    %c0_2 = arith.constant 0 : index
    %c0_3 = arith.constant 0 : index
    %c0_4 = arith.constant 0 : index
    %2 = vector.load %arg2[%c0_2, %c0_3, %c0_4] : memref<1x8x32xbf16, #tpu.memory_space<vmem>>, vector<1x8x32xbf16>
    %3 = vector.shape_cast %2 : vector<1x8x32xbf16> to vector<8x32xbf16>
    %c0_5 = arith.constant 0 : index
    %c0_6 = arith.constant 0 : index
    %c0_7 = arith.constant 0 : index
    %4 = vector.load %arg3[%c0_5, %c0_6, %c0_7] : memref<1x8x32xbf16, #tpu.memory_space<vmem>>, vector<1x8x32xbf16>
    %5 = vector.shape_cast %4 : vector<1x8x32xbf16> to vector<8x32xbf16>
    %c0_8 = arith.constant 0 : index
    %c0_9 = arith.constant 0 : index
    %6 = vector.load %arg4[%c0_8, %c0_9] : memref<32x32xbf16, #tpu.memory_space<vmem>>, vector<32x32xbf16>
    %cst = arith.constant dense<0.000000e+00> : vector<8x32xf32>
    %7 = tpu.matmul %1, %6, %cst {dimension_numbers = #tpu.dot_dimension_numbers<[1], [0], [0], [1], [0, 0, 1, 1], [], []>} : vector<8x32xbf16>, vector<32x32xbf16>, vector<8x32xf32> -> vector<8x32xf32>
    %c0_10 = arith.constant 0 : index
    %c0_11 = arith.constant 0 : index
    %8 = vector.load %arg5[%c0_10, %c0_11] : memref<1x32xf32, #tpu.memory_space<vmem>>, vector<1x32xf32>
    %9 = vector.broadcast %8 : vector<1x32xf32> to vector<8x32xf32>
    %10 = arith.addf %7, %9 : vector<8x32xf32>
    %c0_12 = arith.constant 0 : index
    %c0_13 = arith.constant 0 : index
    %11 = vector.load %arg6[%c0_12, %c0_13] : memref<32x32xbf16, #tpu.memory_space<vmem>>, vector<32x32xbf16>
    %cst_14 = arith.constant dense<0.000000e+00> : vector<8x32xf32>
    %12 = tpu.matmul %3, %11, %cst_14 {dimension_numbers = #tpu.dot_dimension_numbers<[1], [0], [0], [1], [0, 0, 1, 1], [], []>} : vector<8x32xbf16>, vector<32x32xbf16>, vector<8x32xf32> -> vector<8x32xf32>
    %c0_15 = arith.constant 0 : index
    %c0_16 = arith.constant 0 : index
    %13 = vector.load %arg7[%c0_15, %c0_16] : memref<1x32xf32, #tpu.memory_space<vmem>>, vector<1x32xf32>
    %14 = vector.broadcast %13 : vector<1x32xf32> to vector<8x32xf32>
    %15 = arith.addf %12, %14 : vector<8x32xf32>
    %c0_17 = arith.constant 0 : index
    %c0_18 = arith.constant 0 : index
    %16 = vector.load %arg8[%c0_17, %c0_18] : memref<32x32xbf16, #tpu.memory_space<vmem>>, vector<32x32xbf16>
    %cst_19 = arith.constant dense<0.000000e+00> : vector<8x32xf32>
    %17 = tpu.matmul %5, %16, %cst_19 {dimension_numbers = #tpu.dot_dimension_numbers<[1], [0], [0], [1], [0, 0, 1, 1], [], []>} : vector<8x32xbf16>, vector<32x32xbf16>, vector<8x32xf32> -> vector<8x32xf32>
    %c0_20 = arith.constant 0 : index
    %c0_21 = arith.constant 0 : index
    %18 = vector.load %arg9[%c0_20, %c0_21] : memref<1x32xf32, #tpu.memory_space<vmem>>, vector<1x32xf32>
    %19 = vector.broadcast %18 : vector<1x32xf32> to vector<8x32xf32>
    %20 = arith.addf %17, %19 : vector<8x32xf32>
    %cst_22 = arith.constant 0.353553385 : f32
    %21 = vector.broadcast %cst_22 : f32 to vector<8x32xf32>
    %22 = arith.mulf %10, %21 : vector<8x32xf32>
    %23 = tpu.iota {dimensions = array<i32: 1>} : vector<1x128xi32>
    %c8_i32 = arith.constant 8 : i32
    %24 = vector.broadcast %c8_i32 : i32 to vector<1x128xi32>
    %25 = arith.cmpi slt, %23, %24 : vector<1x128xi32>
    %cst_23 = arith.constant 0.000000e+00 : f32
    %cst_24 = arith.constant -1.000000e+30 : f32
    %26 = vector.broadcast %cst_23 : f32 to vector<1x128xf32>
    %27 = vector.broadcast %cst_24 : f32 to vector<1x128xf32>
    %28 = arith.select %25, %26, %27 : vector<1x128xi1>, vector<1x128xf32>
    %29 = vector.extract_strided_slice %22 {offsets = [0, 0], sizes = [8, 8], strides = [1, 1]} : vector<8x32xf32> to vector<8x8xf32>
    %30 = arith.truncf %29 : vector<8x8xf32> to vector<8x8xbf16>
    %31 = vector.shape_cast %29 : vector<8x8xf32> to vector<1x8x8xf32>
    %32 = arith.truncf %31 : vector<1x8x8xf32> to vector<1x8x8xbf16>
    %33 = vector.extract_strided_slice %15 {offsets = [0, 0], sizes = [8, 8], strides = [1, 1]} : vector<8x32xf32> to vector<8x8xf32>
    %34 = vector.shape_cast %33 : vector<8x8xf32> to vector<1x8x8xf32>
    %35 = arith.truncf %34 : vector<1x8x8xf32> to vector<1x8x8xbf16>
    %36 = vector.extract_strided_slice %20 {offsets = [0, 0], sizes = [8, 8], strides = [1, 1]} : vector<8x32xf32> to vector<8x8xf32>
    %37 = vector.shape_cast %36 : vector<8x8xf32> to vector<1x8x8xf32>
    %38 = arith.truncf %37 : vector<1x8x8xf32> to vector<1x8x8xbf16>
    "tpu.trace_start"() <{level = 10 : i32, message = "bqd,bkd->bqk"}> : () -> ()
    %cst_25 = arith.constant dense<0.000000e+00> : vector<1x8x8xf32>
    %39 = tpu.matmul %32, %35, %cst_25 {dimension_numbers = #tpu.dot_dimension_numbers<[2], [2], [1], [1], [0, 0, 0, 1, 1, 1], [0], [0]>} : vector<1x8x8xbf16>, vector<1x8x8xbf16>, vector<1x8x8xf32> -> vector<1x8x8xf32>
    "tpu.trace_stop"() : () -> ()
    %40 = vector.shape_cast %39 : vector<1x8x8xf32> to vector<8x8xf32>
    %c0_26 = arith.constant 0 : index
    %c0_27 = arith.constant 0 : index
    %c0_28 = arith.constant 0 : index
    %41 = vector.load %arg12[%c0_26, %c0_27, %c0_28] : memref<4x128x8xbf16, #tpu.memory_space<vmem>>, vector<1x128x8xbf16>
    %42 = vector.shape_cast %41 : vector<1x128x8xbf16> to vector<128x8xbf16>
    "tpu.trace_start"() <{level = 10 : i32, message = "md,kd->mk"}> : () -> ()
    %cst_29 = arith.constant dense<0.000000e+00> : vector<8x128xf32>
    %43 = tpu.matmul %30, %42, %cst_29 {dimension_numbers = #tpu.dot_dimension_numbers<[1], [1], [0], [0], [0, 0, 1, 0], [], []>} : vector<8x8xbf16>, vector<128x8xbf16>, vector<8x128xf32> -> vector<8x128xf32>
    "tpu.trace_stop"() : () -> ()
    %44 = vector.broadcast %28 : vector<1x128xf32> to vector<8x128xf32>
    %45 = arith.addf %43, %44 : vector<8x128xf32>
    %cst_30 = arith.constant dense<0xFF800000> : vector<8xf32>
    %46 = vector.multi_reduction <maximumf>, %40, %cst_30 [1] : vector<8x8xf32> to vector<8xf32>
    %47 = vector.shape_cast %46 : vector<8xf32> to vector<8x1xf32>
    %cst_31 = arith.constant dense<0xFF800000> : vector<8xf32>
    %48 = vector.multi_reduction <maximumf>, %45, %cst_31 [1] : vector<8x128xf32> to vector<8xf32>
    %49 = vector.shape_cast %48 : vector<8xf32> to vector<8x1xf32>
    %50 = arith.maximumf %47, %49 : vector<8x1xf32>
    %51 = vector.broadcast %50 : vector<8x1xf32> to vector<8x8xf32>
    %52 = arith.subf %40, %51 : vector<8x8xf32>
    %53 = math.exp %52 : vector<8x8xf32>
    %54 = vector.broadcast %50 : vector<8x1xf32> to vector<8x128xf32>
    %55 = arith.subf %45, %54 : vector<8x128xf32>
    %56 = math.exp %55 : vector<8x128xf32>
    %cst_32 = arith.constant dense<0.000000e+00> : vector<8xf32>
    %57 = vector.multi_reduction <add>, %53, %cst_32 [1] : vector<8x8xf32> to vector<8xf32>
    %58 = vector.shape_cast %57 : vector<8xf32> to vector<8x1xf32>
    %cst_33 = arith.constant dense<0.000000e+00> : vector<8xf32>
    %59 = vector.multi_reduction <add>, %56, %cst_33 [1] : vector<8x128xf32> to vector<8xf32>
    %60 = vector.shape_cast %59 : vector<8xf32> to vector<8x1xf32>
    %61 = arith.addf %58, %60 : vector<8x1xf32>
    %62 = tpu.reciprocal %61 {approx = true} : vector<8x1xf32> -> vector<8x1xf32>
    %63 = vector.broadcast %62 : vector<8x1xf32> to vector<8x8xf32>
    %64 = arith.mulf %53, %63 : vector<8x8xf32>
    %65 = vector.shape_cast %64 : vector<8x8xf32> to vector<1x8x8xf32>
    %66 = arith.truncf %65 : vector<1x8x8xf32> to vector<1x8x8xbf16>
    %67 = vector.broadcast %62 : vector<8x1xf32> to vector<8x128xf32>
    %68 = arith.mulf %56, %67 : vector<8x128xf32>
    %69 = arith.truncf %68 : vector<8x128xf32> to vector<8x128xbf16>
    "tpu.trace_start"() <{level = 10 : i32, message = "bqk,bkd->bqd"}> : () -> ()
    %cst_34 = arith.constant dense<0.000000e+00> : vector<1x8x8xf32>
    %70 = tpu.matmul %66, %38, %cst_34 {dimension_numbers = #tpu.dot_dimension_numbers<[2], [1], [1], [2], [0, 0, 0, 1, 1, 2], [0], [0]>} : vector<1x8x8xbf16>, vector<1x8x8xbf16>, vector<1x8x8xf32> -> vector<1x8x8xf32>
    "tpu.trace_stop"() : () -> ()
    %71 = vector.shape_cast %70 : vector<1x8x8xf32> to vector<8x8xf32>
    %c0_35 = arith.constant 0 : index
    %c0_36 = arith.constant 0 : index
    %c0_37 = arith.constant 0 : index
    %72 = vector.load %arg13[%c0_35, %c0_36, %c0_37] : memref<4x128x8xbf16, #tpu.memory_space<vmem>>, vector<1x128x8xbf16>
    %73 = vector.shape_cast %72 : vector<1x128x8xbf16> to vector<128x8xbf16>
    %cst_38 = arith.constant dense<0.000000e+00> : vector<8x8xf32>
    %74 = tpu.matmul %69, %73, %cst_38 {dimension_numbers = #tpu.dot_dimension_numbers<[1], [0], [0], [1], [0, 0, 1, 1], [], []>} : vector<8x128xbf16>, vector<128x8xbf16>, vector<8x8xf32> -> vector<8x8xf32>
    %75 = arith.addf %71, %74 : vector<8x8xf32>
    %76 = arith.truncf %75 : vector<8x8xf32> to vector<8x8xbf16>
    %c0_39 = arith.constant 0 : index
    %c0_40 = arith.constant 0 : index
    %c0_41 = arith.constant 0 : index
    %77 = vector.load %arg10[%c0_39, %c0_40, %c0_41] : memref<4x8x128xbf16, #tpu.memory_space<vmem>>, vector<1x8x128xbf16>
    %78 = vector.shape_cast %77 : vector<1x8x128xbf16> to vector<8x128xbf16>
    %cst_42 = arith.constant dense<0.000000e+00> : vector<8x128xf32>
    %79 = tpu.matmul %76, %78, %cst_42 {dimension_numbers = #tpu.dot_dimension_numbers<[1], [0], [0], [1], [0, 0, 1, 1], [], []>} : vector<8x8xbf16>, vector<8x128xbf16>, vector<8x128xf32> -> vector<8x128xf32>
    %80 = vector.extract_strided_slice %22 {offsets = [0, 8], sizes = [8, 8], strides = [1, 1]} : vector<8x32xf32> to vector<8x8xf32>
    %81 = arith.truncf %80 : vector<8x8xf32> to vector<8x8xbf16>
    %82 = vector.shape_cast %80 : vector<8x8xf32> to vector<1x8x8xf32>
    %83 = arith.truncf %82 : vector<1x8x8xf32> to vector<1x8x8xbf16>
    %84 = vector.extract_strided_slice %15 {offsets = [0, 8], sizes = [8, 8], strides = [1, 1]} : vector<8x32xf32> to vector<8x8xf32>
    %85 = vector.shape_cast %84 : vector<8x8xf32> to vector<1x8x8xf32>
    %86 = arith.truncf %85 : vector<1x8x8xf32> to vector<1x8x8xbf16>
    %87 = vector.extract_strided_slice %20 {offsets = [0, 8], sizes = [8, 8], strides = [1, 1]} : vector<8x32xf32> to vector<8x8xf32>
    %88 = vector.shape_cast %87 : vector<8x8xf32> to vector<1x8x8xf32>
    %89 = arith.truncf %88 : vector<1x8x8xf32> to vector<1x8x8xbf16>
    "tpu.trace_start"() <{level = 10 : i32, message = "bqd,bkd->bqk"}> : () -> ()
    %cst_43 = arith.constant dense<0.000000e+00> : vector<1x8x8xf32>
    %90 = tpu.matmul %83, %86, %cst_43 {dimension_numbers = #tpu.dot_dimension_numbers<[2], [2], [1], [1], [0, 0, 0, 1, 1, 1], [0], [0]>} : vector<1x8x8xbf16>, vector<1x8x8xbf16>, vector<1x8x8xf32> -> vector<1x8x8xf32>
    "tpu.trace_stop"() : () -> ()
    %91 = vector.shape_cast %90 : vector<1x8x8xf32> to vector<8x8xf32>
    %c1 = arith.constant 1 : index
    %c0_44 = arith.constant 0 : index
    %c0_45 = arith.constant 0 : index
    %92 = vector.load %arg12[%c1, %c0_44, %c0_45] : memref<4x128x8xbf16, #tpu.memory_space<vmem>>, vector<1x128x8xbf16>
    %93 = vector.shape_cast %92 : vector<1x128x8xbf16> to vector<128x8xbf16>
    "tpu.trace_start"() <{level = 10 : i32, message = "md,kd->mk"}> : () -> ()
    %cst_46 = arith.constant dense<0.000000e+00> : vector<8x128xf32>
    %94 = tpu.matmul %81, %93, %cst_46 {dimension_numbers = #tpu.dot_dimension_numbers<[1], [1], [0], [0], [0, 0, 1, 0], [], []>} : vector<8x8xbf16>, vector<128x8xbf16>, vector<8x128xf32> -> vector<8x128xf32>
    "tpu.trace_stop"() : () -> ()
    %95 = vector.broadcast %28 : vector<1x128xf32> to vector<8x128xf32>
    %96 = arith.addf %94, %95 : vector<8x128xf32>
    %cst_47 = arith.constant dense<0xFF800000> : vector<8xf32>
    %97 = vector.multi_reduction <maximumf>, %91, %cst_47 [1] : vector<8x8xf32> to vector<8xf32>
    %98 = vector.shape_cast %97 : vector<8xf32> to vector<8x1xf32>
    %cst_48 = arith.constant dense<0xFF800000> : vector<8xf32>
    %99 = vector.multi_reduction <maximumf>, %96, %cst_48 [1] : vector<8x128xf32> to vector<8xf32>
    %100 = vector.shape_cast %99 : vector<8xf32> to vector<8x1xf32>
    %101 = arith.maximumf %98, %100 : vector<8x1xf32>
    %102 = vector.broadcast %101 : vector<8x1xf32> to vector<8x8xf32>
    %103 = arith.subf %91, %102 : vector<8x8xf32>
    %104 = math.exp %103 : vector<8x8xf32>
    %105 = vector.broadcast %101 : vector<8x1xf32> to vector<8x128xf32>
    %106 = arith.subf %96, %105 : vector<8x128xf32>
    %107 = math.exp %106 : vector<8x128xf32>
    %cst_49 = arith.constant dense<0.000000e+00> : vector<8xf32>
    %108 = vector.multi_reduction <add>, %104, %cst_49 [1] : vector<8x8xf32> to vector<8xf32>
    %109 = vector.shape_cast %108 : vector<8xf32> to vector<8x1xf32>
    %cst_50 = arith.constant dense<0.000000e+00> : vector<8xf32>
    %110 = vector.multi_reduction <add>, %107, %cst_50 [1] : vector<8x128xf32> to vector<8xf32>
    %111 = vector.shape_cast %110 : vector<8xf32> to vector<8x1xf32>
    %112 = arith.addf %109, %111 : vector<8x1xf32>
    %113 = tpu.reciprocal %112 {approx = true} : vector<8x1xf32> -> vector<8x1xf32>
    %114 = vector.broadcast %113 : vector<8x1xf32> to vector<8x8xf32>
    %115 = arith.mulf %104, %114 : vector<8x8xf32>
    %116 = vector.shape_cast %115 : vector<8x8xf32> to vector<1x8x8xf32>
    %117 = arith.truncf %116 : vector<1x8x8xf32> to vector<1x8x8xbf16>
    %118 = vector.broadcast %113 : vector<8x1xf32> to vector<8x128xf32>
    %119 = arith.mulf %107, %118 : vector<8x128xf32>
    %120 = arith.truncf %119 : vector<8x128xf32> to vector<8x128xbf16>
    "tpu.trace_start"() <{level = 10 : i32, message = "bqk,bkd->bqd"}> : () -> ()
    %cst_51 = arith.constant dense<0.000000e+00> : vector<1x8x8xf32>
    %121 = tpu.matmul %117, %89, %cst_51 {dimension_numbers = #tpu.dot_dimension_numbers<[2], [1], [1], [2], [0, 0, 0, 1, 1, 2], [0], [0]>} : vector<1x8x8xbf16>, vector<1x8x8xbf16>, vector<1x8x8xf32> -> vector<1x8x8xf32>
    "tpu.trace_stop"() : () -> ()
    %122 = vector.shape_cast %121 : vector<1x8x8xf32> to vector<8x8xf32>
    %c1_52 = arith.constant 1 : index
    %c0_53 = arith.constant 0 : index
    %c0_54 = arith.constant 0 : index
    %123 = vector.load %arg13[%c1_52, %c0_53, %c0_54] : memref<4x128x8xbf16, #tpu.memory_space<vmem>>, vector<1x128x8xbf16>
    %124 = vector.shape_cast %123 : vector<1x128x8xbf16> to vector<128x8xbf16>
    %cst_55 = arith.constant dense<0.000000e+00> : vector<8x8xf32>
    %125 = tpu.matmul %120, %124, %cst_55 {dimension_numbers = #tpu.dot_dimension_numbers<[1], [0], [0], [1], [0, 0, 1, 1], [], []>} : vector<8x128xbf16>, vector<128x8xbf16>, vector<8x8xf32> -> vector<8x8xf32>
    %126 = arith.addf %122, %125 : vector<8x8xf32>
    %127 = arith.truncf %126 : vector<8x8xf32> to vector<8x8xbf16>
    %c1_56 = arith.constant 1 : index
    %c0_57 = arith.constant 0 : index
    %c0_58 = arith.constant 0 : index
    %128 = vector.load %arg10[%c1_56, %c0_57, %c0_58] : memref<4x8x128xbf16, #tpu.memory_space<vmem>>, vector<1x8x128xbf16>
    %129 = vector.shape_cast %128 : vector<1x8x128xbf16> to vector<8x128xbf16>
    %cst_59 = arith.constant dense<0.000000e+00> : vector<8x128xf32>
    %130 = tpu.matmul %127, %129, %cst_59 {dimension_numbers = #tpu.dot_dimension_numbers<[1], [0], [0], [1], [0, 0, 1, 1], [], []>} : vector<8x8xbf16>, vector<8x128xbf16>, vector<8x128xf32> -> vector<8x128xf32>
    %131 = arith.addf %79, %130 : vector<8x128xf32>
    %132 = vector.extract_strided_slice %22 {offsets = [0, 16], sizes = [8, 8], strides = [1, 1]} : vector<8x32xf32> to vector<8x8xf32>
    %133 = arith.truncf %132 : vector<8x8xf32> to vector<8x8xbf16>
    %134 = vector.shape_cast %132 : vector<8x8xf32> to vector<1x8x8xf32>
    %135 = arith.truncf %134 : vector<1x8x8xf32> to vector<1x8x8xbf16>
    %136 = vector.extract_strided_slice %15 {offsets = [0, 16], sizes = [8, 8], strides = [1, 1]} : vector<8x32xf32> to vector<8x8xf32>
    %137 = vector.shape_cast %136 : vector<8x8xf32> to vector<1x8x8xf32>
    %138 = arith.truncf %137 : vector<1x8x8xf32> to vector<1x8x8xbf16>
    %139 = vector.extract_strided_slice %20 {offsets = [0, 16], sizes = [8, 8], strides = [1, 1]} : vector<8x32xf32> to vector<8x8xf32>
    %140 = vector.shape_cast %139 : vector<8x8xf32> to vector<1x8x8xf32>
    %141 = arith.truncf %140 : vector<1x8x8xf32> to vector<1x8x8xbf16>
    "tpu.trace_start"() <{level = 10 : i32, message = "bqd,bkd->bqk"}> : () -> ()
    %cst_60 = arith.constant dense<0.000000e+00> : vector<1x8x8xf32>
    %142 = tpu.matmul %135, %138, %cst_60 {dimension_numbers = #tpu.dot_dimension_numbers<[2], [2], [1], [1], [0, 0, 0, 1, 1, 1], [0], [0]>} : vector<1x8x8xbf16>, vector<1x8x8xbf16>, vector<1x8x8xf32> -> vector<1x8x8xf32>
    "tpu.trace_stop"() : () -> ()
    %143 = vector.shape_cast %142 : vector<1x8x8xf32> to vector<8x8xf32>
    %c2 = arith.constant 2 : index
    %c0_61 = arith.constant 0 : index
    %c0_62 = arith.constant 0 : index
    %144 = vector.load %arg12[%c2, %c0_61, %c0_62] : memref<4x128x8xbf16, #tpu.memory_space<vmem>>, vector<1x128x8xbf16>
    %145 = vector.shape_cast %144 : vector<1x128x8xbf16> to vector<128x8xbf16>
    "tpu.trace_start"() <{level = 10 : i32, message = "md,kd->mk"}> : () -> ()
    %cst_63 = arith.constant dense<0.000000e+00> : vector<8x128xf32>
    %146 = tpu.matmul %133, %145, %cst_63 {dimension_numbers = #tpu.dot_dimension_numbers<[1], [1], [0], [0], [0, 0, 1, 0], [], []>} : vector<8x8xbf16>, vector<128x8xbf16>, vector<8x128xf32> -> vector<8x128xf32>
    "tpu.trace_stop"() : () -> ()
    %147 = vector.broadcast %28 : vector<1x128xf32> to vector<8x128xf32>
    %148 = arith.addf %146, %147 : vector<8x128xf32>
    %cst_64 = arith.constant dense<0xFF800000> : vector<8xf32>
    %149 = vector.multi_reduction <maximumf>, %143, %cst_64 [1] : vector<8x8xf32> to vector<8xf32>
    %150 = vector.shape_cast %149 : vector<8xf32> to vector<8x1xf32>
    %cst_65 = arith.constant dense<0xFF800000> : vector<8xf32>
    %151 = vector.multi_reduction <maximumf>, %148, %cst_65 [1] : vector<8x128xf32> to vector<8xf32>
    %152 = vector.shape_cast %151 : vector<8xf32> to vector<8x1xf32>
    %153 = arith.maximumf %150, %152 : vector<8x1xf32>
    %154 = vector.broadcast %153 : vector<8x1xf32> to vector<8x8xf32>
    %155 = arith.subf %143, %154 : vector<8x8xf32>
    %156 = math.exp %155 : vector<8x8xf32>
    %157 = vector.broadcast %153 : vector<8x1xf32> to vector<8x128xf32>
    %158 = arith.subf %148, %157 : vector<8x128xf32>
    %159 = math.exp %158 : vector<8x128xf32>
    %cst_66 = arith.constant dense<0.000000e+00> : vector<8xf32>
    %160 = vector.multi_reduction <add>, %156, %cst_66 [1] : vector<8x8xf32> to vector<8xf32>
    %161 = vector.shape_cast %160 : vector<8xf32> to vector<8x1xf32>
    %cst_67 = arith.constant dense<0.000000e+00> : vector<8xf32>
    %162 = vector.multi_reduction <add>, %159, %cst_67 [1] : vector<8x128xf32> to vector<8xf32>
    %163 = vector.shape_cast %162 : vector<8xf32> to vector<8x1xf32>
    %164 = arith.addf %161, %163 : vector<8x1xf32>
    %165 = tpu.reciprocal %164 {approx = true} : vector<8x1xf32> -> vector<8x1xf32>
    %166 = vector.broadcast %165 : vector<8x1xf32> to vector<8x8xf32>
    %167 = arith.mulf %156, %166 : vector<8x8xf32>
    %168 = vector.shape_cast %167 : vector<8x8xf32> to vector<1x8x8xf32>
    %169 = arith.truncf %168 : vector<1x8x8xf32> to vector<1x8x8xbf16>
    %170 = vector.broadcast %165 : vector<8x1xf32> to vector<8x128xf32>
    %171 = arith.mulf %159, %170 : vector<8x128xf32>
    %172 = arith.truncf %171 : vector<8x128xf32> to vector<8x128xbf16>
    "tpu.trace_start"() <{level = 10 : i32, message = "bqk,bkd->bqd"}> : () -> ()
    %cst_68 = arith.constant dense<0.000000e+00> : vector<1x8x8xf32>
    %173 = tpu.matmul %169, %141, %cst_68 {dimension_numbers = #tpu.dot_dimension_numbers<[2], [1], [1], [2], [0, 0, 0, 1, 1, 2], [0], [0]>} : vector<1x8x8xbf16>, vector<1x8x8xbf16>, vector<1x8x8xf32> -> vector<1x8x8xf32>
    "tpu.trace_stop"() : () -> ()
    %174 = vector.shape_cast %173 : vector<1x8x8xf32> to vector<8x8xf32>
    %c2_69 = arith.constant 2 : index
    %c0_70 = arith.constant 0 : index
    %c0_71 = arith.constant 0 : index
    %175 = vector.load %arg13[%c2_69, %c0_70, %c0_71] : memref<4x128x8xbf16, #tpu.memory_space<vmem>>, vector<1x128x8xbf16>
    %176 = vector.shape_cast %175 : vector<1x128x8xbf16> to vector<128x8xbf16>
    %cst_72 = arith.constant dense<0.000000e+00> : vector<8x8xf32>
    %177 = tpu.matmul %172, %176, %cst_72 {dimension_numbers = #tpu.dot_dimension_numbers<[1], [0], [0], [1], [0, 0, 1, 1], [], []>} : vector<8x128xbf16>, vector<128x8xbf16>, vector<8x8xf32> -> vector<8x8xf32>
    %178 = arith.addf %174, %177 : vector<8x8xf32>
    %179 = arith.truncf %178 : vector<8x8xf32> to vector<8x8xbf16>
    %c2_73 = arith.constant 2 : index
    %c0_74 = arith.constant 0 : index
    %c0_75 = arith.constant 0 : index
    %180 = vector.load %arg10[%c2_73, %c0_74, %c0_75] : memref<4x8x128xbf16, #tpu.memory_space<vmem>>, vector<1x8x128xbf16>
    %181 = vector.shape_cast %180 : vector<1x8x128xbf16> to vector<8x128xbf16>
    %cst_76 = arith.constant dense<0.000000e+00> : vector<8x128xf32>
    %182 = tpu.matmul %179, %181, %cst_76 {dimension_numbers = #tpu.dot_dimension_numbers<[1], [0], [0], [1], [0, 0, 1, 1], [], []>} : vector<8x8xbf16>, vector<8x128xbf16>, vector<8x128xf32> -> vector<8x128xf32>
    %183 = arith.addf %131, %182 : vector<8x128xf32>
    %184 = vector.extract_strided_slice %22 {offsets = [0, 24], sizes = [8, 8], strides = [1, 1]} : vector<8x32xf32> to vector<8x8xf32>
    %185 = arith.truncf %184 : vector<8x8xf32> to vector<8x8xbf16>
    %186 = vector.shape_cast %184 : vector<8x8xf32> to vector<1x8x8xf32>
    %187 = arith.truncf %186 : vector<1x8x8xf32> to vector<1x8x8xbf16>
    %188 = vector.extract_strided_slice %15 {offsets = [0, 24], sizes = [8, 8], strides = [1, 1]} : vector<8x32xf32> to vector<8x8xf32>
    %189 = vector.shape_cast %188 : vector<8x8xf32> to vector<1x8x8xf32>
    %190 = arith.truncf %189 : vector<1x8x8xf32> to vector<1x8x8xbf16>
    %191 = vector.extract_strided_slice %20 {offsets = [0, 24], sizes = [8, 8], strides = [1, 1]} : vector<8x32xf32> to vector<8x8xf32>
    %192 = vector.shape_cast %191 : vector<8x8xf32> to vector<1x8x8xf32>
    %193 = arith.truncf %192 : vector<1x8x8xf32> to vector<1x8x8xbf16>
    "tpu.trace_start"() <{level = 10 : i32, message = "bqd,bkd->bqk"}> : () -> ()
    %cst_77 = arith.constant dense<0.000000e+00> : vector<1x8x8xf32>
    %194 = tpu.matmul %187, %190, %cst_77 {dimension_numbers = #tpu.dot_dimension_numbers<[2], [2], [1], [1], [0, 0, 0, 1, 1, 1], [0], [0]>} : vector<1x8x8xbf16>, vector<1x8x8xbf16>, vector<1x8x8xf32> -> vector<1x8x8xf32>
    "tpu.trace_stop"() : () -> ()
    %195 = vector.shape_cast %194 : vector<1x8x8xf32> to vector<8x8xf32>
    %c3 = arith.constant 3 : index
    %c0_78 = arith.constant 0 : index
    %c0_79 = arith.constant 0 : index
    %196 = vector.load %arg12[%c3, %c0_78, %c0_79] : memref<4x128x8xbf16, #tpu.memory_space<vmem>>, vector<1x128x8xbf16>
    %197 = vector.shape_cast %196 : vector<1x128x8xbf16> to vector<128x8xbf16>
    "tpu.trace_start"() <{level = 10 : i32, message = "md,kd->mk"}> : () -> ()
    %cst_80 = arith.constant dense<0.000000e+00> : vector<8x128xf32>
    %198 = tpu.matmul %185, %197, %cst_80 {dimension_numbers = #tpu.dot_dimension_numbers<[1], [1], [0], [0], [0, 0, 1, 0], [], []>} : vector<8x8xbf16>, vector<128x8xbf16>, vector<8x128xf32> -> vector<8x128xf32>
    "tpu.trace_stop"() : () -> ()
    %199 = vector.broadcast %28 : vector<1x128xf32> to vector<8x128xf32>
    %200 = arith.addf %198, %199 : vector<8x128xf32>
    %cst_81 = arith.constant dense<0xFF800000> : vector<8xf32>
    %201 = vector.multi_reduction <maximumf>, %195, %cst_81 [1] : vector<8x8xf32> to vector<8xf32>
    %202 = vector.shape_cast %201 : vector<8xf32> to vector<8x1xf32>
    %cst_82 = arith.constant dense<0xFF800000> : vector<8xf32>
    %203 = vector.multi_reduction <maximumf>, %200, %cst_82 [1] : vector<8x128xf32> to vector<8xf32>
    %204 = vector.shape_cast %203 : vector<8xf32> to vector<8x1xf32>
    %205 = arith.maximumf %202, %204 : vector<8x1xf32>
    %206 = vector.broadcast %205 : vector<8x1xf32> to vector<8x8xf32>
    %207 = arith.subf %195, %206 : vector<8x8xf32>
    %208 = math.exp %207 : vector<8x8xf32>
    %209 = vector.broadcast %205 : vector<8x1xf32> to vector<8x128xf32>
    %210 = arith.subf %200, %209 : vector<8x128xf32>
    %211 = math.exp %210 : vector<8x128xf32>
    %cst_83 = arith.constant dense<0.000000e+00> : vector<8xf32>
    %212 = vector.multi_reduction <add>, %208, %cst_83 [1] : vector<8x8xf32> to vector<8xf32>
    %213 = vector.shape_cast %212 : vector<8xf32> to vector<8x1xf32>
    %cst_84 = arith.constant dense<0.000000e+00> : vector<8xf32>
    %214 = vector.multi_reduction <add>, %211, %cst_84 [1] : vector<8x128xf32> to vector<8xf32>
    %215 = vector.shape_cast %214 : vector<8xf32> to vector<8x1xf32>
    %216 = arith.addf %213, %215 : vector<8x1xf32>
    %217 = tpu.reciprocal %216 {approx = true} : vector<8x1xf32> -> vector<8x1xf32>
    %218 = vector.broadcast %217 : vector<8x1xf32> to vector<8x8xf32>
    %219 = arith.mulf %208, %218 : vector<8x8xf32>
    %220 = vector.shape_cast %219 : vector<8x8xf32> to vector<1x8x8xf32>
    %221 = arith.truncf %220 : vector<1x8x8xf32> to vector<1x8x8xbf16>
    %222 = vector.broadcast %217 : vector<8x1xf32> to vector<8x128xf32>
    %223 = arith.mulf %211, %222 : vector<8x128xf32>
    %224 = arith.truncf %223 : vector<8x128xf32> to vector<8x128xbf16>
    "tpu.trace_start"() <{level = 10 : i32, message = "bqk,bkd->bqd"}> : () -> ()
    %cst_85 = arith.constant dense<0.000000e+00> : vector<1x8x8xf32>
    %225 = tpu.matmul %221, %193, %cst_85 {dimension_numbers = #tpu.dot_dimension_numbers<[2], [1], [1], [2], [0, 0, 0, 1, 1, 2], [0], [0]>} : vector<1x8x8xbf16>, vector<1x8x8xbf16>, vector<1x8x8xf32> -> vector<1x8x8xf32>
    "tpu.trace_stop"() : () -> ()
    %226 = vector.shape_cast %225 : vector<1x8x8xf32> to vector<8x8xf32>
    %c3_86 = arith.constant 3 : index
    %c0_87 = arith.constant 0 : index
    %c0_88 = arith.constant 0 : index
    %227 = vector.load %arg13[%c3_86, %c0_87, %c0_88] : memref<4x128x8xbf16, #tpu.memory_space<vmem>>, vector<1x128x8xbf16>
    %228 = vector.shape_cast %227 : vector<1x128x8xbf16> to vector<128x8xbf16>
    %cst_89 = arith.constant dense<0.000000e+00> : vector<8x8xf32>
    %229 = tpu.matmul %224, %228, %cst_89 {dimension_numbers = #tpu.dot_dimension_numbers<[1], [0], [0], [1], [0, 0, 1, 1], [], []>} : vector<8x128xbf16>, vector<128x8xbf16>, vector<8x8xf32> -> vector<8x8xf32>
    %230 = arith.addf %226, %229 : vector<8x8xf32>
    %231 = arith.truncf %230 : vector<8x8xf32> to vector<8x8xbf16>
    %c3_90 = arith.constant 3 : index
    %c0_91 = arith.constant 0 : index
    %c0_92 = arith.constant 0 : index
    %232 = vector.load %arg10[%c3_90, %c0_91, %c0_92] : memref<4x8x128xbf16, #tpu.memory_space<vmem>>, vector<1x8x128xbf16>
    %233 = vector.shape_cast %232 : vector<1x8x128xbf16> to vector<8x128xbf16>
    %cst_93 = arith.constant dense<0.000000e+00> : vector<8x128xf32>
    %234 = tpu.matmul %231, %233, %cst_93 {dimension_numbers = #tpu.dot_dimension_numbers<[1], [0], [0], [1], [0, 0, 1, 1], [], []>} : vector<8x8xbf16>, vector<8x128xbf16>, vector<8x128xf32> -> vector<8x128xf32>
    %235 = arith.addf %183, %234 : vector<8x128xf32>
    %c0_94 = arith.constant 0 : index
    %c0_95 = arith.constant 0 : index
    %236 = vector.load %arg11[%c0_94, %c0_95] : memref<1x128xf32, #tpu.memory_space<vmem>>, vector<1x128xf32>
    %237 = vector.broadcast %236 : vector<1x128xf32> to vector<8x128xf32>
    %238 = arith.addf %235, %237 : vector<8x128xf32>
    %239 = vector.shape_cast %238 : vector<8x128xf32> to vector<1x8x128xf32>
    %c0_96 = arith.constant 0 : index
    %c0_97 = arith.constant 0 : index
    %c0_98 = arith.constant 0 : index
    %240 = vector.load %arg14[%c0_96, %c0_97, %c0_98] : memref<1x8x128xf32, #tpu.memory_space<vmem>>, vector<1x8x128xf32>
    tpu.vector_store %arg14[%c0_96, %c0_97, %c0_98], %239 {strides = array<i32>} : memref<1x8x128xf32, #tpu.memory_space<vmem>>, vector<1x8x128xf32>,
    return
  }
  func.func @transform_0(%arg0: i32) -> (i32, i32, i32) {
    %c0_i32 = arith.constant 0 : i32
    %c0_i32_0 = arith.constant 0 : i32
    %c0_i32_1 = arith.constant 0 : i32
    return %arg0, %c0_i32, %c0_i32_0 : i32, i32, i32
  }
  func.func @transform_1(%arg0: i32) -> (i32, i32, i32) {
    %c0_i32 = arith.constant 0 : i32
    %c0_i32_0 = arith.constant 0 : i32
    %c0_i32_1 = arith.constant 0 : i32
    return %arg0, %c0_i32, %c0_i32_0 : i32, i32, i32
  }
  func.func @transform_2(%arg0: i32) -> (i32, i32, i32) {
    %c0_i32 = arith.constant 0 : i32
    %c0_i32_0 = arith.constant 0 : i32
    %c0_i32_1 = arith.constant 0 : i32
    return %arg0, %c0_i32, %c0_i32_0 : i32, i32, i32
  }
  func.func @transform_3(%arg0: i32) -> (i32, i32) {
    %c0_i32 = arith.constant 0 : i32
    %c0_i32_0 = arith.constant 0 : i32
    %c0_i32_1 = arith.constant 0 : i32
    return %c0_i32, %c0_i32_0 : i32, i32
  }
  func.func @transform_4(%arg0: i32) -> (i32, i32) {
    %c0_i32 = arith.constant 0 : i32
    %c0_i32_0 = arith.constant 0 : i32
    %c0_i32_1 = arith.constant 0 : i32
    return %c0_i32, %c0_i32_0 : i32, i32
  }
  func.func @transform_5(%arg0: i32) -> (i32, i32) {
    %c0_i32 = arith.constant 0 : i32
    %c0_i32_0 = arith.constant 0 : i32
    %c0_i32_1 = arith.constant 0 : i32
    return %c0_i32, %c0_i32_0 : i32, i32
  }
  func.func @transform_6(%arg0: i32) -> (i32, i32) {
    %c0_i32 = arith.constant 0 : i32
    %c0_i32_0 = arith.constant 0 : i32
    %c0_i32_1 = arith.constant 0 : i32
    return %c0_i32, %c0_i32_0 : i32, i32
  }
  func.func @transform_7(%arg0: i32) -> (i32, i32) {
    %c0_i32 = arith.constant 0 : i32
    %c0_i32_0 = arith.constant 0 : i32
    %c0_i32_1 = arith.constant 0 : i32
    return %c0_i32, %c0_i32_0 : i32, i32
  }
  func.func @transform_8(%arg0: i32) -> (i32, i32) {
    %c0_i32 = arith.constant 0 : i32
    %c0_i32_0 = arith.constant 0 : i32
    %c0_i32_1 = arith.constant 0 : i32
    return %c0_i32, %c0_i32_0 : i32, i32
  }
  func.func @transform_9(%arg0: i32) -> (i32, i32, i32) {
    %c0_i32 = arith.constant 0 : i32
    %c0_i32_0 = arith.constant 0 : i32
    %c0_i32_1 = arith.constant 0 : i32
    %c0_i32_2 = arith.constant 0 : i32
    return %c0_i32, %c0_i32_0, %c0_i32_1 : i32, i32, i32
  }
  func.func @transform_10(%arg0: i32) -> (i32, i32) {
    %c0_i32 = arith.constant 0 : i32
    %c0_i32_0 = arith.constant 0 : i32
    %c0_i32_1 = arith.constant 0 : i32
    return %c0_i32, %c0_i32_0 : i32, i32
  }
  func.func @transform_11(%arg0: i32) -> (i32, i32, i32) {
    %c0_i32 = arith.constant 0 : i32
    %c0_i32_0 = arith.constant 0 : i32
    %c0_i32_1 = arith.constant 0 : i32
    %c0_i32_2 = arith.constant 0 : i32
    return %c0_i32, %c0_i32_0, %c0_i32_1 : i32, i32, i32
  }
  func.func @transform_12(%arg0: i32) -> (i32, i32, i32) {
    %c0_i32 = arith.constant 0 : i32
    %c0_i32_0 = arith.constant 0 : i32
    %c0_i32_1 = arith.constant 0 : i32
    %c0_i32_2 = arith.constant 0 : i32
    return %c0_i32, %c0_i32_0, %c0_i32_1 : i32, i32, i32
  }
  func.func @transform_13(%arg0: i32) -> (i32, i32, i32) {
    %c0_i32 = arith.constant 0 : i32
    %c0_i32_0 = arith.constant 0 : i32
    %c0_i32_1 = arith.constant 0 : i32
    return %arg0, %c0_i32, %c0_i32_0 : i32, i32, i32
  }
}

</mosaic_0001>

<bundles_post_ra>
// kernel: tpu_custom_call.1
= control target key start
LH: loop header
LB: loop body
LE: loop exit
PB: predicated region body
PF: predicated region fallthrough
CT: control target
= control target key end

     0   :  { %s3824_s0 = inlined_call_operand.vmem [shape: bf16[2,8,32], index: 0, kind: input, shape index: {}]   ;;  %s3825_s1 = inlined_call_operand.vmem [shape: bf16[2,8,32], index: 1, kind: input, shape index: {}]   ;;  %s3826_s2 = inlined_call_operand.vmem [shape: bf16[2,8,32], index: 2, kind: input, shape index: {}]   ;;  %s3827_s3 = inlined_call_operand.vmem [shape: bf16[32,32], index: 3, kind: input, shape index: {}]   ;;  %s3828_s4 = inlined_call_operand.vmem [shape: f32[1,32], index: 4, kind: input, shape index: {}]   ;;  %s3829_s5 = inlined_call_operand.vmem [shape: bf16[32,32], index: 5, kind: input, shape index: {}]   ;;  %s3830_s6 = inlined_call_operand.vmem [shape: f32[1,32], index: 6, kind: input, shape index: {}]   ;;  %s3831_s7 = inlined_call_operand.vmem [shape: bf16[32,32], index: 7, kind: input, shape index: {}]   ;;  %s3832_s8 = inlined_call_operand.vmem [shape: f32[1,32], index: 8, kind: input, shape index: {}]   ;;  %s3833_s9 = inlined_call_operand.vmem [shape: bf16[4,8,128], index: 9, kind: input, shape index: {}]   ;;  %s3834_s10 = inlined_call_operand.vmem [shape: f32[1,128], index: 10, kind: input, shape index: {}]   ;;  %s3835_s11 = inlined_call_operand.vmem [shape: bf16[4,128,8], index: 11, kind: input, shape index: {}]   ;;  %s3836_s12 = inlined_call_operand.vmem [shape: bf16[4,128,8], index: 12, kind: input, shape index: {}]   ;;  %s3837_s13 = inlined_call_operand.hbm [shape: f32[2,8,128], index: 13, kind: output, shape index: {}]  }
   0x1   :  { %3838 = sst [smem:[#allocation6_spill]] %s3824_s0 }
   0x2   :  { %3839 = sst [smem:[#allocation7_spill]] %s3827_s3 }
   0x3   :  { %3840 = sst [smem:[#allocation8_spill]] %s3829_s5 }
   0x4   :  { %18 = vsyncpa [#allocation3], 0 }
   0x5   :  { %20 = vsyncpa [#allocation3 + $0x1], 0  ;;  %s3230_s25 = smov 0   ;;  %s3232_s26 = smov 0  }
   0x6   :  { %s3234_s27 = smov 0   ;;  %s3236_s28 = smov 0  }
   0x7 LB: > { %s3251_s29 = sadd.s32 4294967295, %s3151_s28   ;;  %s2369_s30 = sadd.s32 4294967294, %s3151_s28   ;;  %s3151_s28 = sphi %s3236_s28, %s3851_s28   ;;  %s3147_s27 = sphi %s3234_s27, %s3850_s27   ;;  %s3143_s26 = sphi %s3232_s26, %s3849_s26   ;;  %s3139_s25 = sphi %s3230_s25, %s3848_s25  }
   0x8   : > { %s3255_s14 = sadd.s32 1, %s3151_s28   ;;  %s321_s15 = sadd.s32 1, %s3147_s27 }
   0x9   : > { %s318_s16 = ssub.s32 %s3151_s28, %s3255_s14  ;;  %p331_p0 = scmp.ne.s32.totalorder %s3147_s27, %s3143_s26 }
   0xa   : > { %p319_p1 = scmp.eq.s32.totalorder %s318_s16, 0  ;;  %p332_p2 = scmp.eq.s32.totalorder %s3251_s29, 1 }
   0xb   : > { %p337_p3 = scmp.ne.s32.totalorder %s3143_s26, %s3139_s25  ;;  %p338_p4 = scmp.eq.s32.totalorder %s2369_s30, 1 }
   0xc   : > { %s3266_s17 = scalar_select %p319_p1, %s3147_s27, %s321_s15  }
   0xd   : > { %p3268_p5 = por %p332_p2, %p331_p0  ;;  %p3272_p6 = por %p338_p4, %p337_p3 }
   0xe   : > { %3841 = sst [smem:[#allocation5_spill]] %s3266_s17  ;;  %p2372_p7 = scmp.ge.s32.totalorder %s3151_s28, 1 }
   0xf   : > { %p407_p8 = scmp.lt.s32.totalorder %s3151_s28, 3 }
  0x11   : > { %p408_p9 = pnand %p2372_p7, %p407_p8 }
  0x12   : > { %s3844_s5 = sld [smem:[#allocation8_spill]] (!%p408_p9)  ;;  %v3153_v1 = vmov (!%p408_p9), 0.0   ;;  %s3845_s3 = sld [smem:[#allocation7_spill]] (!%p408_p9)  ;;  %vm3154_vm0 = vmmov (!%p408_p9), 0   ;;  %vm497_vm1 = vcmask (!%p408_p9), 261120   ;;  %v2999_v5 = vld [vmem:[%s3831_s7] sm:$0xff] (!%p408_p9)   ;;  %v674_v46 = vlaneseq (!%p408_p9) }
  0x13   : > { %411 = sbr.rel (%p408_p9) target bundleno = 3536 (0xdd0), region = 72  ;;  %2686 = vmatprep.subr.bf16.mxu1 (!%p408_p9), %v3153_v1  ;;  %2678 = vmatprep.subr.bf16.mxu0 (!%p408_p9), %v3153_v1  ;;  %p458_p10 = scmp.lt.s32.totalorder (!%p408_p9), %s3251_s29, 1  ;;  %v3001_v8 = vld [vmem:[%s3835_s11] sm:$0xff] (!%p408_p9)   ;;  %v3002_v9 = vld [vmem:[%s3835_s11 + $0x8] sm:$0xff] (!%p408_p9)   ;;  %v3003_v10 = vld [vmem:[%s3835_s11 + $0x10] sm:$0xff] (!%p408_p9)   ;;  %vm681_vm2 = vcmask (!%p408_p9), 64512  }
  0x14   : > { %2690 = vmatprep.mubr.msk.bf16.mxu1 (!%p408_p9), %vm3154_vm0, %v3153_v1  ;;  %2682 = vmatprep.mubr.msk.bf16.mxu0 (!%p408_p9), %vm3154_vm0, %v3153_v1  ;;  %s3846_s0 = sld [smem:[#allocation6_spill]] (!%p408_p9)  ;;  %v3004_v11 = vld [vmem:[%s3835_s11 + $0x18] sm:$0xff] (!%p408_p9)   ;;  %v3000_v12 = vld [vmem:[%s3831_s7 + $0x8] sm:$0xff] (!%p408_p9)   ;;  %v785_v14 = vsel (!%p408_p9), %vm681_vm2, %v3001_v8, 0  ;;  %v788_v15 = vsel (!%p408_p9), %vm681_vm2, %v3002_v9, 0  ;;  %v791_v16 = vsel (!%p408_p9), %vm681_vm2, %v3003_v10, 0 }
  0x15   : > { %v794_v17 = vsel (!%p408_p9), %vm681_vm2, %v3004_v11, 0  ;;  %v3005_v18 = vld [vmem:[%s3835_s11 + $0x20] sm:$0xff] (!%p408_p9)   ;;  %v3006_v20 = vld [vmem:[%s3835_s11 + $0x28] sm:$0xff] (!%p408_p9)   ;;  %v3007_v22 = vld [vmem:[%s3835_s11 + $0x30] sm:$0xff] (!%p408_p9)   ;;  %v675_v47 = vand.u32 (!%p408_p9), 127, %v674_v46  ;;  %vm978_vm4 = vcmask (!%p408_p9), 1043456  }
  0x16   : > { %v797_v19 = vsel (!%p408_p9), %vm681_vm2, %v3005_v18, 0  ;;  %v800_v21 = vsel (!%p408_p9), %vm681_vm2, %v3006_v20, 0  ;;  %v803_v23 = vsel (!%p408_p9), %vm681_vm2, %v3007_v22, 0  ;;  %v3008_v24 = vld [vmem:[%s3835_s11 + $0x38] sm:$0xff] (!%p408_p9)   ;;  %v2381_v26 = vld [vmem:[%s3830_s6] ss:$0 sm:$0xff] (!%p408_p9) }
  0x17   : > { %v806_v25 = vsel (!%p408_p9), %vm681_vm2, %v3008_v24, 0  ;;  %v2377_v27 = vld [vmem:[%s3828_s4] ss:$0 sm:$0xff] (!%p408_p9)  ;;  %vm676_vm3 = vcmp.lt.s32.totalorder (!%p408_p9), %v675_v47, 8  ;;  %v3155_v53 = vmov (!%p408_p9), -1e+30  }
  0x18   : > { %v2995_v0 = vld [vmem:[%s3844_s5] sm:$0xff] (!%p408_p9)   ;;  %v2997_v3 = vld [vmem:[%s3844_s5 + $0x8] sm:$0xff] (!%p408_p9)   ;;  %v3391_v54 = vsel (!%p408_p9), %vm676_vm3, 0.0, %v3155_v53  ;;  %v3011_v62 = vld [vmem:[%s3836_s12 + $0x10] sm:$0xff] (!%p408_p9)   ;;  %s455_s23 = sand.u32 (!%p408_p9), 1, %s3143_s26   ;;  %s3159_s22 = smov (!%p408_p9), [#allocation2]  }
  0x19   : > { %v2996_v2 = vld [vmem:[%s3845_s3] sm:$0xff] (!%p408_p9)   ;;  %2687 = vmatpush3.bf16.msra.mxu1 (!%p408_p9), %v2995_v0  ;;  %v2998_v4 = vld [vmem:[%s3845_s3 + $0x8] sm:$0xff] (!%p408_p9)   ;;  %v3012_v10 = vld [vmem:[%s3836_s12 + $0x18] sm:$0xff] (!%p408_p9)  }
  0x1a   : > { %2688 = vmatprep.subr.bf16.mxu1 %v3153_v1  ;;  %2679 = vmatpush3.bf16.msra.mxu0 %v2996_v2  ;;  %s459_s20 = scalar_select %p458_p10, %s3251_s29, 1  ;;  %v3009_v60 = vld [vmem:[%s3836_s12] sm:$0xff]   ;;  %v3010_v61 = vld [vmem:[%s3836_s12 + $0x8] sm:$0xff]   ;;  %v3024_v46 = vld [vmem:[%s3835_s11 + $0x78] sm:$0xff]  }
  0x1b   : > { %2680 = vmatprep.subr.bf16.mxu0 %v3153_v1  ;;  %v3013_v11 = vld [vmem:[%s3836_s12 + $0x20] sm:$0xff]   ;;  %v1155_v47 = vsel %vm681_vm2, %v3024_v46, 0 }
  0x1c   : > { %s2374_s21 = sshll.u32 %s459_s20, 2  ;;  %v2385_v18 = vld [vmem:[%s3832_s8] ss:$0 sm:$0xff]  ;;  %s3158_s20 = smov 104  }
  0x1d   : > { %2689 = vmatpush3.bf16.msra.mxu1 %v2997_v3  ;;  %s465_s24 = scalar_lea.vmem %s3825_s1, %s2374_s21  ;;  %s461_s17 = scalar_lea.vmem %s3846_s0, %s2374_s21 }
  0x1e   : > { %2681 = vmatpush3.bf16.msra.mxu0 %v2998_v4  ;;  %2702 = vmatprep.subr.bf16.mxu1 %v3153_v1  ;;  %v472_v6 = vld [vmem:[%s465_s24] sm:$0xf]  ;;  %s469_s15 = scalar_lea.vmem %s3826_s2, %s2374_s21  ;;  %s3156_s0 = smov 120  }
  0x1f   : > { %v471_v7 = vld [vmem:[%s461_s17] sm:$0xf]  ;;  %2694 = vmatprep.subr.bf16.mxu0 %v3153_v1  ;;  %s3157_s21 = smov 112   ;;  %s2570_s24 = sshll.u32 %s3251_s29, 7 }
  0x20   : > { %2691 = vmatmul.mubr.msk.bf16.vlgmr.msra.gmra.mrb[0].mxu1 %vm497_vm1, %v472_v6  ;;  %v473_v13 = vld [vmem:[%s469_s15] sm:$0xf]  ;;  %s3782_s3 = scalar_lea.hbm %s3837_s13, %s2570_s24  ;;  %s2273_s29 = scalar_lea.sflag [#allocation3], %s455_s23 }
  0x21   : > { %2683 = vmatmul.mubr.msk.bf16.vlgmr.msra.gmra.mrb[0].mxu0 %vm497_vm1, %v471_v7  ;;  %2704 = vmatprep.mubr.msk.bf16.mxu1 %vm3154_vm0, %v3153_v1 }
  0x22   : > { %2695 = vmatpush3.bf16.msra.mxu0 %v2999_v5  ;;  %2698 = vmatprep.mubr.msk.bf16.mxu0 %vm3154_vm0, %v3153_v1 }
  0x23   : > { %2696 = vmatprep.subr.bf16.mxu0 %v3153_v1 }
  0x26   : > { %2697 = vmatpush3.bf16.msra.mxu0 %v3000_v12  ;;  %v3014_v12 = vld [vmem:[%s3836_s12 + $0x28] sm:$0xff]  }
  0x27   : > { %2708 = vmatprep.subr.bf16.mxu0 %v3153_v1 }
  0x29   : > { %2699 = vmatmul.mubr.msk.bf16.vlgmr.msra.gmra.mrb[4].mxu0 %vm497_vm1, %v473_v13  ;;  %v3015_v13 = vld [vmem:[%s3836_s12 + $0x30] sm:$0xff]  }
  0x2a   : > { %2724 = vmatprep.mubr.msk.bf16.mxu0 %vm3154_vm0, %v3153_v1 }
  0x2f   : > { %2709 = vmatpush3.bf16.xpose.msra.mxu0 %v785_v14  ;;  %v3016_v14 = vld [vmem:[%s3836_s12 + $0x38] sm:$0xff]  }
  0x30   : > { %2710 = vmatprep.subr.bf16.mxu0 %v3153_v1 }
  0x37   : > { %2711 = vmatpush3.bf16.xpose.msra.mxu0 %v788_v15 }
  0x38   : > { %2712 = vmatprep.subr.bf16.mxu0 %v3153_v1 }
  0x3f   : > { %2713 = vmatpush3.bf16.xpose.msra.mxu0 %v791_v16 }
  0x40   : > { %2714 = vmatprep.subr.bf16.mxu0 %v3153_v1 }
  0x47   : > { %2715 = vmatpush3.bf16.xpose.msra.mxu0 %v794_v17 }
  0x48   : > { %2716 = vmatprep.subr.bf16.mxu0 %v3153_v1 }
  0x4f   : > { %2717 = vmatpush3.bf16.xpose.msra.mxu0 %v797_v19 }
  0x50   : > { %2718 = vmatprep.subr.bf16.mxu0 %v3153_v1 }
  0x57   : > { %2719 = vmatpush3.bf16.xpose.msra.mxu0 %v800_v21 }
  0x58   : > { %2720 = vmatprep.subr.bf16.mxu0 %v3153_v1 }
  0x5f   : > { %2721 = vmatpush3.bf16.xpose.msra.mxu0 %v803_v23 }
  0x60   : > { %2722 = vmatprep.subr.bf16.mxu0 %v3153_v1 }
  0x67   : > { %2723 = vmatpush3.bf16.xpose.msra.mxu0 %v806_v25 }
  0x68   : > { %2780 = vmatprep.subr.bf16.mxu0 %v3153_v1 }
  0xf3   : > { %v601_v28 = vpop.f32.mrb[0].mxu1 }
  0xf4   : > { %v602_v29 = vadd.f32 %v2381_v26, %v601_v28  ;;  %v2692_v30 = vpop.f32.mrb[1].mxu1  ;;  %v535_v31 = vpop.f32.mrb[0].mxu0 }
  0xf5   : > { %v604_v32 = vpop.f32.mrb[2].mxu1  ;;  %v536_v33 = vadd.f32 %v2377_v27, %v535_v31  ;;  %v2684_v34 = vpop.f32.mrb[1].mxu0 }
  0xf6   : > { %v3374_v35 = vpack.c.bf16 %v602_v29, %v602_v29  ;;  %v2693_v36 = vpop.f32.mrb[3].mxu1  ;;  %v538_v37 = vpop.f32.mrb[2].mxu0  ;;  %v3017_v29 = vld [vmem:[%s3835_s11 + $0x40] sm:$0xff]   ;;  %v3018_v32 = vld [vmem:[%s3835_s11 + $0x48] sm:$0xff]   ;;  %v3019_v34 = vld [vmem:[%s3835_s11 + $0x50] sm:$0xff]  }
  0xf7   : > { %v673_v38 = vmul.f32 0.35355338, %v536_v33  ;;  %v2685_v39 = vpop.f32.mrb[3].mxu0  ;;  %v1134_v30 = vsel %vm681_vm2, %v3017_v29, 0  ;;  %v1137_v33 = vsel %vm681_vm2, %v3018_v32, 0  ;;  %v1140_v36 = vsel %vm681_vm2, %v3019_v34, 0 }
  0xf8   : > { %v686_v40 = vsel %vm681_vm2, %v3374_v35, 0  ;;  %v3020_v37 = vld [vmem:[%s3835_s11 + $0x58] sm:$0xff]   ;;  %v3021_v39 = vld [vmem:[%s3835_s11 + $0x60] sm:$0xff]  }
  0xf9   : > { %v3378_v41 = vpack.c.bf16 %v673_v38, %v673_v38  ;;  %2703 = vmatpush3.bf16.xpose.msra.mxu1 %v686_v40  ;;  %v1143_v38 = vsel %vm681_vm2, %v3020_v37, 0  ;;  %v1146_v40 = vsel %vm681_vm2, %v3021_v39, 0  ;;  %v2459_v32 = vld [vmem:[%s3833_s9 + $0x4] sm:$0xf] }
  0xfa   : > { %2728 = vmatprep.subr.bf16.mxu1 %v3153_v1 }
  0xfb   : > { %2725 = vmatmul.mubr.msk.bf16.vlgmr.msra.gmra.mrb[8].mxu0 %vm681_vm2, %v3378_v41 }
  0xfc   : > { %v3383_v42 = vpop.f32.mrb[4].mxu0  ;;  %2796 = vmatprep.mubr.msk.bf16.mxu0 %vm3154_vm0, %v3153_v1 }
  0xfd   : > { %v2700_v43 = vpop.f32.mrb[5].mxu0  ;;  %v668_v19 = vadd.f32 %v2385_v18, %v3383_v42  ;;  %v3022_v42 = vld [vmem:[%s3835_s11 + $0x68] sm:$0xff]  }
  0xfe   : > { %v670_v44 = vpop.f32.mrb[6].mxu0  ;;  %v1149_v43 = vsel %vm681_vm2, %v3022_v42, 0 }
  0xff   : > { %v2701_v45 = vpop.f32.mrb[7].mxu0  ;;  %v3436_v21 = vpack.c.bf16 %v668_v19, %v668_v19  ;;  %v3023_v44 = vld [vmem:[%s3835_s11 + $0x70] sm:$0xff]  }
 0x100   : > { %2705 = vmatmul.mubr.msk.bf16.vlgmr.msra.gmra.mrb[4].mxu1 %vm681_vm2, %v3378_v41  ;;  %v1152_v45 = vsel %vm681_vm2, %v3023_v44, 0 }
 0x101   : > { %2744 = vmatprep.mubr.msk.bf16.mxu1 %vm3154_vm0, %v3153_v1  ;;  %2729 = vmatpush3.bf16.msra.mxu1 %v3009_v60  ;;  %v980_v24 = vsel %vm978_vm4, %v3436_v21, 0 }
 0x102   : > { %2730 = vmatprep.subr.bf16.mxu1 %v3153_v1 }
 0x105   : > { %2731 = vmatpush3.bf16.msra.mxu1 %v3010_v61 }
 0x106   : > { %2732 = vmatprep.subr.bf16.mxu1 %v3153_v1 }
 0x109   : > { %2733 = vmatpush3.bf16.msra.mxu1 %v3011_v62 }
 0x10a   : > { %2734 = vmatprep.subr.bf16.mxu1 %v3153_v1 }
 0x10d   : > { %2735 = vmatpush3.bf16.msra.mxu1 %v3012_v10 }
 0x10e   : > { %2736 = vmatprep.subr.bf16.mxu1 %v3153_v1 }
 0x111   : > { %2737 = vmatpush3.bf16.msra.mxu1 %v3013_v11 }
 0x112   : > { %2738 = vmatprep.subr.bf16.mxu1 %v3153_v1 }
 0x115   : > { %2739 = vmatpush3.bf16.msra.mxu1 %v3014_v12 }
 0x116   : > { %2740 = vmatprep.subr.bf16.mxu1 %v3153_v1 }
 0x119   : > { %2741 = vmatpush3.bf16.msra.mxu1 %v3015_v13 }
 0x11a   : > { %2742 = vmatprep.subr.bf16.mxu1 %v3153_v1 }
 0x11d   : > { %2743 = vmatpush3.bf16.msra.mxu1 %v3016_v14  ;;  %v3029_v14 = vld [vmem:[%s3836_s12 + $0x60] sm:$0xff]  }
 0x11e   : > { %2748 = vmatprep.subr.bf16.mxu1 %v3153_v1 }
 0x1ce   : > { %v842_v48 = vpop.f32.mrb[8].mxu0 }
 0x1cf   : > { %v2726_v49 = vpop.f32.mrb[9].mxu0  ;;  %v843_v59 = vadd.f32 %v842_v48, %v3391_v54 }
 0x1d0   : > { %v845_v50 = vpop.f32.mrb[10].mxu0 }
 0x1d1   : > { %v2727_v51 = vpop.f32.mrb[11].mxu0 }
 0x1d3   : > { %v722_v52 = vpop.f32.mrb[4].mxu1 }
 0x1d4   : > { %v2706_v55 = vpop.f32.mrb[5].mxu1  ;;  %v848_v56 = vsel %vm681_vm2, %v722_v52, -inf }
 0x1d5   : > { %849 = vmax.xlane.f32.xlu0 %v848_v56  ;;  %v725_v57 = vpop.f32.mrb[6].mxu1 }
 0x1d6   : > { %v2707_v58 = vpop.f32.mrb[7].mxu1 }
 0x1d9   : > { %851 = vmax.xlane.f32.xlu0 %v843_v59 }
 0x1ef   : > { %1028 = vrot.lane.b32.xlu0 %v3374_v35, %s3156_s0 }
 0x262   : > { %v850_v63 = vpop.xlane.xlu0 %849 }
 0x266   : > { %v852_v0 = vpop.xlane.xlu0 %851 }
 0x267   : > { %v853_v2 = vmax.f32 %v850_v63, %v852_v0  ;;  %v3025_v63 = vld [vmem:[%s3836_s12 + $0x40] sm:$0xff]   ;;  %v3026_v0 = vld [vmem:[%s3836_s12 + $0x48] sm:$0xff]  }
 0x268   : > { %2781 = vmatpush3.bf16.msra.mxu0 %v3025_v63  ;;  %v3040_v63 = vld [vmem:[%s3835_s11 + $0xb8] sm:$0xff]  }
 0x269   : > { %v854_v3 = vsub.f32 %v722_v52, %v853_v2  ;;  %v857_v4 = vsub.f32 %v843_v59, %v853_v2  ;;  %2782 = vmatprep.subr.bf16.mxu0 %v3153_v1  ;;  %v3027_v2 = vld [vmem:[%s3836_s12 + $0x50] sm:$0xff]  }
 0x26a   : > { %v1029_v26 = vpop.permute.xlu0 %1028 }
 0x26b   : > { %v855_v5 = vmul.f32 1.442695, %v854_v3  ;;  %v858_v6 = vmul.f32 1.442695, %v857_v4  ;;  %v1034_v28 = vsel %vm681_vm2, %v1029_v26, 0  ;;  %v3028_v3 = vld [vmem:[%s3836_s12 + $0x58] sm:$0xff]  }
 0x26c   : > { %2783 = vmatpush3.bf16.msra.mxu0 %v3026_v0  ;;  %v1598_v0 = vsel %vm681_vm2, %v3040_v63, 0 }
 0x26d   : > { %3065 = vpow2.f32 %v855_v5  ;;  %2784 = vmatprep.subr.bf16.mxu0 %v3153_v1 }
 0x26e   : > { %3067 = vpow2.f32 %v858_v6 }
 0x270   : > { %2785 = vmatpush3.bf16.msra.mxu0 %v3027_v2 }
 0x271   : > { %2786 = vmatprep.subr.bf16.mxu0 %v3153_v1 }
 0x274   : > { %2787 = vmatpush3.bf16.msra.mxu0 %v3028_v3 }
 0x275   : > { %2788 = vmatprep.subr.bf16.mxu0 %v3153_v1 }
 0x277   : > { %v3066_v7 = vpop.eup %3065 }
 0x278   : > { %v860_v8 = vsel %vm681_vm2, %v3066_v7, 0.0  ;;  %v3068_v9 = vpop.eup %3067  ;;  %2789 = vmatpush3.bf16.msra.mxu0 %v3029_v14 }
 0x279   : > { %861 = vadd.xlane.f32.xlu1 %v860_v8  ;;  %2790 = vmatprep.subr.bf16.mxu0 %v3153_v1 }
 0x27d   : > { %863 = vadd.xlane.f32.xlu1 %v3068_v9 }
 0x28e   : > { %1025 = vrot.lane.b32.xlu1 %v3378_v41, %s3156_s0 }
 0x306   : > { %v862_v15 = vpop.xlane.xlu1 %861 }
 0x30a   : > { %v864_v16 = vpop.xlane.xlu1 %863 }
 0x30b   : > { %v865_v17 = vadd.f32 %v864_v16, %v862_v15  ;;  %v3030_v15 = vld [vmem:[%s3836_s12 + $0x68] sm:$0xff]   ;;  %v3031_v16 = vld [vmem:[%s3836_s12 + $0x70] sm:$0xff]  }
 0x30c   : > { %2791 = vmatpush3.bf16.msra.mxu0 %v3030_v15 }
 0x30d   : > { %3069 = vrcp.f32 %v865_v17  ;;  %2792 = vmatprep.subr.bf16.mxu0 %v3153_v1  ;;  %v3032_v17 = vld [vmem:[%s3836_s12 + $0x78] sm:$0xff]  }
 0x30e   : > { %v1026_v31 = vpop.permute.xlu1 %1025 }
 0x310   : > { %2793 = vmatpush3.bf16.msra.mxu0 %v3031_v16  ;;  %v3041_v16 = vld [vmem:[%s3836_s12 + $0x80] sm:$0xff]  }
 0x311   : > { %2794 = vmatprep.subr.bf16.mxu0 %v3153_v1 }
 0x314   : > { %2795 = vmatpush3.bf16.msra.mxu0 %v3032_v17  ;;  %v3042_v17 = vld [vmem:[%s3836_s12 + $0x88] sm:$0xff]  }
 0x315   : > { %2800 = vmatprep.subr.bf16.mxu0 %v3153_v1 }
 0x317   : > { %v3070_v20 = vpop.eup %3069 }
 0x318   : > { %v869_v22 = vmul.f32 %v3070_v20, %v3068_v9  ;;  %v867_v25 = vmul.f32 %v3070_v20, %v3066_v7 }
 0x31a   : > { %v870_v23 = vpack.c.bf16 %v869_v22, %v869_v22  ;;  %v868_v27 = vpack.c.bf16 %v867_v25, %v867_v25 }
 0x31c   : > { %2745 = vmatmul.mubr.bf16.vlgmr.msra.gmra.mrb[8].mxu1 %v870_v23 }
 0x31d   : > { %2749 = vmatpush3.bf16.msra.mxu1 %v980_v24  ;;  %2750 = vmatprep.mubr.msk.bf16.mxu1 %vm3154_vm0, %v3153_v1 }
 0x31e   : > { %2754 = vmatprep.subr.bf16.mxu1 %v3153_v1 }
 0x328   : > { %2751 = vmatmul.mubr.msk.bf16.vlgmr.msra.gmra.mrb[8].mxu1 %vm681_vm2, %v868_v27 }
 0x329   : > { %2755 = vmatpush3.bf16.xpose.msra.mxu1 %v1034_v28  ;;  %2756 = vmatprep.mubr.msk.bf16.mxu1 %vm3154_vm0, %v3153_v1 }
 0x32a   : > { %2760 = vmatprep.subr.bf16.mxu1 %v3153_v1 }
 0x330   : > { %2757 = vmatmul.mubr.msk.bf16.vlgmr.msra.gmra.mrb[12].mxu1 %vm681_vm2, %v1026_v31 }
 0x331   : > { %2761 = vmatpush3.bf16.xpose.msra.mxu1 %v1134_v30  ;;  %2776 = vmatprep.mubr.msk.bf16.mxu1 %vm3154_vm0, %v3153_v1 }
 0x332   : > { %2762 = vmatprep.subr.bf16.mxu1 %v3153_v1 }
 0x339   : > { %2763 = vmatpush3.bf16.xpose.msra.mxu1 %v1137_v33  ;;  %v1381_v33 = vsel %vm978_vm4, %v2459_v32, 0  ;;  %v3046_v32 = vld [vmem:[%s3836_s12 + $0xa8] sm:$0xff]  }
 0x33a   : > { %2764 = vmatprep.subr.bf16.mxu1 %v3153_v1 }
 0x341   : > { %2765 = vmatpush3.bf16.xpose.msra.mxu1 %v1140_v36 }
 0x342   : > { %2766 = vmatprep.subr.bf16.mxu1 %v3153_v1 }
 0x349   : > { %2767 = vmatpush3.bf16.xpose.msra.mxu1 %v1143_v38 }
 0x34a   : > { %2768 = vmatprep.subr.bf16.mxu1 %v3153_v1 }
 0x351   : > { %2769 = vmatpush3.bf16.xpose.msra.mxu1 %v1146_v40  ;;  %v1023_v40 = vld [vmem:[%s3833_s9] sm:$0xf] }
 0x352   : > { %2770 = vmatprep.subr.bf16.mxu1 %v3153_v1 }
 0x359   : > { %2771 = vmatpush3.bf16.xpose.msra.mxu1 %v1149_v43 }
 0x35a   : > { %2772 = vmatprep.subr.bf16.mxu1 %v3153_v1 }
 0x361   : > { %2773 = vmatpush3.bf16.xpose.msra.mxu1 %v1152_v45  ;;  %v1427_v45 = vsel %vm978_vm4, %v1023_v40, 0 }
 0x362   : > { %2774 = vmatprep.subr.bf16.mxu1 %v3153_v1 }
 0x369   : > { %2775 = vmatpush3.bf16.xpose.msra.mxu1 %v1155_v47 }
 0x36a   : > { %2818 = vmatprep.subr.bf16.mxu1 %v3153_v1 }
 0x370   : > { %2777 = vmatmul.mubr.msk.bf16.vlgmr.msra.gmra.mrb[16].mxu1 %vm681_vm2, %v1026_v31 }
 0x371   : > { %2820 = vmatprep.mubr.msk.bf16.mxu1 %vm3154_vm0, %v3153_v1 }
 0x3fb   : > { %v3494_v48 = vpop.f32.mrb[8].mxu1 }
 0x3fc   : > { %v2752_v49 = vpop.f32.mrb[9].mxu1 }
 0x3fd   : > { %v1019_v50 = vpop.f32.mrb[10].mxu1  ;;  %v3033_v49 = vld [vmem:[%s3835_s11 + $0x80] sm:$0xff]  }
 0x3fe   : > { %v2753_v51 = vpop.f32.mrb[11].mxu1  ;;  %v1022_v50 = vpack.c.bf16 %v3494_v48, %v3494_v48  ;;  %v3035_v48 = vld [vmem:[%s3835_s11 + $0x90] sm:$0xff]  }
 0x3ff   : > { %v1577_v51 = vsel %vm681_vm2, %v3033_v49, 0 }
 0x403   : > { %v1070_v52 = vpop.f32.mrb[12].mxu1 }
 0x404   : > { %v2758_v53 = vpop.f32.mrb[13].mxu1  ;;  %v1197_v55 = vsel %vm681_vm2, %v1070_v52, -inf }
 0x405   : > { %1198 = vmax.xlane.f32.xlu1 %v1197_v55  ;;  %v1073_v56 = vpop.f32.mrb[14].mxu1  ;;  %v1583_v53 = vsel %vm681_vm2, %v3035_v48, 0  ;;  %v3036_v55 = vld [vmem:[%s3835_s11 + $0x98] sm:$0xff]  }
 0x406   : > { %v2759_v57 = vpop.f32.mrb[15].mxu1  ;;  %v1586_v56 = vsel %vm681_vm2, %v3036_v55, 0  ;;  %v3049_v55 = vld [vmem:[%s3835_s11 + $0xc0] sm:$0xff]  }
 0x407   : > { %v3037_v57 = vld [vmem:[%s3835_s11 + $0xa0] sm:$0xff]  }
 0x443   : > { %v1191_v58 = vpop.f32.mrb[16].mxu1 }
 0x444   : > { %v1192_v59 = vadd.f32 %v1191_v58, %v3391_v54  ;;  %v2778_v60 = vpop.f32.mrb[17].mxu1  ;;  %v1589_v58 = vsel %vm681_vm2, %v3037_v57, 0 }
 0x445   : > { %v1194_v61 = vpop.f32.mrb[18].mxu1 }
 0x446   : > { %1200 = vmax.xlane.f32.xlu0 %v1192_v59  ;;  %v2779_v62 = vpop.f32.mrb[19].mxu1  ;;  %v3039_v61 = vld [vmem:[%s3835_s11 + $0xb0] sm:$0xff]  }
 0x447   : > { %v1595_v62 = vsel %vm681_vm2, %v3039_v61, 0 }
 0x492   : > { %v1199_v4 = vpop.xlane.xlu1 %1198 }
 0x4d3   : > { %v1201_v5 = vpop.xlane.xlu0 %1200 }
 0x4d4   : > { %v1202_v6 = vmax.f32 %v1199_v4, %v1201_v5 }
 0x4d6   : > { %v1203_v7 = vsub.f32 %v1070_v52, %v1202_v6  ;;  %v1206_v8 = vsub.f32 %v1192_v59, %v1202_v6  ;;  %v3038_v59 = vld [vmem:[%s3835_s11 + $0xa8] sm:$0xff]  }
 0x4d7   : > { %v1592_v60 = vsel %vm681_vm2, %v3038_v59, 0 }
 0x4d8   : > { %v1204_v9 = vmul.f32 1.442695, %v1203_v7  ;;  %v1207_v10 = vmul.f32 1.442695, %v1206_v8 }
 0x4da   : > { %3071 = vpow2.f32 %v1204_v9 }
 0x4db   : > { %3073 = vpow2.f32 %v1207_v10 }
 0x4e4   : > { %v3072_v11 = vpop.eup %3071 }
 0x4e5   : > { %v3074_v12 = vpop.eup %3073  ;;  %v1209_v13 = vsel %vm681_vm2, %v3072_v11, 0.0 }
 0x4e6   : > { %1212 = vadd.xlane.f32.xlu1 %v3074_v12  ;;  %1210 = vadd.xlane.f32.xlu0 %v1209_v13 }
 0x4f7   : > { %1471 = vrot.lane.b32.xlu1 %v3374_v35, %s3157_s21 }
 0x4fb   : > { %1469 = vrot.lane.b32.xlu1 %v3378_v41, %s3157_s21 }
 0x4fc   : > { %1326 = vrot.lane.b32.xlu0 %v3436_v21, %s3156_s0 }
 0x573   : > { %v1213_v18 = vpop.xlane.xlu1 %1212  ;;  %v1211_v19 = vpop.xlane.xlu0 %1210 }
 0x574   : > { %v1214_v20 = vadd.f32 %v1213_v18, %v1211_v19  ;;  %v3043_v18 = vld [vmem:[%s3836_s12 + $0x90] sm:$0xff]  }
 0x576   : > { %3075 = vrcp.f32 %v1214_v20 }
 0x577   : > { %v1472_v22 = vpop.permute.xlu1 %1471  ;;  %v1327_v27 = vpop.permute.xlu0 %1326 }
 0x578   : > { %v1477_v23 = vsel %vm681_vm2, %v1472_v22, 0  ;;  %v1332_v29 = vsel %vm978_vm4, %v1327_v27, 0 }
 0x579   : > { %2819 = vmatpush3.bf16.xpose.msra.mxu1 %v1477_v23 }
 0x57a   : > { %2844 = vmatprep.subr.bf16.mxu1 %v3153_v1 }
 0x57b   : > { %v3539_v24 = vpop.permute.xlu1 %1469 }
 0x580   : > { %v3076_v25 = vpop.eup %3075  ;;  %2821 = vmatmul.mubr.msk.bf16.vlgmr.msra.gmra.mrb[20].mxu1 %vm681_vm2, %v3539_v24 }
 0x581   : > { %v1218_v26 = vmul.f32 %v3076_v25, %v3074_v12  ;;  %2860 = vmatprep.mubr.msk.bf16.mxu1 %vm3154_vm0, %v3153_v1  ;;  %v1216_v30 = vmul.f32 %v3076_v25, %v3072_v11  ;;  %2845 = vmatpush3.bf16.msra.mxu1 %v3041_v16 }
 0x582   : > { %2846 = vmatprep.subr.bf16.mxu1 %v3153_v1 }
 0x583   : > { %v1219_v28 = vpack.c.bf16 %v1218_v26, %v1218_v26  ;;  %v1217_v31 = vpack.c.bf16 %v1216_v30, %v1216_v30  ;;  %v3044_v30 = vld [vmem:[%s3836_s12 + $0x98] sm:$0xff]  }
 0x585   : > { %2797 = vmatmul.mubr.bf16.vlgmr.msra.gmra.mrb[12].mxu0 %v1219_v28  ;;  %2847 = vmatpush3.bf16.msra.mxu1 %v3042_v17 }
 0x586   : > { %2801 = vmatpush3.bf16.msra.mxu0 %v1332_v29  ;;  %2802 = vmatprep.mubr.msk.bf16.mxu0 %vm3154_vm0, %v3153_v1 }
 0x587   : > { %2806 = vmatprep.subr.bf16.mxu0 %v3153_v1  ;;  %2848 = vmatprep.subr.bf16.mxu1 %v3153_v1 }
 0x589   : > { %2849 = vmatpush3.bf16.msra.mxu1 %v3043_v18 }
 0x58a   : > { %2850 = vmatprep.subr.bf16.mxu1 %v3153_v1 }
 0x58d   : > { %2851 = vmatpush3.bf16.msra.mxu1 %v3044_v30 }
 0x58e   : > { %2852 = vmatprep.subr.bf16.mxu1 %v3153_v1 }
 0x591   : > { %2803 = vmatmul.mubr.msk.bf16.vlgmr.msra.gmra.mrb[12].mxu0 %vm681_vm2, %v1217_v31  ;;  %v3045_v31 = vld [vmem:[%s3836_s12 + $0xa0] sm:$0xff]  }
 0x592   : > { %2808 = vmatprep.mubr.msk.bf16.mxu0 %vm3154_vm0, %v3153_v1  ;;  %2807 = vmatpush3.bf16.msra.mxu0 %v1381_v33  ;;  %v3047_v33 = vld [vmem:[%s3836_s12 + $0xb0] sm:$0xff]  }
 0x593   : > { %2812 = vmatprep.subr.bf16.mxu0 %v3153_v1  ;;  %2853 = vmatpush3.bf16.msra.mxu1 %v3045_v31 }
 0x594   : > { %2854 = vmatprep.subr.bf16.mxu1 %v3153_v1 }
 0x597   : > { %2855 = vmatpush3.bf16.msra.mxu1 %v3046_v32 }
 0x598   : > { %2856 = vmatprep.subr.bf16.mxu1 %v3153_v1 }
 0x59b   : > { %2857 = vmatpush3.bf16.msra.mxu1 %v3047_v33 }
 0x59c   : > { %2858 = vmatprep.subr.bf16.mxu1 %v3153_v1 }
 0x653   : > { %v3557_v34 = vpop.f32.mrb[20].mxu1 }
 0x654   : > { %v2822_v36 = vpop.f32.mrb[21].mxu1  ;;  %v1640_v37 = vsel %vm681_vm2, %v3557_v34, -inf }
 0x655   : > { %1641 = vmax.xlane.f32.xlu1 %v1640_v37  ;;  %v1516_v38 = vpop.f32.mrb[22].mxu1 }
 0x656   : > { %v2823_v39 = vpop.f32.mrb[23].mxu1 }
 0x664   : > { %v1368_v42 = vpop.f32.mrb[12].mxu0 }
 0x665   : > { %v1374_v43 = vpack.c.bf16 %v1368_v42, %v1368_v42  ;;  %v2804_v44 = vpop.f32.mrb[13].mxu0 }
 0x666   : > { %1768 = vrot.lane.b32.xlu1 %v3436_v21, %s3157_s21  ;;  %v1371_v46 = vpop.f32.mrb[14].mxu0  ;;  %s2373_s21 = sshll.u32 %s455_s23, 3 }
 0x667   : > { %v2805_v47 = vpop.f32.mrb[15].mxu0  ;;  %2809 = vmatmul.mubr.msk.bf16.vlgmr.msra.gmra.mrb[16].mxu0 %vm681_vm2, %v1374_v43  ;;  %s457_s17 = scalar_lea.vmem [#allocation2], %s2373_s21  ;;  %s3093_s21 = sshll.u32 %s3159_s22, 4  ;;  %s3094_s21 = int_to_ptr.vmem [resolvable:$false] %s3093_s21 }
 0x668   : > { %2813 = vmatpush3.bf16.msra.mxu0 %v1427_v45  ;;  %2814 = vmatprep.mubr.msk.bf16.mxu0 %vm3154_vm0, %v3153_v1  ;;  %v2513_v45 = vld [vmem:[%s3833_s9 + $0x8] sm:$0xf]  ;;  %s2286_s0 = sshll.u32 %s457_s17, 4  ;;  %s3095_s5 = scalar_lea.vmem %s3094_s21, 256  ;;  %s3784_s0 = int_to_ptr.vmem [resolvable:$true] %s2286_s0 }
 0x669   : > { %2824 = vmatprep.subr.bf16.mxu0 %v3153_v1  ;;  %v1823_v47 = vsel %vm978_vm4, %v2513_v45, 0  ;;  %p3096_p0 = scmp.lt.s32.totalorder %s3784_s0, %s3094_s21 }
 0x66a   : > { %1866 = vrot.lane.b32.xlu1 %v3378_v41, %s3158_s20  ;;  %v3034_v41 = vld [vmem:[%s3835_s11 + $0x88] sm:$0xff]  }
 0x66b   : > { %v1580_v52 = vsel %vm681_vm2, %v3034_v41, 0 }
 0x66f   : > { %2815 = vmatmul.mubr.msk.bf16.vlgmr.msra.gmra.mrb[20].mxu0 %vm681_vm2, %v1022_v50 }
 0x670   : > { %2840 = vmatprep.mubr.msk.bf16.mxu0 %vm3154_vm0, %v3153_v1 }
 0x671   : > { %2825 = vmatpush3.bf16.xpose.msra.mxu0 %v1577_v51 }
 0x672   : > { %2826 = vmatprep.subr.bf16.mxu0 %v3153_v1 }
 0x679   : > { %2827 = vmatpush3.bf16.xpose.msra.mxu0 %v1580_v52 }
 0x67a   : > { %2828 = vmatprep.subr.bf16.mxu0 %v3153_v1 }
 0x681   : > { %2829 = vmatpush3.bf16.xpose.msra.mxu0 %v1583_v53 }
 0x682   : > { %2830 = vmatprep.subr.bf16.mxu0 %v3153_v1 }
 0x689   : > { %2831 = vmatpush3.bf16.xpose.msra.mxu0 %v1586_v56  ;;  %v1974_v56 = vsel %vm681_vm2, %v3049_v55, 0 }
 0x68a   : > { %2832 = vmatprep.subr.bf16.mxu0 %v3153_v1 }
 0x691   : > { %2833 = vmatpush3.bf16.xpose.msra.mxu0 %v1589_v58  ;;  %v3050_v58 = vld [vmem:[%s3835_s11 + $0xc8] sm:$0xff]  }
 0x692   : > { %2834 = vmatprep.subr.bf16.mxu0 %v3153_v1  ;;  %v1977_v59 = vsel %vm681_vm2, %v3050_v58, 0 }
 0x699   : > { %2835 = vmatpush3.bf16.xpose.msra.mxu0 %v1592_v60  ;;  %v3051_v60 = vld [vmem:[%s3835_s11 + $0xd0] sm:$0xff]  }
 0x69a   : > { %2836 = vmatprep.subr.bf16.mxu0 %v3153_v1  ;;  %v1980_v61 = vsel %vm681_vm2, %v3051_v60, 0  ;;  %v2568_v60 = vld [vmem:[%s3834_s10] ss:$0 sm:$0xff] }
 0x6a1   : > { %2837 = vmatpush3.bf16.xpose.msra.mxu0 %v1595_v62  ;;  %v3052_v62 = vld [vmem:[%s3835_s11 + $0xd8] sm:$0xff]  }
 0x6a2   : > { %2838 = vmatprep.subr.bf16.mxu0 %v3153_v1  ;;  %v1983_v63 = vsel %vm681_vm2, %v3052_v62, 0 }
 0x6a9   : > { %2839 = vmatpush3.bf16.xpose.msra.mxu0 %v1598_v0  ;;  %v3053_v0 = vld [vmem:[%s3835_s11 + $0xe0] sm:$0xff]  }
 0x6aa   : > { %2902 = vmatprep.subr.bf16.mxu0 %v3153_v1 }
 0x6b0   : > { %2841 = vmatmul.mubr.msk.bf16.vlgmr.msra.gmra.mrb[24].mxu0 %vm681_vm2, %v3539_v24 }
 0x6b1   : > { %2918 = vmatprep.mubr.msk.bf16.mxu0 %vm3154_vm0, %v3153_v1 }
 0x6e2   : > { %v1642_v19 = vpop.xlane.xlu1 %1641 }
 0x6e6   : > { %v1769_v40 = vpop.permute.xlu1 %1768 }
 0x6e7   : > { %v1774_v43 = vsel %vm978_vm4, %v1769_v40, 0  ;;  %v3063_v40 = vld [vmem:[%s3836_s12 + $0xf0] sm:$0xff]  }
 0x6ea   : > { %v1867_v57 = vpop.permute.xlu1 %1866 }
 0x73a   : > { %v1417_v2 = vpop.f32.mrb[16].mxu0 }
 0x73b   : > { %v2810_v3 = vpop.f32.mrb[17].mxu0 }
 0x73c   : > { %v1420_v4 = vpop.f32.mrb[18].mxu0  ;;  %v3054_v3 = vld [vmem:[%s3835_s11 + $0xe8] sm:$0xff]  }
 0x73d   : > { %v2811_v5 = vpop.f32.mrb[19].mxu0  ;;  %v1989_v4 = vsel %vm681_vm2, %v3054_v3, 0 }
 0x73e   : > { %v3055_v5 = vld [vmem:[%s3835_s11 + $0xf0] sm:$0xff]  }
 0x742   : > { %v1463_v6 = vpop.f32.mrb[20].mxu0 }
 0x743   : > { %v3622_v7 = vadd.f32 %v1463_v6, %v1417_v2  ;;  %v2816_v8 = vpop.f32.mrb[21].mxu0  ;;  %v1986_v2 = vsel %vm681_vm2, %v3053_v0, 0  ;;  %v1992_v6 = vsel %vm681_vm2, %v3055_v5, 0 }
 0x744   : > { %v1466_v9 = vpop.f32.mrb[22].mxu0  ;;  %v3056_v8 = vld [vmem:[%s3835_s11 + $0xf8] sm:$0xff]  }
 0x745   : > { %v2817_v10 = vpop.f32.mrb[23].mxu0  ;;  %v1995_v9 = vsel %vm681_vm2, %v3056_v8, 0 }
 0x783   : > { %v1634_v11 = vpop.f32.mrb[24].mxu0 }
 0x784   : > { %v1635_v12 = vadd.f32 %v1634_v11, %v3391_v54  ;;  %v2842_v13 = vpop.f32.mrb[25].mxu0 }
 0x785   : > { %v1637_v14 = vpop.f32.mrb[26].mxu0 }
 0x786   : > { %1643 = vmax.xlane.f32.xlu0 %v1635_v12  ;;  %v2843_v15 = vpop.f32.mrb[27].mxu0 }
 0x813   : > { %v1644_v20 = vpop.xlane.xlu0 %1643 }
 0x814   : > { %v1645_v22 = vmax.f32 %v1642_v19, %v1644_v20 }
 0x816   : > { %v1646_v23 = vsub.f32 %v3557_v34, %v1645_v22  ;;  %v1649_v24 = vsub.f32 %v1635_v12, %v1645_v22  ;;  %v3048_v34 = vld [vmem:[%s3836_s12 + $0xb8] sm:$0xff]  }
 0x817   : > { %2859 = vmatpush3.bf16.msra.mxu1 %v3048_v34 }
 0x818   : > { %v1647_v25 = vmul.f32 1.442695, %v1646_v23  ;;  %v1650_v26 = vmul.f32 1.442695, %v1649_v24  ;;  %2864 = vmatprep.subr.bf16.mxu1 %v3153_v1 }
 0x81a   : > { %3077 = vpow2.f32 %v1647_v25 }
 0x81b   : > { %3079 = vpow2.f32 %v1650_v26  ;;  %v3058_v26 = vld [vmem:[%s3836_s12 + $0xc8] sm:$0xff]  }
 0x824   : > { %v3078_v27 = vpop.eup %3077 }
 0x825   : > { %v1652_v28 = vsel %vm681_vm2, %v3078_v27, 0.0  ;;  %v3080_v29 = vpop.eup %3079 }
 0x826   : > { %1653 = vadd.xlane.f32.xlu0 %v1652_v28 }
 0x82a   : > { %1655 = vadd.xlane.f32.xlu0 %v3080_v29 }
 0x840   : > { %1868 = vrot.lane.b32.xlu0 %v3374_v35, %s3158_s20 }
 0x8b3   : > { %v1654_v36 = vpop.xlane.xlu0 %1653 }
 0x8b7   : > { %v1656_v37 = vpop.xlane.xlu0 %1655 }
 0x8b8   : > { %v1657_v38 = vadd.f32 %v1656_v37, %v1654_v36 }
 0x8ba   : > { %3081 = vrcp.f32 %v1657_v38 }
 0x8bb   : > { %v1869_v49 = vpop.permute.xlu0 %1868 }
 0x8bc   : > { %v1874_v48 = vsel %vm681_vm2, %v1869_v49, 0 }
 0x8c4   : > { %v3082_v39 = vpop.eup %3081 }
 0x8c5   : > { %v1661_v35 = vmul.f32 %v3082_v39, %v3080_v29  ;;  %v1659_v44 = vmul.f32 %v3082_v39, %v3078_v27  ;;  %v3060_v27 = vld [vmem:[%s3836_s12 + $0xd8] sm:$0xff]   ;;  %v3061_v39 = vld [vmem:[%s3836_s12 + $0xe0] sm:$0xff]  }
 0x8c7   : > { %v1662_v42 = vpack.c.bf16 %v1661_v35, %v1661_v35  ;;  %v1660_v46 = vpack.c.bf16 %v1659_v44, %v1659_v44  ;;  %v3062_v35 = vld [vmem:[%s3836_s12 + $0xe8] sm:$0xff]  }
 0x8c9   : > { %2861 = vmatmul.mubr.bf16.vlgmr.msra.gmra.mrb[24].mxu1 %v1662_v42  ;;  %v3064_v42 = vld [vmem:[%s3836_s12 + $0xf8] sm:$0xff]  }
 0x8ca   : > { %2865 = vmatpush3.bf16.msra.mxu1 %v1774_v43  ;;  %2866 = vmatprep.mubr.msk.bf16.mxu1 %vm3154_vm0, %v3153_v1 }
 0x8cb   : > { %2870 = vmatprep.subr.bf16.mxu1 %v3153_v1 }
 0x8d5   : > { %2867 = vmatmul.mubr.msk.bf16.vlgmr.msra.gmra.mrb[24].mxu1 %vm681_vm2, %v1660_v46 }
 0x8d6   : > { %2871 = vmatpush3.bf16.msra.mxu1 %v1823_v47  ;;  %2872 = vmatprep.mubr.msk.bf16.mxu1 %vm3154_vm0, %v3153_v1 }
 0x8d7   : > { %2876 = vmatprep.subr.bf16.mxu1 %v3153_v1 }
 0x9a8   : > { %v1810_v50 = vpop.f32.mrb[24].mxu1 }
 0x9a9   : > { %v1816_v51 = vpack.c.bf16 %v1810_v50, %v1810_v50  ;;  %v2868_v41 = vpop.f32.mrb[25].mxu1 }
 0x9aa   : > { %v1813_v52 = vpop.f32.mrb[26].mxu1  ;;  %v2566_v41 = vld [vmem:[%s3833_s9 + $0xc] sm:$0xf] }
 0x9ab   : > { %v2869_v53 = vpop.f32.mrb[27].mxu1  ;;  %2873 = vmatmul.mubr.msk.bf16.vlgmr.msra.gmra.mrb[28].mxu1 %vm681_vm2, %v1816_v51 }
 0x9ac   : > { %2877 = vmatpush3.bf16.xpose.msra.mxu1 %v1874_v48  ;;  %2878 = vmatprep.mubr.msk.bf16.mxu1 %vm3154_vm0, %v3153_v1  ;;  %v2220_v48 = vsel %vm978_vm4, %v2566_v41, 0 }
 0x9ad   : > { %2882 = vmatprep.subr.bf16.mxu1 %v3153_v1 }
 0x9b3   : > { %2879 = vmatmul.mubr.msk.bf16.vlgmr.msra.gmra.mrb[32].mxu1 %vm681_vm2, %v1867_v57 }
 0x9b4   : > { %2883 = vmatpush3.bf16.xpose.msra.mxu1 %v1974_v56  ;;  %2898 = vmatprep.mubr.msk.bf16.mxu1 %vm3154_vm0, %v3153_v1 }
 0x9b5   : > { %2884 = vmatprep.subr.bf16.mxu1 %v3153_v1 }
 0x9bc   : > { %2885 = vmatpush3.bf16.xpose.msra.mxu1 %v1977_v59 }
 0x9bd   : > { %2886 = vmatprep.subr.bf16.mxu1 %v3153_v1 }
 0x9c4   : > { %2887 = vmatpush3.bf16.xpose.msra.mxu1 %v1980_v61 }
 0x9c5   : > { %2888 = vmatprep.subr.bf16.mxu1 %v3153_v1 }
 0x9cc   : > { %2889 = vmatpush3.bf16.xpose.msra.mxu1 %v1983_v63 }
 0x9cd   : > { %2890 = vmatprep.subr.bf16.mxu1 %v3153_v1 }
 0x9d4   : > { %2891 = vmatpush3.bf16.xpose.msra.mxu1 %v1986_v2 }
 0x9d5   : > { %2892 = vmatprep.subr.bf16.mxu1 %v3153_v1 }
 0x9dc   : > { %2893 = vmatpush3.bf16.xpose.msra.mxu1 %v1989_v4 }
 0x9dd   : > { %2894 = vmatprep.subr.bf16.mxu1 %v3153_v1 }
 0x9e4   : > { %2895 = vmatpush3.bf16.xpose.msra.mxu1 %v1992_v6 }
 0x9e5   : > { %2896 = vmatprep.subr.bf16.mxu1 %v3153_v1 }
 0x9ec   : > { %2897 = vmatpush3.bf16.xpose.msra.mxu1 %v1995_v9 }
 0x9f3   : > { %2899 = vmatmul.mubr.msk.bf16.vlgmr.msra.gmra.mrb[36].mxu1 %vm681_vm2, %v1867_v57 }
 0xa7e   : > { %v1859_v10 = vpop.f32.mrb[28].mxu1 }
 0xa7f   : > { %v3722_v11 = vadd.f32 %v1859_v10, %v3622_v7  ;;  %v2874_v12 = vpop.f32.mrb[29].mxu1  ;;  %v3057_v7 = vld [vmem:[%s3836_s12 + $0xc0] sm:$0xff]  }
 0xa80   : > { %v1862_v13 = vpop.f32.mrb[30].mxu1  ;;  %2903 = vmatpush3.bf16.msra.mxu0 %v3057_v7 }
 0xa81   : > { %v2875_v14 = vpop.f32.mrb[31].mxu1  ;;  %2904 = vmatprep.subr.bf16.mxu0 %v3153_v1 }
 0xa84   : > { %2905 = vmatpush3.bf16.msra.mxu0 %v3058_v26 }
 0xa85   : > { %2906 = vmatprep.subr.bf16.mxu0 %v3153_v1 }
 0xa86   : > { %v1910_v15 = vpop.f32.mrb[32].mxu1 }
 0xa87   : > { %v2880_v16 = vpop.f32.mrb[33].mxu1  ;;  %v2037_v17 = vsel %vm681_vm2, %v1910_v15, -inf }
 0xa88   : > { %2038 = vmax.xlane.f32.xlu1 %v2037_v17  ;;  %v1913_v18 = vpop.f32.mrb[34].mxu1 }
 0xa89   : > { %v2881_v19 = vpop.f32.mrb[35].mxu1 }
 0xac6   : > { %v2031_v20 = vpop.f32.mrb[36].mxu1 }
 0xac7   : > { %v2032_v22 = vadd.f32 %v2031_v20, %v3391_v54  ;;  %v2900_v23 = vpop.f32.mrb[37].mxu1  ;;  %v3059_v54 = vld [vmem:[%s3836_s12 + $0xd0] sm:$0xff]  }
 0xac8   : > { %v2034_v24 = vpop.f32.mrb[38].mxu1  ;;  %2907 = vmatpush3.bf16.msra.mxu0 %v3059_v54 }
 0xac9   : > { %2040 = vmax.xlane.f32.xlu0 %v2032_v22  ;;  %v2901_v25 = vpop.f32.mrb[39].mxu1  ;;  %2908 = vmatprep.subr.bf16.mxu0 %v3153_v1 }
 0xacc   : > { %2909 = vmatpush3.bf16.msra.mxu0 %v3060_v27 }
 0xacd   : > { %2910 = vmatprep.subr.bf16.mxu0 %v3153_v1 }
 0xad0   : > { %2911 = vmatpush3.bf16.msra.mxu0 %v3061_v39 }
 0xad1   : > { %2912 = vmatprep.subr.bf16.mxu0 %v3153_v1 }
 0xad4   : > { %2913 = vmatpush3.bf16.msra.mxu0 %v3062_v35 }
 0xad5   : > { %2914 = vmatprep.subr.bf16.mxu0 %v3153_v1 }
 0xad8   : > { %2915 = vmatpush3.bf16.msra.mxu0 %v3063_v40 }
 0xad9   : > { %2916 = vmatprep.subr.bf16.mxu0 %v3153_v1 }
 0xadc   : > { %2917 = vmatpush3.bf16.msra.mxu0 %v3064_v42 }
 0xadd   : > { %2922 = vmatprep.subr.bf16.mxu0 %v3153_v1 }
 0xb15   : > { %v2039_v28 = vpop.xlane.xlu1 %2038 }
 0xb56   : > { %v2041_v29 = vpop.xlane.xlu0 %2040 }
 0xb57   : > { %v2042_v30 = vmax.f32 %v2039_v28, %v2041_v29 }
 0xb59   : > { %v2043_v31 = vsub.f32 %v1910_v15, %v2042_v30  ;;  %v2046_v32 = vsub.f32 %v2032_v22, %v2042_v30 }
 0xb5b   : > { %v2044_v33 = vmul.f32 1.442695, %v2043_v31  ;;  %v2047_v34 = vmul.f32 1.442695, %v2046_v32 }
 0xb5d   : > { %3083 = vpow2.f32 %v2044_v33 }
 0xb5e   : > { %3085 = vpow2.f32 %v2047_v34 }
 0xb67   : > { %v3084_v36 = vpop.eup %3083 }
 0xb68   : > { %v3086_v37 = vpop.eup %3085  ;;  %v2049_v38 = vsel %vm681_vm2, %v3084_v36, 0.0 }
 0xb69   : > { %2052 = vadd.xlane.f32.xlu1 %v3086_v37  ;;  %2050 = vadd.xlane.f32.xlu0 %v2049_v38 }
 0xb7f   : > { %2165 = vrot.lane.b32.xlu0 %v3436_v21, %s3158_s20  ;;  %s3089_s20 = scalar_lea.vmem %s3784_s0, 128 }
 0xb80   : > { %p3090_p11 = scmp.ne.s32.totalorder %s3784_s0, %s3089_s20  ;;  %p3097_p1 = scmp.lt.s32.totalorder %s3095_s5, %s3089_s20 }
 0xb82   : > { %p3091_p12 = pnand %p3090_p11, %p3268_p5  ;;  %p3098_p2 = por %p3097_p1, %p3096_p0 }
 0xb84   : > { %p3092_p13 = pneg %p3091_p12 }
 0xb86   : > { %p3099_p3 = pnand %p3098_p2, %p3092_p13 }
 0xbf6   : > { %v2053_v43 = vpop.xlane.xlu1 %2052  ;;  %v2051_v44 = vpop.xlane.xlu0 %2050 }
 0xbf7   : > { %v2054_v45 = vadd.f32 %v2053_v43, %v2051_v44 }
 0xbf9   : > { %3087 = vrcp.f32 %v2054_v45 }
 0xbfa   : > { %v2166_v47 = vpop.permute.xlu0 %2165 }
 0xbfb   : > { %v2171_v50 = vsel %vm978_vm4, %v2166_v47, 0 }
 0xc03   : > { %v3088_v46 = vpop.eup %3087 }
 0xc04   : > { %v2058_v21 = vmul.f32 %v3088_v46, %v3086_v37  ;;  %v2056_v51 = vmul.f32 %v3088_v46, %v3084_v36 }
 0xc06   : > { %v2059_v49 = vpack.c.bf16 %v2058_v21, %v2058_v21  ;;  %v2057_v52 = vpack.c.bf16 %v2056_v51, %v2056_v51 }
 0xc08   : > { %2919 = vmatmul.mubr.bf16.vlgmr.msra.gmra.mrb[28].mxu0 %v2059_v49 }
 0xc09   : > { %2923 = vmatpush3.bf16.msra.mxu0 %v2171_v50  ;;  %2924 = vmatprep.mubr.msk.bf16.mxu0 %vm3154_vm0, %v3153_v1 }
 0xc0a   : > { %2928 = vmatprep.subr.bf16.mxu0 %v3153_v1 }
 0xc14   : > { %2925 = vmatmul.mubr.msk.bf16.vlgmr.msra.gmra.mrb[28].mxu0 %vm681_vm2, %v2057_v52 }
 0xc15   : > { %2929 = vmatpush3.bf16.msra.mxu0 %v2220_v48  ;;  %2930 = vmatprep.mubr.msk.bf16.mxu0 %vm3154_vm0, %v3153_v1 }
 0xce7   : > { %v2207_v53 = vpop.f32.mrb[28].mxu0 }
 0xce8   : > { %v2213_v55 = vpack.c.bf16 %v2207_v53, %v2207_v53  ;;  %v2926_v56 = vpop.f32.mrb[29].mxu0 }
 0xce9   : > { %v2210_v57 = vpop.f32.mrb[30].mxu0 }
 0xcea   : > { %v2927_v58 = vpop.f32.mrb[31].mxu0  ;;  %2931 = vmatmul.mubr.msk.bf16.vlgmr.msra.gmra.mrb[32].mxu0 %vm681_vm2, %v2213_v55 }
 0xdbd   : > { %v2256_v59 = vpop.f32.mrb[32].mxu0 }
 0xdbe   : > { %v2262_v1 = vadd.f32 %v2256_v59, %v3722_v11  ;;  %v2932_v61 = vpop.f32.mrb[33].mxu0 }
 0xdbf   : > { %v2259_v62 = vpop.f32.mrb[34].mxu0 }
 0xdc0   : > { %v2270_v63 = vadd.f32 %v2568_v60, %v2262_v1  ;;  %v2933_v0 = vpop.f32.mrb[35].mxu0 }
 0xdc2   : > { %2271 = vst [vmem:[%s457_s17] sm:$0xff] %v2270_v63 }
 0xdc3   : > { %3102 = shalt.err (!%p3099_p3)
}
 0xdc4   : > { %s3103_s23 = scalar_lea.hbm %s3782_s3, 128  ;;  %s3107_s17 = scalar_lea.hbm %s3837_s13, 256 }
 0xdc5   : > { %p3104_p4 = scmp.ne.s32.totalorder %s3782_s3, %s3103_s23  ;;  %p3108_p9 = scmp.lt.u32.totalorder %s3782_s3, %s3837_s13 }
 0xdc6   : > { %p3109_p10 = scmp.lt.u32.totalorder %s3107_s17, %s3103_s23  ;;  %p3111_p12 = scmp.lt.u32.totalorder %s3103_s23, %s3782_s3 }
 0xdc7   : > { %p3105_p7 = pnand %p3104_p4, %p3268_p5 }
 0xdc8   : > { %p3110_p11 = por %p3109_p10, %p3108_p9 }
 0xdc9   : > { %p3106_p8 = pneg %p3105_p7 }
 0xdca   : > { %p3112_p13 = por %p3111_p12, %p3110_p11 }
 0xdcc   : > { %p3113_p0 = pnand %p3112_p13, %p3106_p8 }
 0xdce   : > { %3116 = shalt.err (!%p3113_p0)
}
 0xdcf   : > { %2950 = dma.vmem_to_hbm [thread:$0]  (%p3268_p5), %s3784_s0, 128, %s3782_s3, %s2273_s29  }
 0xdd0 PF: > { %p2956_p1 = scmp.ge.s32.totalorder %s3151_s28, 2  ;;  %s2298_s20 = sand.u32 1, %s3139_s25  }
 0xdd1   : > { %s2299_s22 = scalar_lea.sflag [#allocation3], %s2298_s20 }
 0xdd2   : > { %p2953_p2 = pnand %p2956_p1, %p3272_p6 }
 0xdd4   : > { %3134 = dma.done.wait (!%p2953_p2), %s2299_s22, 128  }
 0xdd5   : > { %3136 = vsyncadd (!%p2953_p2), %s2299_s22, 4294967168  ;;  %s3847_s21 = sld [smem:[#allocation5_spill]]  ;;  %p23_p3 = scmp.ge.s32.totalorder %s3255_s14, 4  }
 0xdd6   : > { %s3848_s25 = smov %s3143_s26  ;;  %s3849_s26 = smov %s3147_s27 }
 0xdd7   : > { %s3851_s28 = smov %s3255_s14  ;;  %25 = sbr.rel (!%p23_p3) target bundleno = 7 (0x7), region = 122 }
 0xddb   : > { %s3850_s27 = smov %s3847_s21 }
 0xdde   :  { %2304 = vsyncpa [#allocation3], 1 }
 0xddf   :  { %2306 = vsyncpa [#allocation3 + $0x1], 1 }

// kernel: tpu_custom_call.1
= control target key start
LH: loop header
LB: loop body
LE: loop exit
PB: predicated region body
PF: predicated region fallthrough
CT: control target
= control target key end

     0   :  { %s3824_s0 = inlined_call_operand.vmem [shape: bf16[2,8,32], index: 0, kind: input, shape index: {}]   ;;  %s3825_s1 = inlined_call_operand.vmem [shape: bf16[2,8,32], index: 1, kind: input, shape index: {}]   ;;  %s3826_s2 = inlined_call_operand.vmem [shape: bf16[2,8,32], index: 2, kind: input, shape index: {}]   ;;  %s3827_s3 = inlined_call_operand.vmem [shape: bf16[32,32], index: 3, kind: input, shape index: {}]   ;;  %s3828_s4 = inlined_call_operand.vmem [shape: f32[1,32], index: 4, kind: input, shape index: {}]   ;;  %s3829_s5 = inlined_call_operand.vmem [shape: bf16[32,32], index: 5, kind: input, shape index: {}]   ;;  %s3830_s6 = inlined_call_operand.vmem [shape: f32[1,32], index: 6, kind: input, shape index: {}]   ;;  %s3831_s7 = inlined_call_operand.vmem [shape: bf16[32,32], index: 7, kind: input, shape index: {}]   ;;  %s3832_s8 = inlined_call_operand.vmem [shape: f32[1,32], index: 8, kind: input, shape index: {}]   ;;  %s3833_s9 = inlined_call_operand.vmem [shape: bf16[4,8,128], index: 9, kind: input, shape index: {}]   ;;  %s3834_s10 = inlined_call_operand.vmem [shape: f32[1,128], index: 10, kind: input, shape index: {}]   ;;  %s3835_s11 = inlined_call_operand.vmem [shape: bf16[4,128,8], index: 11, kind: input, shape index: {}]   ;;  %s3836_s12 = inlined_call_operand.vmem [shape: bf16[4,128,8], index: 12, kind: input, shape index: {}]   ;;  %s3837_s13 = inlined_call_operand.hbm [shape: f32[2,8,128], index: 13, kind: output, shape index: {}]  }
   0x1   :  { %3838 = sst [smem:[#allocation6_spill]] %s3824_s0 }
   0x2   :  { %3839 = sst [smem:[#allocation7_spill]] %s3827_s3 }
   0x3   :  { %3840 = sst [smem:[#allocation8_spill]] %s3829_s5 }
   0x4   :  { %18 = vsyncpa [#allocation3], 0 }
   0x5   :  { %20 = vsyncpa [#allocation3 + $0x1], 0  ;;  %s3230_s25 = smov 0   ;;  %s3232_s26 = smov 0  }
   0x6   :  { %s3234_s27 = smov 0   ;;  %s3236_s28 = smov 0  }
   0x7 LB: > { %s3251_s29 = sadd.s32 4294967295, %s3151_s28   ;;  %s2369_s30 = sadd.s32 4294967294, %s3151_s28   ;;  %s3151_s28 = sphi %s3236_s28, %s3851_s28   ;;  %s3147_s27 = sphi %s3234_s27, %s3850_s27   ;;  %s3143_s26 = sphi %s3232_s26, %s3849_s26   ;;  %s3139_s25 = sphi %s3230_s25, %s3848_s25  }
   0x8   : > { %s3255_s14 = sadd.s32 1, %s3151_s28   ;;  %s321_s15 = sadd.s32 1, %s3147_s27 }
   0x9   : > { %s318_s16 = ssub.s32 %s3151_s28, %s3255_s14  ;;  %p331_p0 = scmp.ne.s32.totalorder %s3147_s27, %s3143_s26 }
   0xa   : > { %p319_p1 = scmp.eq.s32.totalorder %s318_s16, 0  ;;  %p332_p2 = scmp.eq.s32.totalorder %s3251_s29, 1 }
   0xb   : > { %p337_p3 = scmp.ne.s32.totalorder %s3143_s26, %s3139_s25  ;;  %p338_p4 = scmp.eq.s32.totalorder %s2369_s30, 1 }
   0xc   : > { %s3266_s17 = scalar_select %p319_p1, %s3147_s27, %s321_s15  }
   0xd   : > { %p3268_p5 = por %p332_p2, %p331_p0  ;;  %p3272_p6 = por %p338_p4, %p337_p3 }
   0xe   : > { %3841 = sst [smem:[#allocation5_spill]] %s3266_s17  ;;  %p2372_p7 = scmp.ge.s32.totalorder %s3151_s28, 1 }
   0xf   : > { %p407_p8 = scmp.lt.s32.totalorder %s3151_s28, 3 }
  0x11   : > { %p408_p9 = pnand %p2372_p7, %p407_p8 }
  0x12   : > { %s3844_s5 = sld [smem:[#allocation8_spill]] (!%p408_p9)  ;;  %v3153_v1 = vmov (!%p408_p9), 0.0   ;;  %s3845_s3 = sld [smem:[#allocation7_spill]] (!%p408_p9)  ;;  %vm3154_vm0 = vmmov (!%p408_p9), 0   ;;  %vm497_vm1 = vcmask (!%p408_p9), 261120   ;;  %v2999_v5 = vld [vmem:[%s3831_s7] sm:$0xff] (!%p408_p9)   ;;  %v674_v46 = vlaneseq (!%p408_p9) }
  0x13   : > { %411 = sbr.rel (%p408_p9) target bundleno = 3536 (0xdd0), region = 72  ;;  %2686 = vmatprep.subr.bf16.mxu1 (!%p408_p9), %v3153_v1  ;;  %2678 = vmatprep.subr.bf16.mxu0 (!%p408_p9), %v3153_v1  ;;  %p458_p10 = scmp.lt.s32.totalorder (!%p408_p9), %s3251_s29, 1  ;;  %v3001_v8 = vld [vmem:[%s3835_s11] sm:$0xff] (!%p408_p9)   ;;  %v3002_v9 = vld [vmem:[%s3835_s11 + $0x8] sm:$0xff] (!%p408_p9)   ;;  %v3003_v10 = vld [vmem:[%s3835_s11 + $0x10] sm:$0xff] (!%p408_p9)   ;;  %vm681_vm2 = vcmask (!%p408_p9), 64512  }
  0x14   : > { %2690 = vmatprep.mubr.msk.bf16.mxu1 (!%p408_p9), %vm3154_vm0, %v3153_v1  ;;  %2682 = vmatprep.mubr.msk.bf16.mxu0 (!%p408_p9), %vm3154_vm0, %v3153_v1  ;;  %s3846_s0 = sld [smem:[#allocation6_spill]] (!%p408_p9)  ;;  %v3004_v11 = vld [vmem:[%s3835_s11 + $0x18] sm:$0xff] (!%p408_p9)   ;;  %v3000_v12 = vld [vmem:[%s3831_s7 + $0x8] sm:$0xff] (!%p408_p9)   ;;  %v785_v14 = vsel (!%p408_p9), %vm681_vm2, %v3001_v8, 0  ;;  %v788_v15 = vsel (!%p408_p9), %vm681_vm2, %v3002_v9, 0  ;;  %v791_v16 = vsel (!%p408_p9), %vm681_vm2, %v3003_v10, 0 }
  0x15   : > { %v794_v17 = vsel (!%p408_p9), %vm681_vm2, %v3004_v11, 0  ;;  %v3005_v18 = vld [vmem:[%s3835_s11 + $0x20] sm:$0xff] (!%p408_p9)   ;;  %v3006_v20 = vld [vmem:[%s3835_s11 + $0x28] sm:$0xff] (!%p408_p9)   ;;  %v3007_v22 = vld [vmem:[%s3835_s11 + $0x30] sm:$0xff] (!%p408_p9)   ;;  %v675_v47 = vand.u32 (!%p408_p9), 127, %v674_v46  ;;  %vm978_vm4 = vcmask (!%p408_p9), 1043456  }
  0x16   : > { %v797_v19 = vsel (!%p408_p9), %vm681_vm2, %v3005_v18, 0  ;;  %v800_v21 = vsel (!%p408_p9), %vm681_vm2, %v3006_v20, 0  ;;  %v803_v23 = vsel (!%p408_p9), %vm681_vm2, %v3007_v22, 0  ;;  %v3008_v24 = vld [vmem:[%s3835_s11 + $0x38] sm:$0xff] (!%p408_p9)   ;;  %v2381_v26 = vld [vmem:[%s3830_s6] ss:$0 sm:$0xff] (!%p408_p9) }
  0x17   : > { %v806_v25 = vsel (!%p408_p9), %vm681_vm2, %v3008_v24, 0  ;;  %v2377_v27 = vld [vmem:[%s3828_s4] ss:$0 sm:$0xff] (!%p408_p9)  ;;  %vm676_vm3 = vcmp.lt.s32.totalorder (!%p408_p9), %v675_v47, 8  ;;  %v3155_v53 = vmov (!%p408_p9), -1e+30  }
  0x18   : > { %v2995_v0 = vld [vmem:[%s3844_s5] sm:$0xff] (!%p408_p9)   ;;  %v2997_v3 = vld [vmem:[%s3844_s5 + $0x8] sm:$0xff] (!%p408_p9)   ;;  %v3391_v54 = vsel (!%p408_p9), %vm676_vm3, 0.0, %v3155_v53  ;;  %v3011_v62 = vld [vmem:[%s3836_s12 + $0x10] sm:$0xff] (!%p408_p9)   ;;  %s455_s23 = sand.u32 (!%p408_p9), 1, %s3143_s26   ;;  %s3159_s22 = smov (!%p408_p9), [#allocation2]  }
  0x19   : > { %v2996_v2 = vld [vmem:[%s3845_s3] sm:$0xff] (!%p408_p9)   ;;  %2687 = vmatpush3.bf16.msra.mxu1 (!%p408_p9), %v2995_v0  ;;  %v2998_v4 = vld [vmem:[%s3845_s3 + $0x8] sm:$0xff] (!%p408_p9)   ;;  %v3012_v10 = vld [vmem:[%s3836_s12 + $0x18] sm:$0xff] (!%p408_p9)  }
  0x1a   : > { %2688 = vmatprep.subr.bf16.mxu1 %v3153_v1  ;;  %2679 = vmatpush3.bf16.msra.mxu0 %v2996_v2  ;;  %s459_s20 = scalar_select %p458_p10, %s3251_s29, 1  ;;  %v3009_v60 = vld [vmem:[%s3836_s12] sm:$0xff]   ;;  %v3010_v61 = vld [vmem:[%s3836_s12 + $0x8] sm:$0xff]   ;;  %v3024_v46 = vld [vmem:[%s3835_s11 + $0x78] sm:$0xff]  }
  0x1b   : > { %2680 = vmatprep.subr.bf16.mxu0 %v3153_v1  ;;  %v3013_v11 = vld [vmem:[%s3836_s12 + $0x20] sm:$0xff]   ;;  %v1155_v47 = vsel %vm681_vm2, %v3024_v46, 0 }
  0x1c   : > { %s2374_s21 = sshll.u32 %s459_s20, 2  ;;  %v2385_v18 = vld [vmem:[%s3832_s8] ss:$0 sm:$0xff]  ;;  %s3158_s20 = smov 104  }
  0x1d   : > { %2689 = vmatpush3.bf16.msra.mxu1 %v2997_v3  ;;  %s465_s24 = scalar_lea.vmem %s3825_s1, %s2374_s21  ;;  %s461_s17 = scalar_lea.vmem %s3846_s0, %s2374_s21 }
  0x1e   : > { %2681 = vmatpush3.bf16.msra.mxu0 %v2998_v4  ;;  %2702 = vmatprep.subr.bf16.mxu1 %v3153_v1  ;;  %v472_v6 = vld [vmem:[%s465_s24] sm:$0xf]  ;;  %s469_s15 = scalar_lea.vmem %s3826_s2, %s2374_s21  ;;  %s3156_s0 = smov 120  }
  0x1f   : > { %v471_v7 = vld [vmem:[%s461_s17] sm:$0xf]  ;;  %2694 = vmatprep.subr.bf16.mxu0 %v3153_v1  ;;  %s3157_s21 = smov 112   ;;  %s2570_s24 = sshll.u32 %s3251_s29, 7 }
  0x20   : > { %2691 = vmatmul.mubr.msk.bf16.vlgmr.msra.gmra.mrb[0].mxu1 %vm497_vm1, %v472_v6  ;;  %v473_v13 = vld [vmem:[%s469_s15] sm:$0xf]  ;;  %s3782_s3 = scalar_lea.hbm %s3837_s13, %s2570_s24  ;;  %s2273_s29 = scalar_lea.sflag [#allocation3], %s455_s23 }
  0x21   : > { %2683 = vmatmul.mubr.msk.bf16.vlgmr.msra.gmra.mrb[0].mxu0 %vm497_vm1, %v471_v7  ;;  %2704 = vmatprep.mubr.msk.bf16.mxu1 %vm3154_vm0, %v3153_v1 }
  0x22   : > { %2695 = vmatpush3.bf16.msra.mxu0 %v2999_v5  ;;  %2698 = vmatprep.mubr.msk.bf16.mxu0 %vm3154_vm0, %v3153_v1 }
  0x23   : > { %2696 = vmatprep.subr.bf16.mxu0 %v3153_v1 }
  0x26   : > { %2697 = vmatpush3.bf16.msra.mxu0 %v3000_v12  ;;  %v3014_v12 = vld [vmem:[%s3836_s12 + $0x28] sm:$0xff]  }
  0x27   : > { %2708 = vmatprep.subr.bf16.mxu0 %v3153_v1 }
  0x29   : > { %2699 = vmatmul.mubr.msk.bf16.vlgmr.msra.gmra.mrb[4].mxu0 %vm497_vm1, %v473_v13  ;;  %v3015_v13 = vld [vmem:[%s3836_s12 + $0x30] sm:$0xff]  }
  0x2a   : > { %2724 = vmatprep.mubr.msk.bf16.mxu0 %vm3154_vm0, %v3153_v1 }
  0x2f   : > { %2709 = vmatpush3.bf16.xpose.msra.mxu0 %v785_v14  ;;  %v3016_v14 = vld [vmem:[%s3836_s12 + $0x38] sm:$0xff]  }
  0x30   : > { %2710 = vmatprep.subr.bf16.mxu0 %v3153_v1 }
  0x37   : > { %2711 = vmatpush3.bf16.xpose.msra.mxu0 %v788_v15 }
  0x38   : > { %2712 = vmatprep.subr.bf16.mxu0 %v3153_v1 }
  0x3f   : > { %2713 = vmatpush3.bf16.xpose.msra.mxu0 %v791_v16 }
  0x40   : > { %2714 = vmatprep.subr.bf16.mxu0 %v3153_v1 }
  0x47   : > { %2715 = vmatpush3.bf16.xpose.msra.mxu0 %v794_v17 }
  0x48   : > { %2716 = vmatprep.subr.bf16.mxu0 %v3153_v1 }
  0x4f   : > { %2717 = vmatpush3.bf16.xpose.msra.mxu0 %v797_v19 }
  0x50   : > { %2718 = vmatprep.subr.bf16.mxu0 %v3153_v1 }
  0x57   : > { %2719 = vmatpush3.bf16.xpose.msra.mxu0 %v800_v21 }
  0x58   : > { %2720 = vmatprep.subr.bf16.mxu0 %v3153_v1 }
  0x5f   : > { %2721 = vmatpush3.bf16.xpose.msra.mxu0 %v803_v23 }
  0x60   : > { %2722 = vmatprep.subr.bf16.mxu0 %v3153_v1 }
  0x67   : > { %2723 = vmatpush3.bf16.xpose.msra.mxu0 %v806_v25 }
  0x68   : > { %2780 = vmatprep.subr.bf16.mxu0 %v3153_v1 }
  0xf3   : > { %v601_v28 = vpop.f32.mrb[0].mxu1 }
  0xf4   : > { %v602_v29 = vadd.f32 %v2381_v26, %v601_v28  ;;  %v2692_v30 = vpop.f32.mrb[1].mxu1  ;;  %v535_v31 = vpop.f32.mrb[0].mxu0 }
  0xf5   : > { %v604_v32 = vpop.f32.mrb[2].mxu1  ;;  %v536_v33 = vadd.f32 %v2377_v27, %v535_v31  ;;  %v2684_v34 = vpop.f32.mrb[1].mxu0 }
  0xf6   : > { %v3374_v35 = vpack.c.bf16 %v602_v29, %v602_v29  ;;  %v2693_v36 = vpop.f32.mrb[3].mxu1  ;;  %v538_v37 = vpop.f32.mrb[2].mxu0  ;;  %v3017_v29 = vld [vmem:[%s3835_s11 + $0x40] sm:$0xff]   ;;  %v3018_v32 = vld [vmem:[%s3835_s11 + $0x48] sm:$0xff]   ;;  %v3019_v34 = vld [vmem:[%s3835_s11 + $0x50] sm:$0xff]  }
  0xf7   : > { %v673_v38 = vmul.f32 0.35355338, %v536_v33  ;;  %v2685_v39 = vpop.f32.mrb[3].mxu0  ;;  %v1134_v30 = vsel %vm681_vm2, %v3017_v29, 0  ;;  %v1137_v33 = vsel %vm681_vm2, %v3018_v32, 0  ;;  %v1140_v36 = vsel %vm681_vm2, %v3019_v34, 0 }
  0xf8   : > { %v686_v40 = vsel %vm681_vm2, %v3374_v35, 0  ;;  %v3020_v37 = vld [vmem:[%s3835_s11 + $0x58] sm:$0xff]   ;;  %v3021_v39 = vld [vmem:[%s3835_s11 + $0x60] sm:$0xff]  }
  0xf9   : > { %v3378_v41 = vpack.c.bf16 %v673_v38, %v673_v38  ;;  %2703 = vmatpush3.bf16.xpose.msra.mxu1 %v686_v40  ;;  %v1143_v38 = vsel %vm681_vm2, %v3020_v37, 0  ;;  %v1146_v40 = vsel %vm681_vm2, %v3021_v39, 0  ;;  %v2459_v32 = vld [vmem:[%s3833_s9 + $0x4] sm:$0xf] }
  0xfa   : > { %2728 = vmatprep.subr.bf16.mxu1 %v3153_v1 }
  0xfb   : > { %2725 = vmatmul.mubr.msk.bf16.vlgmr.msra.gmra.mrb[8].mxu0 %vm681_vm2, %v3378_v41 }
  0xfc   : > { %v3383_v42 = vpop.f32.mrb[4].mxu0  ;;  %2796 = vmatprep.mubr.msk.bf16.mxu0 %vm3154_vm0, %v3153_v1 }
  0xfd   : > { %v2700_v43 = vpop.f32.mrb[5].mxu0  ;;  %v668_v19 = vadd.f32 %v2385_v18, %v3383_v42  ;;  %v3022_v42 = vld [vmem:[%s3835_s11 + $0x68] sm:$0xff]  }
  0xfe   : > { %v670_v44 = vpop.f32.mrb[6].mxu0  ;;  %v1149_v43 = vsel %vm681_vm2, %v3022_v42, 0 }
  0xff   : > { %v2701_v45 = vpop.f32.mrb[7].mxu0  ;;  %v3436_v21 = vpack.c.bf16 %v668_v19, %v668_v19  ;;  %v3023_v44 = vld [vmem:[%s3835_s11 + $0x70] sm:$0xff]  }
 0x100   : > { %2705 = vmatmul.mubr.msk.bf16.vlgmr.msra.gmra.mrb[4].mxu1 %vm681_vm2, %v3378_v41  ;;  %v1152_v45 = vsel %vm681_vm2, %v3023_v44, 0 }
 0x101   : > { %2744 = vmatprep.mubr.msk.bf16.mxu1 %vm3154_vm0, %v3153_v1  ;;  %2729 = vmatpush3.bf16.msra.mxu1 %v3009_v60  ;;  %v980_v24 = vsel %vm978_vm4, %v3436_v21, 0 }
 0x102   : > { %2730 = vmatprep.subr.bf16.mxu1 %v3153_v1 }
 0x105   : > { %2731 = vmatpush3.bf16.msra.mxu1 %v3010_v61 }
 0x106   : > { %2732 = vmatprep.subr.bf16.mxu1 %v3153_v1 }
 0x109   : > { %2733 = vmatpush3.bf16.msra.mxu1 %v3011_v62 }
 0x10a   : > { %2734 = vmatprep.subr.bf16.mxu1 %v3153_v1 }
 0x10d   : > { %2735 = vmatpush3.bf16.msra.mxu1 %v3012_v10 }
 0x10e   : > { %2736 = vmatprep.subr.bf16.mxu1 %v3153_v1 }
 0x111   : > { %2737 = vmatpush3.bf16.msra.mxu1 %v3013_v11 }
 0x112   : > { %2738 = vmatprep.subr.bf16.mxu1 %v3153_v1 }
 0x115   : > { %2739 = vmatpush3.bf16.msra.mxu1 %v3014_v12 }
 0x116   : > { %2740 = vmatprep.subr.bf16.mxu1 %v3153_v1 }
 0x119   : > { %2741 = vmatpush3.bf16.msra.mxu1 %v3015_v13 }
 0x11a   : > { %2742 = vmatprep.subr.bf16.mxu1 %v3153_v1 }
 0x11d   : > { %2743 = vmatpush3.bf16.msra.mxu1 %v3016_v14  ;;  %v3029_v14 = vld [vmem:[%s3836_s12 + $0x60] sm:$0xff]  }
 0x11e   : > { %2748 = vmatprep.subr.bf16.mxu1 %v3153_v1 }
 0x1ce   : > { %v842_v48 = vpop.f32.mrb[8].mxu0 }
 0x1cf   : > { %v2726_v49 = vpop.f32.mrb[9].mxu0  ;;  %v843_v59 = vadd.f32 %v842_v48, %v3391_v54 }
 0x1d0   : > { %v845_v50 = vpop.f32.mrb[10].mxu0 }
 0x1d1   : > { %v2727_v51 = vpop.f32.mrb[11].mxu0 }
 0x1d3   : > { %v722_v52 = vpop.f32.mrb[4].mxu1 }
 0x1d4   : > { %v2706_v55 = vpop.f32.mrb[5].mxu1  ;;  %v848_v56 = vsel %vm681_vm2, %v722_v52, -inf }
 0x1d5   : > { %849 = vmax.xlane.f32.xlu0 %v848_v56  ;;  %v725_v57 = vpop.f32.mrb[6].mxu1 }
 0x1d6   : > { %v2707_v58 = vpop.f32.mrb[7].mxu1 }
 0x1d9   : > { %851 = vmax.xlane.f32.xlu0 %v843_v59 }
 0x1ef   : > { %1028 = vrot.lane.b32.xlu0 %v3374_v35, %s3156_s0 }
 0x262   : > { %v850_v63 = vpop.xlane.xlu0 %849 }
 0x266   : > { %v852_v0 = vpop.xlane.xlu0 %851 }
 0x267   : > { %v853_v2 = vmax.f32 %v850_v63, %v852_v0  ;;  %v3025_v63 = vld [vmem:[%s3836_s12 + $0x40] sm:$0xff]   ;;  %v3026_v0 = vld [vmem:[%s3836_s12 + $0x48] sm:$0xff]  }
 0x268   : > { %2781 = vmatpush3.bf16.msra.mxu0 %v3025_v63  ;;  %v3040_v63 = vld [vmem:[%s3835_s11 + $0xb8] sm:$0xff]  }
 0x269   : > { %v854_v3 = vsub.f32 %v722_v52, %v853_v2  ;;  %v857_v4 = vsub.f32 %v843_v59, %v853_v2  ;;  %2782 = vmatprep.subr.bf16.mxu0 %v3153_v1  ;;  %v3027_v2 = vld [vmem:[%s3836_s12 + $0x50] sm:$0xff]  }
 0x26a   : > { %v1029_v26 = vpop.permute.xlu0 %1028 }
 0x26b   : > { %v855_v5 = vmul.f32 1.442695, %v854_v3  ;;  %v858_v6 = vmul.f32 1.442695, %v857_v4  ;;  %v1034_v28 = vsel %vm681_vm2, %v1029_v26, 0  ;;  %v3028_v3 = vld [vmem:[%s3836_s12 + $0x58] sm:$0xff]  }
 0x26c   : > { %2783 = vmatpush3.bf16.msra.mxu0 %v3026_v0  ;;  %v1598_v0 = vsel %vm681_vm2, %v3040_v63, 0 }
 0x26d   : > { %3065 = vpow2.f32 %v855_v5  ;;  %2784 = vmatprep.subr.bf16.mxu0 %v3153_v1 }
 0x26e   : > { %3067 = vpow2.f32 %v858_v6 }
 0x270   : > { %2785 = vmatpush3.bf16.msra.mxu0 %v3027_v2 }
 0x271   : > { %2786 = vmatprep.subr.bf16.mxu0 %v3153_v1 }
 0x274   : > { %2787 = vmatpush3.bf16.msra.mxu0 %v3028_v3 }
 0x275   : > { %2788 = vmatprep.subr.bf16.mxu0 %v3153_v1 }
 0x277   : > { %v3066_v7 = vpop.eup %3065 }
 0x278   : > { %v860_v8 = vsel %vm681_vm2, %v3066_v7, 0.0  ;;  %v3068_v9 = vpop.eup %3067  ;;  %2789 = vmatpush3.bf16.msra.mxu0 %v3029_v14 }
 0x279   : > { %861 = vadd.xlane.f32.xlu1 %v860_v8  ;;  %2790 = vmatprep.subr.bf16.mxu0 %v3153_v1 }
 0x27d   : > { %863 = vadd.xlane.f32.xlu1 %v3068_v9 }
 0x28e   : > { %1025 = vrot.lane.b32.xlu1 %v3378_v41, %s3156_s0 }
 0x306   : > { %v862_v15 = vpop.xlane.xlu1 %861 }
 0x30a   : > { %v864_v16 = vpop.xlane.xlu1 %863 }
 0x30b   : > { %v865_v17 = vadd.f32 %v864_v16, %v862_v15  ;;  %v3030_v15 = vld [vmem:[%s3836_s12 + $0x68] sm:$0xff]   ;;  %v3031_v16 = vld [vmem:[%s3836_s12 + $0x70] sm:$0xff]  }
 0x30c   : > { %2791 = vmatpush3.bf16.msra.mxu0 %v3030_v15 }
 0x30d   : > { %3069 = vrcp.f32 %v865_v17  ;;  %2792 = vmatprep.subr.bf16.mxu0 %v3153_v1  ;;  %v3032_v17 = vld [vmem:[%s3836_s12 + $0x78] sm:$0xff]  }
 0x30e   : > { %v1026_v31 = vpop.permute.xlu1 %1025 }
 0x310   : > { %2793 = vmatpush3.bf16.msra.mxu0 %v3031_v16  ;;  %v3041_v16 = vld [vmem:[%s3836_s12 + $0x80] sm:$0xff]  }
 0x311   : > { %2794 = vmatprep.subr.bf16.mxu0 %v3153_v1 }
 0x314   : > { %2795 = vmatpush3.bf16.msra.mxu0 %v3032_v17  ;;  %v3042_v17 = vld [vmem:[%s3836_s12 + $0x88] sm:$0xff]  }
 0x315   : > { %2800 = vmatprep.subr.bf16.mxu0 %v3153_v1 }
 0x317   : > { %v3070_v20 = vpop.eup %3069 }
 0x318   : > { %v869_v22 = vmul.f32 %v3070_v20, %v3068_v9  ;;  %v867_v25 = vmul.f32 %v3070_v20, %v3066_v7 }
 0x31a   : > { %v870_v23 = vpack.c.bf16 %v869_v22, %v869_v22  ;;  %v868_v27 = vpack.c.bf16 %v867_v25, %v867_v25 }
 0x31c   : > { %2745 = vmatmul.mubr.bf16.vlgmr.msra.gmra.mrb[8].mxu1 %v870_v23 }
 0x31d   : > { %2749 = vmatpush3.bf16.msra.mxu1 %v980_v24  ;;  %2750 = vmatprep.mubr.msk.bf16.mxu1 %vm3154_vm0, %v3153_v1 }
 0x31e   : > { %2754 = vmatprep.subr.bf16.mxu1 %v3153_v1 }
 0x328   : > { %2751 = vmatmul.mubr.msk.bf16.vlgmr.msra.gmra.mrb[8].mxu1 %vm681_vm2, %v868_v27 }
 0x329   : > { %2755 = vmatpush3.bf16.xpose.msra.mxu1 %v1034_v28  ;;  %2756 = vmatprep.mubr.msk.bf16.mxu1 %vm3154_vm0, %v3153_v1 }
 0x32a   : > { %2760 = vmatprep.subr.bf16.mxu1 %v3153_v1 }
 0x330   : > { %2757 = vmatmul.mubr.msk.bf16.vlgmr.msra.gmra.mrb[12].mxu1 %vm681_vm2, %v1026_v31 }
 0x331   : > { %2761 = vmatpush3.bf16.xpose.msra.mxu1 %v1134_v30  ;;  %2776 = vmatprep.mubr.msk.bf16.mxu1 %vm3154_vm0, %v3153_v1 }
 0x332   : > { %2762 = vmatprep.subr.bf16.mxu1 %v3153_v1 }
 0x339   : > { %2763 = vmatpush3.bf16.xpose.msra.mxu1 %v1137_v33  ;;  %v1381_v33 = vsel %vm978_vm4, %v2459_v32, 0  ;;  %v3046_v32 = vld [vmem:[%s3836_s12 + $0xa8] sm:$0xff]  }
 0x33a   : > { %2764 = vmatprep.subr.bf16.mxu1 %v3153_v1 }
 0x341   : > { %2765 = vmatpush3.bf16.xpose.msra.mxu1 %v1140_v36 }
 0x342   : > { %2766 = vmatprep.subr.bf16.mxu1 %v3153_v1 }
 0x349   : > { %2767 = vmatpush3.bf16.xpose.msra.mxu1 %v1143_v38 }
 0x34a   : > { %2768 = vmatprep.subr.bf16.mxu1 %v3153_v1 }
 0x351   : > { %2769 = vmatpush3.bf16.xpose.msra.mxu1 %v1146_v40  ;;  %v1023_v40 = vld [vmem:[%s3833_s9] sm:$0xf] }
 0x352   : > { %2770 = vmatprep.subr.bf16.mxu1 %v3153_v1 }
 0x359   : > { %2771 = vmatpush3.bf16.xpose.msra.mxu1 %v1149_v43 }
 0x35a   : > { %2772 = vmatprep.subr.bf16.mxu1 %v3153_v1 }
 0x361   : > { %2773 = vmatpush3.bf16.xpose.msra.mxu1 %v1152_v45  ;;  %v1427_v45 = vsel %vm978_vm4, %v1023_v40, 0 }
 0x362   : > { %2774 = vmatprep.subr.bf16.mxu1 %v3153_v1 }
 0x369   : > { %2775 = vmatpush3.bf16.xpose.msra.mxu1 %v1155_v47 }
 0x36a   : > { %2818 = vmatprep.subr.bf16.mxu1 %v3153_v1 }
 0x370   : > { %2777 = vmatmul.mubr.msk.bf16.vlgmr.msra.gmra.mrb[16].mxu1 %vm681_vm2, %v1026_v31 }
 0x371   : > { %2820 = vmatprep.mubr.msk.bf16.mxu1 %vm3154_vm0, %v3153_v1 }
 0x3fb   : > { %v3494_v48 = vpop.f32.mrb[8].mxu1 }
 0x3fc   : > { %v2752_v49 = vpop.f32.mrb[9].mxu1 }
 0x3fd   : > { %v1019_v50 = vpop.f32.mrb[10].mxu1  ;;  %v3033_v49 = vld [vmem:[%s3835_s11 + $0x80] sm:$0xff]  }
 0x3fe   : > { %v2753_v51 = vpop.f32.mrb[11].mxu1  ;;  %v1022_v50 = vpack.c.bf16 %v3494_v48, %v3494_v48  ;;  %v3035_v48 = vld [vmem:[%s3835_s11 + $0x90] sm:$0xff]  }
 0x3ff   : > { %v1577_v51 = vsel %vm681_vm2, %v3033_v49, 0 }
 0x403   : > { %v1070_v52 = vpop.f32.mrb[12].mxu1 }
 0x404   : > { %v2758_v53 = vpop.f32.mrb[13].mxu1  ;;  %v1197_v55 = vsel %vm681_vm2, %v1070_v52, -inf }
 0x405   : > { %1198 = vmax.xlane.f32.xlu1 %v1197_v55  ;;  %v1073_v56 = vpop.f32.mrb[14].mxu1  ;;  %v1583_v53 = vsel %vm681_vm2, %v3035_v48, 0  ;;  %v3036_v55 = vld [vmem:[%s3835_s11 + $0x98] sm:$0xff]  }
 0x406   : > { %v2759_v57 = vpop.f32.mrb[15].mxu1  ;;  %v1586_v56 = vsel %vm681_vm2, %v3036_v55, 0  ;;  %v3049_v55 = vld [vmem:[%s3835_s11 + $0xc0] sm:$0xff]  }
 0x407   : > { %v3037_v57 = vld [vmem:[%s3835_s11 + $0xa0] sm:$0xff]  }
 0x443   : > { %v1191_v58 = vpop.f32.mrb[16].mxu1 }
 0x444   : > { %v1192_v59 = vadd.f32 %v1191_v58, %v3391_v54  ;;  %v2778_v60 = vpop.f32.mrb[17].mxu1  ;;  %v1589_v58 = vsel %vm681_vm2, %v3037_v57, 0 }
 0x445   : > { %v1194_v61 = vpop.f32.mrb[18].mxu1 }
 0x446   : > { %1200 = vmax.xlane.f32.xlu0 %v1192_v59  ;;  %v2779_v62 = vpop.f32.mrb[19].mxu1  ;;  %v3039_v61 = vld [vmem:[%s3835_s11 + $0xb0] sm:$0xff]  }
 0x447   : > { %v1595_v62 = vsel %vm681_vm2, %v3039_v61, 0 }
 0x492   : > { %v1199_v4 = vpop.xlane.xlu1 %1198 }
 0x4d3   : > { %v1201_v5 = vpop.xlane.xlu0 %1200 }
 0x4d4   : > { %v1202_v6 = vmax.f32 %v1199_v4, %v1201_v5 }
 0x4d6   : > { %v1203_v7 = vsub.f32 %v1070_v52, %v1202_v6  ;;  %v1206_v8 = vsub.f32 %v1192_v59, %v1202_v6  ;;  %v3038_v59 = vld [vmem:[%s3835_s11 + $0xa8] sm:$0xff]  }
 0x4d7   : > { %v1592_v60 = vsel %vm681_vm2, %v3038_v59, 0 }
 0x4d8   : > { %v1204_v9 = vmul.f32 1.442695, %v1203_v7  ;;  %v1207_v10 = vmul.f32 1.442695, %v1206_v8 }
 0x4da   : > { %3071 = vpow2.f32 %v1204_v9 }
 0x4db   : > { %3073 = vpow2.f32 %v1207_v10 }
 0x4e4   : > { %v3072_v11 = vpop.eup %3071 }
 0x4e5   : > { %v3074_v12 = vpop.eup %3073  ;;  %v1209_v13 = vsel %vm681_vm2, %v3072_v11, 0.0 }
 0x4e6   : > { %1212 = vadd.xlane.f32.xlu1 %v3074_v12  ;;  %1210 = vadd.xlane.f32.xlu0 %v1209_v13 }
 0x4f7   : > { %1471 = vrot.lane.b32.xlu1 %v3374_v35, %s3157_s21 }
 0x4fb   : > { %1469 = vrot.lane.b32.xlu1 %v3378_v41, %s3157_s21 }
 0x4fc   : > { %1326 = vrot.lane.b32.xlu0 %v3436_v21, %s3156_s0 }
 0x573   : > { %v1213_v18 = vpop.xlane.xlu1 %1212  ;;  %v1211_v19 = vpop.xlane.xlu0 %1210 }
 0x574   : > { %v1214_v20 = vadd.f32 %v1213_v18, %v1211_v19  ;;  %v3043_v18 = vld [vmem:[%s3836_s12 + $0x90] sm:$0xff]  }
 0x576   : > { %3075 = vrcp.f32 %v1214_v20 }
 0x577   : > { %v1472_v22 = vpop.permute.xlu1 %1471  ;;  %v1327_v27 = vpop.permute.xlu0 %1326 }
 0x578   : > { %v1477_v23 = vsel %vm681_vm2, %v1472_v22, 0  ;;  %v1332_v29 = vsel %vm978_vm4, %v1327_v27, 0 }
 0x579   : > { %2819 = vmatpush3.bf16.xpose.msra.mxu1 %v1477_v23 }
 0x57a   : > { %2844 = vmatprep.subr.bf16.mxu1 %v3153_v1 }
 0x57b   : > { %v3539_v24 = vpop.permute.xlu1 %1469 }
 0x580   : > { %v3076_v25 = vpop.eup %3075  ;;  %2821 = vmatmul.mubr.msk.bf16.vlgmr.msra.gmra.mrb[20].mxu1 %vm681_vm2, %v3539_v24 }
 0x581   : > { %v1218_v26 = vmul.f32 %v3076_v25, %v3074_v12  ;;  %2860 = vmatprep.mubr.msk.bf16.mxu1 %vm3154_vm0, %v3153_v1  ;;  %v1216_v30 = vmul.f32 %v3076_v25, %v3072_v11  ;;  %2845 = vmatpush3.bf16.msra.mxu1 %v3041_v16 }
 0x582   : > { %2846 = vmatprep.subr.bf16.mxu1 %v3153_v1 }
 0x583   : > { %v1219_v28 = vpack.c.bf16 %v1218_v26, %v1218_v26  ;;  %v1217_v31 = vpack.c.bf16 %v1216_v30, %v1216_v30  ;;  %v3044_v30 = vld [vmem:[%s3836_s12 + $0x98] sm:$0xff]  }
 0x585   : > { %2797 = vmatmul.mubr.bf16.vlgmr.msra.gmra.mrb[12].mxu0 %v1219_v28  ;;  %2847 = vmatpush3.bf16.msra.mxu1 %v3042_v17 }
 0x586   : > { %2801 = vmatpush3.bf16.msra.mxu0 %v1332_v29  ;;  %2802 = vmatprep.mubr.msk.bf16.mxu0 %vm3154_vm0, %v3153_v1 }
 0x587   : > { %2806 = vmatprep.subr.bf16.mxu0 %v3153_v1  ;;  %2848 = vmatprep.subr.bf16.mxu1 %v3153_v1 }
 0x589   : > { %2849 = vmatpush3.bf16.msra.mxu1 %v3043_v18 }
 0x58a   : > { %2850 = vmatprep.subr.bf16.mxu1 %v3153_v1 }
 0x58d   : > { %2851 = vmatpush3.bf16.msra.mxu1 %v3044_v30 }
 0x58e   : > { %2852 = vmatprep.subr.bf16.mxu1 %v3153_v1 }
 0x591   : > { %2803 = vmatmul.mubr.msk.bf16.vlgmr.msra.gmra.mrb[12].mxu0 %vm681_vm2, %v1217_v31  ;;  %v3045_v31 = vld [vmem:[%s3836_s12 + $0xa0] sm:$0xff]  }
 0x592   : > { %2808 = vmatprep.mubr.msk.bf16.mxu0 %vm3154_vm0, %v3153_v1  ;;  %2807 = vmatpush3.bf16.msra.mxu0 %v1381_v33  ;;  %v3047_v33 = vld [vmem:[%s3836_s12 + $0xb0] sm:$0xff]  }
 0x593   : > { %2812 = vmatprep.subr.bf16.mxu0 %v3153_v1  ;;  %2853 = vmatpush3.bf16.msra.mxu1 %v3045_v31 }
 0x594   : > { %2854 = vmatprep.subr.bf16.mxu1 %v3153_v1 }
 0x597   : > { %2855 = vmatpush3.bf16.msra.mxu1 %v3046_v32 }
 0x598   : > { %2856 = vmatprep.subr.bf16.mxu1 %v3153_v1 }
 0x59b   : > { %2857 = vmatpush3.bf16.msra.mxu1 %v3047_v33 }
 0x59c   : > { %2858 = vmatprep.subr.bf16.mxu1 %v3153_v1 }
 0x653   : > { %v3557_v34 = vpop.f32.mrb[20].mxu1 }
 0x654   : > { %v2822_v36 = vpop.f32.mrb[21].mxu1  ;;  %v1640_v37 = vsel %vm681_vm2, %v3557_v34, -inf }
 0x655   : > { %1641 = vmax.xlane.f32.xlu1 %v1640_v37  ;;  %v1516_v38 = vpop.f32.mrb[22].mxu1 }
 0x656   : > { %v2823_v39 = vpop.f32.mrb[23].mxu1 }
 0x664   : > { %v1368_v42 = vpop.f32.mrb[12].mxu0 }
 0x665   : > { %v1374_v43 = vpack.c.bf16 %v1368_v42, %v1368_v42  ;;  %v2804_v44 = vpop.f32.mrb[13].mxu0 }
 0x666   : > { %1768 = vrot.lane.b32.xlu1 %v3436_v21, %s3157_s21  ;;  %v1371_v46 = vpop.f32.mrb[14].mxu0  ;;  %s2373_s21 = sshll.u32 %s455_s23, 3 }
 0x667   : > { %v2805_v47 = vpop.f32.mrb[15].mxu0  ;;  %2809 = vmatmul.mubr.msk.bf16.vlgmr.msra.gmra.mrb[16].mxu0 %vm681_vm2, %v1374_v43  ;;  %s457_s17 = scalar_lea.vmem [#allocation2], %s2373_s21  ;;  %s3093_s21 = sshll.u32 %s3159_s22, 4  ;;  %s3094_s21 = int_to_ptr.vmem [resolvable:$false] %s3093_s21 }
 0x668   : > { %2813 = vmatpush3.bf16.msra.mxu0 %v1427_v45  ;;  %2814 = vmatprep.mubr.msk.bf16.mxu0 %vm3154_vm0, %v3153_v1  ;;  %v2513_v45 = vld [vmem:[%s3833_s9 + $0x8] sm:$0xf]  ;;  %s2286_s0 = sshll.u32 %s457_s17, 4  ;;  %s3095_s5 = scalar_lea.vmem %s3094_s21, 256  ;;  %s3784_s0 = int_to_ptr.vmem [resolvable:$true] %s2286_s0 }
 0x669   : > { %2824 = vmatprep.subr.bf16.mxu0 %v3153_v1  ;;  %v1823_v47 = vsel %vm978_vm4, %v2513_v45, 0  ;;  %p3096_p0 = scmp.lt.s32.totalorder %s3784_s0, %s3094_s21 }
 0x66a   : > { %1866 = vrot.lane.b32.xlu1 %v3378_v41, %s3158_s20  ;;  %v3034_v41 = vld [vmem:[%s3835_s11 + $0x88] sm:$0xff]  }
 0x66b   : > { %v1580_v52 = vsel %vm681_vm2, %v3034_v41, 0 }
 0x66f   : > { %2815 = vmatmul.mubr.msk.bf16.vlgmr.msra.gmra.mrb[20].mxu0 %vm681_vm2, %v1022_v50 }
 0x670   : > { %2840 = vmatprep.mubr.msk.bf16.mxu0 %vm3154_vm0, %v3153_v1 }
 0x671   : > { %2825 = vmatpush3.bf16.xpose.msra.mxu0 %v1577_v51 }
 0x672   : > { %2826 = vmatprep.subr.bf16.mxu0 %v3153_v1 }
 0x679   : > { %2827 = vmatpush3.bf16.xpose.msra.mxu0 %v1580_v52 }
 0x67a   : > { %2828 = vmatprep.subr.bf16.mxu0 %v3153_v1 }
 0x681   : > { %2829 = vmatpush3.bf16.xpose.msra.mxu0 %v1583_v53 }
 0x682   : > { %2830 = vmatprep.subr.bf16.mxu0 %v3153_v1 }
 0x689   : > { %2831 = vmatpush3.bf16.xpose.msra.mxu0 %v1586_v56  ;;  %v1974_v56 = vsel %vm681_vm2, %v3049_v55, 0 }
 0x68a   : > { %2832 = vmatprep.subr.bf16.mxu0 %v3153_v1 }
 0x691   : > { %2833 = vmatpush3.bf16.xpose.msra.mxu0 %v1589_v58  ;;  %v3050_v58 = vld [vmem:[%s3835_s11 + $0xc8] sm:$0xff]  }
 0x692   : > { %2834 = vmatprep.subr.bf16.mxu0 %v3153_v1  ;;  %v1977_v59 = vsel %vm681_vm2, %v3050_v58, 0 }
 0x699   : > { %2835 = vmatpush3.bf16.xpose.msra.mxu0 %v1592_v60  ;;  %v3051_v60 = vld [vmem:[%s3835_s11 + $0xd0] sm:$0xff]  }
 0x69a   : > { %2836 = vmatprep.subr.bf16.mxu0 %v3153_v1  ;;  %v1980_v61 = vsel %vm681_vm2, %v3051_v60, 0  ;;  %v2568_v60 = vld [vmem:[%s3834_s10] ss:$0 sm:$0xff] }
 0x6a1   : > { %2837 = vmatpush3.bf16.xpose.msra.mxu0 %v1595_v62  ;;  %v3052_v62 = vld [vmem:[%s3835_s11 + $0xd8] sm:$0xff]  }
 0x6a2   : > { %2838 = vmatprep.subr.bf16.mxu0 %v3153_v1  ;;  %v1983_v63 = vsel %vm681_vm2, %v3052_v62, 0 }
 0x6a9   : > { %2839 = vmatpush3.bf16.xpose.msra.mxu0 %v1598_v0  ;;  %v3053_v0 = vld [vmem:[%s3835_s11 + $0xe0] sm:$0xff]  }
 0x6aa   : > { %2902 = vmatprep.subr.bf16.mxu0 %v3153_v1 }
 0x6b0   : > { %2841 = vmatmul.mubr.msk.bf16.vlgmr.msra.gmra.mrb[24].mxu0 %vm681_vm2, %v3539_v24 }
 0x6b1   : > { %2918 = vmatprep.mubr.msk.bf16.mxu0 %vm3154_vm0, %v3153_v1 }
 0x6e2   : > { %v1642_v19 = vpop.xlane.xlu1 %1641 }
 0x6e6   : > { %v1769_v40 = vpop.permute.xlu1 %1768 }
 0x6e7   : > { %v1774_v43 = vsel %vm978_vm4, %v1769_v40, 0  ;;  %v3063_v40 = vld [vmem:[%s3836_s12 + $0xf0] sm:$0xff]  }
 0x6ea   : > { %v1867_v57 = vpop.permute.xlu1 %1866 }
 0x73a   : > { %v1417_v2 = vpop.f32.mrb[16].mxu0 }
 0x73b   : > { %v2810_v3 = vpop.f32.mrb[17].mxu0 }
 0x73c   : > { %v1420_v4 = vpop.f32.mrb[18].mxu0  ;;  %v3054_v3 = vld [vmem:[%s3835_s11 + $0xe8] sm:$0xff]  }
 0x73d   : > { %v2811_v5 = vpop.f32.mrb[19].mxu0  ;;  %v1989_v4 = vsel %vm681_vm2, %v3054_v3, 0 }
 0x73e   : > { %v3055_v5 = vld [vmem:[%s3835_s11 + $0xf0] sm:$0xff]  }
 0x742   : > { %v1463_v6 = vpop.f32.mrb[20].mxu0 }
 0x743   : > { %v3622_v7 = vadd.f32 %v1463_v6, %v1417_v2  ;;  %v2816_v8 = vpop.f32.mrb[21].mxu0  ;;  %v1986_v2 = vsel %vm681_vm2, %v3053_v0, 0  ;;  %v1992_v6 = vsel %vm681_vm2, %v3055_v5, 0 }
 0x744   : > { %v1466_v9 = vpop.f32.mrb[22].mxu0  ;;  %v3056_v8 = vld [vmem:[%s3835_s11 + $0xf8] sm:$0xff]  }
 0x745   : > { %v2817_v10 = vpop.f32.mrb[23].mxu0  ;;  %v1995_v9 = vsel %vm681_vm2, %v3056_v8, 0 }
 0x783   : > { %v1634_v11 = vpop.f32.mrb[24].mxu0 }
 0x784   : > { %v1635_v12 = vadd.f32 %v1634_v11, %v3391_v54  ;;  %v2842_v13 = vpop.f32.mrb[25].mxu0 }
 0x785   : > { %v1637_v14 = vpop.f32.mrb[26].mxu0 }
 0x786   : > { %1643 = vmax.xlane.f32.xlu0 %v1635_v12  ;;  %v2843_v15 = vpop.f32.mrb[27].mxu0 }
 0x813   : > { %v1644_v20 = vpop.xlane.xlu0 %1643 }
 0x814   : > { %v1645_v22 = vmax.f32 %v1642_v19, %v1644_v20 }
 0x816   : > { %v1646_v23 = vsub.f32 %v3557_v34, %v1645_v22  ;;  %v1649_v24 = vsub.f32 %v1635_v12, %v1645_v22  ;;  %v3048_v34 = vld [vmem:[%s3836_s12 + $0xb8] sm:$0xff]  }
 0x817   : > { %2859 = vmatpush3.bf16.msra.mxu1 %v3048_v34 }
 0x818   : > { %v1647_v25 = vmul.f32 1.442695, %v1646_v23  ;;  %v1650_v26 = vmul.f32 1.442695, %v1649_v24  ;;  %2864 = vmatprep.subr.bf16.mxu1 %v3153_v1 }
 0x81a   : > { %3077 = vpow2.f32 %v1647_v25 }
 0x81b   : > { %3079 = vpow2.f32 %v1650_v26  ;;  %v3058_v26 = vld [vmem:[%s3836_s12 + $0xc8] sm:$0xff]  }
 0x824   : > { %v3078_v27 = vpop.eup %3077 }
 0x825   : > { %v1652_v28 = vsel %vm681_vm2, %v3078_v27, 0.0  ;;  %v3080_v29 = vpop.eup %3079 }
 0x826   : > { %1653 = vadd.xlane.f32.xlu0 %v1652_v28 }
 0x82a   : > { %1655 = vadd.xlane.f32.xlu0 %v3080_v29 }
 0x840   : > { %1868 = vrot.lane.b32.xlu0 %v3374_v35, %s3158_s20 }
 0x8b3   : > { %v1654_v36 = vpop.xlane.xlu0 %1653 }
 0x8b7   : > { %v1656_v37 = vpop.xlane.xlu0 %1655 }
 0x8b8   : > { %v1657_v38 = vadd.f32 %v1656_v37, %v1654_v36 }
 0x8ba   : > { %3081 = vrcp.f32 %v1657_v38 }
 0x8bb   : > { %v1869_v49 = vpop.permute.xlu0 %1868 }
 0x8bc   : > { %v1874_v48 = vsel %vm681_vm2, %v1869_v49, 0 }
 0x8c4   : > { %v3082_v39 = vpop.eup %3081 }
 0x8c5   : > { %v1661_v35 = vmul.f32 %v3082_v39, %v3080_v29  ;;  %v1659_v44 = vmul.f32 %v3082_v39, %v3078_v27  ;;  %v3060_v27 = vld [vmem:[%s3836_s12 + $0xd8] sm:$0xff]   ;;  %v3061_v39 = vld [vmem:[%s3836_s12 + $0xe0] sm:$0xff]  }
 0x8c7   : > { %v1662_v42 = vpack.c.bf16 %v1661_v35, %v1661_v35  ;;  %v1660_v46 = vpack.c.bf16 %v1659_v44, %v1659_v44  ;;  %v3062_v35 = vld [vmem:[%s3836_s12 + $0xe8] sm:$0xff]  }
 0x8c9   : > { %2861 = vmatmul.mubr.bf16.vlgmr.msra.gmra.mrb[24].mxu1 %v1662_v42  ;;  %v3064_v42 = vld [vmem:[%s3836_s12 + $0xf8] sm:$0xff]  }
 0x8ca   : > { %2865 = vmatpush3.bf16.msra.mxu1 %v1774_v43  ;;  %2866 = vmatprep.mubr.msk.bf16.mxu1 %vm3154_vm0, %v3153_v1 }
 0x8cb   : > { %2870 = vmatprep.subr.bf16.mxu1 %v3153_v1 }
 0x8d5   : > { %2867 = vmatmul.mubr.msk.bf16.vlgmr.msra.gmra.mrb[24].mxu1 %vm681_vm2, %v1660_v46 }
 0x8d6   : > { %2871 = vmatpush3.bf16.msra.mxu1 %v1823_v47  ;;  %2872 = vmatprep.mubr.msk.bf16.mxu1 %vm3154_vm0, %v3153_v1 }
 0x8d7   : > { %2876 = vmatprep.subr.bf16.mxu1 %v3153_v1 }
 0x9a8   : > { %v1810_v50 = vpop.f32.mrb[24].mxu1 }
 0x9a9   : > { %v1816_v51 = vpack.c.bf16 %v1810_v50, %v1810_v50  ;;  %v2868_v41 = vpop.f32.mrb[25].mxu1 }
 0x9aa   : > { %v1813_v52 = vpop.f32.mrb[26].mxu1  ;;  %v2566_v41 = vld [vmem:[%s3833_s9 + $0xc] sm:$0xf] }
 0x9ab   : > { %v2869_v53 = vpop.f32.mrb[27].mxu1  ;;  %2873 = vmatmul.mubr.msk.bf16.vlgmr.msra.gmra.mrb[28].mxu1 %vm681_vm2, %v1816_v51 }
 0x9ac   : > { %2877 = vmatpush3.bf16.xpose.msra.mxu1 %v1874_v48  ;;  %2878 = vmatprep.mubr.msk.bf16.mxu1 %vm3154_vm0, %v3153_v1  ;;  %v2220_v48 = vsel %vm978_vm4, %v2566_v41, 0 }
 0x9ad   : > { %2882 = vmatprep.subr.bf16.mxu1 %v3153_v1 }
 0x9b3   : > { %2879 = vmatmul.mubr.msk.bf16.vlgmr.msra.gmra.mrb[32].mxu1 %vm681_vm2, %v1867_v57 }
 0x9b4   : > { %2883 = vmatpush3.bf16.xpose.msra.mxu1 %v1974_v56  ;;  %2898 = vmatprep.mubr.msk.bf16.mxu1 %vm3154_vm0, %v3153_v1 }
 0x9b5   : > { %2884 = vmatprep.subr.bf16.mxu1 %v3153_v1 }
 0x9bc   : > { %2885 = vmatpush3.bf16.xpose.msra.mxu1 %v1977_v59 }
 0x9bd   : > { %2886 = vmatprep.subr.bf16.mxu1 %v3153_v1 }
 0x9c4   : > { %2887 = vmatpush3.bf16.xpose.msra.mxu1 %v1980_v61 }
 0x9c5   : > { %2888 = vmatprep.subr.bf16.mxu1 %v3153_v1 }
 0x9cc   : > { %2889 = vmatpush3.bf16.xpose.msra.mxu1 %v1983_v63 }
 0x9cd   : > { %2890 = vmatprep.subr.bf16.mxu1 %v3153_v1 }
 0x9d4   : > { %2891 = vmatpush3.bf16.xpose.msra.mxu1 %v1986_v2 }
 0x9d5   : > { %2892 = vmatprep.subr.bf16.mxu1 %v3153_v1 }
 0x9dc   : > { %2893 = vmatpush3.bf16.xpose.msra.mxu1 %v1989_v4 }
 0x9dd   : > { %2894 = vmatprep.subr.bf16.mxu1 %v3153_v1 }
 0x9e4   : > { %2895 = vmatpush3.bf16.xpose.msra.mxu1 %v1992_v6 }
 0x9e5   : > { %2896 = vmatprep.subr.bf16.mxu1 %v3153_v1 }
 0x9ec   : > { %2897 = vmatpush3.bf16.xpose.msra.mxu1 %v1995_v9 }
 0x9f3   : > { %2899 = vmatmul.mubr.msk.bf16.vlgmr.msra.gmra.mrb[36].mxu1 %vm681_vm2, %v1867_v57 }
 0xa7e   : > { %v1859_v10 = vpop.f32.mrb[28].mxu1 }
 0xa7f   : > { %v3722_v11 = vadd.f32 %v1859_v10, %v3622_v7  ;;  %v2874_v12 = vpop.f32.mrb[29].mxu1  ;;  %v3057_v7 = vld [vmem:[%s3836_s12 + $0xc0] sm:$0xff]  }
 0xa80   : > { %v1862_v13 = vpop.f32.mrb[30].mxu1  ;;  %2903 = vmatpush3.bf16.msra.mxu0 %v3057_v7 }
 0xa81   : > { %v2875_v14 = vpop.f32.mrb[31].mxu1  ;;  %2904 = vmatprep.subr.bf16.mxu0 %v3153_v1 }
 0xa84   : > { %2905 = vmatpush3.bf16.msra.mxu0 %v3058_v26 }
 0xa85   : > { %2906 = vmatprep.subr.bf16.mxu0 %v3153_v1 }
 0xa86   : > { %v1910_v15 = vpop.f32.mrb[32].mxu1 }
 0xa87   : > { %v2880_v16 = vpop.f32.mrb[33].mxu1  ;;  %v2037_v17 = vsel %vm681_vm2, %v1910_v15, -inf }
 0xa88   : > { %2038 = vmax.xlane.f32.xlu1 %v2037_v17  ;;  %v1913_v18 = vpop.f32.mrb[34].mxu1 }
 0xa89   : > { %v2881_v19 = vpop.f32.mrb[35].mxu1 }
 0xac6   : > { %v2031_v20 = vpop.f32.mrb[36].mxu1 }
 0xac7   : > { %v2032_v22 = vadd.f32 %v2031_v20, %v3391_v54  ;;  %v2900_v23 = vpop.f32.mrb[37].mxu1  ;;  %v3059_v54 = vld [vmem:[%s3836_s12 + $0xd0] sm:$0xff]  }
 0xac8   : > { %v2034_v24 = vpop.f32.mrb[38].mxu1  ;;  %2907 = vmatpush3.bf16.msra.mxu0 %v3059_v54 }
 0xac9   : > { %2040 = vmax.xlane.f32.xlu0 %v2032_v22  ;;  %v2901_v25 = vpop.f32.mrb[39].mxu1  ;;  %2908 = vmatprep.subr.bf16.mxu0 %v3153_v1 }
 0xacc   : > { %2909 = vmatpush3.bf16.msra.mxu0 %v3060_v27 }
 0xacd   : > { %2910 = vmatprep.subr.bf16.mxu0 %v3153_v1 }
 0xad0   : > { %2911 = vmatpush3.bf16.msra.mxu0 %v3061_v39 }
 0xad1   : > { %2912 = vmatprep.subr.bf16.mxu0 %v3153_v1 }
 0xad4   : > { %2913 = vmatpush3.bf16.msra.mxu0 %v3062_v35 }
 0xad5   : > { %2914 = vmatprep.subr.bf16.mxu0 %v3153_v1 }
 0xad8   : > { %2915 = vmatpush3.bf16.msra.mxu0 %v3063_v40 }
 0xad9   : > { %2916 = vmatprep.subr.bf16.mxu0 %v3153_v1 }
 0xadc   : > { %2917 = vmatpush3.bf16.msra.mxu0 %v3064_v42 }
 0xadd   : > { %2922 = vmatprep.subr.bf16.mxu0 %v3153_v1 }
 0xb15   : > { %v2039_v28 = vpop.xlane.xlu1 %2038 }
 0xb56   : > { %v2041_v29 = vpop.xlane.xlu0 %2040 }
 0xb57   : > { %v2042_v30 = vmax.f32 %v2039_v28, %v2041_v29 }
 0xb59   : > { %v2043_v31 = vsub.f32 %v1910_v15, %v2042_v30  ;;  %v2046_v32 = vsub.f32 %v2032_v22, %v2042_v30 }
 0xb5b   : > { %v2044_v33 = vmul.f32 1.442695, %v2043_v31  ;;  %v2047_v34 = vmul.f32 1.442695, %v2046_v32 }
 0xb5d   : > { %3083 = vpow2.f32 %v2044_v33 }
 0xb5e   : > { %3085 = vpow2.f32 %v2047_v34 }
 0xb67   : > { %v3084_v36 = vpop.eup %3083 }
 0xb68   : > { %v3086_v37 = vpop.eup %3085  ;;  %v2049_v38 = vsel %vm681_vm2, %v3084_v36, 0.0 }
 0xb69   : > { %2052 = vadd.xlane.f32.xlu1 %v3086_v37  ;;  %2050 = vadd.xlane.f32.xlu0 %v2049_v38 }
 0xb7f   : > { %2165 = vrot.lane.b32.xlu0 %v3436_v21, %s3158_s20  ;;  %s3089_s20 = scalar_lea.vmem %s3784_s0, 128 }
 0xb80   : > { %p3090_p11 = scmp.ne.s32.totalorder %s3784_s0, %s3089_s20  ;;  %p3097_p1 = scmp.lt.s32.totalorder %s3095_s5, %s3089_s20 }
 0xb82   : > { %p3091_p12 = pnand %p3090_p11, %p3268_p5  ;;  %p3098_p2 = por %p3097_p1, %p3096_p0 }
 0xb84   : > { %p3092_p13 = pneg %p3091_p12 }
 0xb86   : > { %p3099_p3 = pnand %p3098_p2, %p3092_p13 }
 0xbf6   : > { %v2053_v43 = vpop.xlane.xlu1 %2052  ;;  %v2051_v44 = vpop.xlane.xlu0 %2050 }
 0xbf7   : > { %v2054_v45 = vadd.f32 %v2053_v43, %v2051_v44 }
 0xbf9   : > { %3087 = vrcp.f32 %v2054_v45 }
 0xbfa   : > { %v2166_v47 = vpop.permute.xlu0 %2165 }
 0xbfb   : > { %v2171_v50 = vsel %vm978_vm4, %v2166_v47, 0 }
 0xc03   : > { %v3088_v46 = vpop.eup %3087 }
 0xc04   : > { %v2058_v21 = vmul.f32 %v3088_v46, %v3086_v37  ;;  %v2056_v51 = vmul.f32 %v3088_v46, %v3084_v36 }
 0xc06   : > { %v2059_v49 = vpack.c.bf16 %v2058_v21, %v2058_v21  ;;  %v2057_v52 = vpack.c.bf16 %v2056_v51, %v2056_v51 }
 0xc08   : > { %2919 = vmatmul.mubr.bf16.vlgmr.msra.gmra.mrb[28].mxu0 %v2059_v49 }
 0xc09   : > { %2923 = vmatpush3.bf16.msra.mxu0 %v2171_v50  ;;  %2924 = vmatprep.mubr.msk.bf16.mxu0 %vm3154_vm0, %v3153_v1 }
 0xc0a   : > { %2928 = vmatprep.subr.bf16.mxu0 %v3153_v1 }
 0xc14   : > { %2925 = vmatmul.mubr.msk.bf16.vlgmr.msra.gmra.mrb[28].mxu0 %vm681_vm2, %v2057_v52 }
 0xc15   : > { %2929 = vmatpush3.bf16.msra.mxu0 %v2220_v48  ;;  %2930 = vmatprep.mubr.msk.bf16.mxu0 %vm3154_vm0, %v3153_v1 }
 0xce7   : > { %v2207_v53 = vpop.f32.mrb[28].mxu0 }
 0xce8   : > { %v2213_v55 = vpack.c.bf16 %v2207_v53, %v2207_v53  ;;  %v2926_v56 = vpop.f32.mrb[29].mxu0 }
 0xce9   : > { %v2210_v57 = vpop.f32.mrb[30].mxu0 }
 0xcea   : > { %v2927_v58 = vpop.f32.mrb[31].mxu0  ;;  %2931 = vmatmul.mubr.msk.bf16.vlgmr.msra.gmra.mrb[32].mxu0 %vm681_vm2, %v2213_v55 }
 0xdbd   : > { %v2256_v59 = vpop.f32.mrb[32].mxu0 }
 0xdbe   : > { %v2262_v1 = vadd.f32 %v2256_v59, %v3722_v11  ;;  %v2932_v61 = vpop.f32.mrb[33].mxu0 }
 0xdbf   : > { %v2259_v62 = vpop.f32.mrb[34].mxu0 }
 0xdc0   : > { %v2270_v63 = vadd.f32 %v2568_v60, %v2262_v1  ;;  %v2933_v0 = vpop.f32.mrb[35].mxu0 }
 0xdc2   : > { %2271 = vst [vmem:[%s457_s17] sm:$0xff] %v2270_v63 }
 0xdc3   : > { %3102 = shalt.err (!%p3099_p3)
}
 0xdc4   : > { %s3103_s23 = scalar_lea.hbm %s3782_s3, 128  ;;  %s3107_s17 = scalar_lea.hbm %s3837_s13, 256 }
 0xdc5   : > { %p3104_p4 = scmp.ne.s32.totalorder %s3782_s3, %s3103_s23  ;;  %p3108_p9 = scmp.lt.u32.totalorder %s3782_s3, %s3837_s13 }
 0xdc6   : > { %p3109_p10 = scmp.lt.u32.totalorder %s3107_s17, %s3103_s23  ;;  %p3111_p12 = scmp.lt.u32.totalorder %s3103_s23, %s3782_s3 }
 0xdc7   : > { %p3105_p7 = pnand %p3104_p4, %p3268_p5 }
 0xdc8   : > { %p3110_p11 = por %p3109_p10, %p3108_p9 }
 0xdc9   : > { %p3106_p8 = pneg %p3105_p7 }
 0xdca   : > { %p3112_p13 = por %p3111_p12, %p3110_p11 }
 0xdcc   : > { %p3113_p0 = pnand %p3112_p13, %p3106_p8 }
 0xdce   : > { %3116 = shalt.err (!%p3113_p0)
}
 0xdcf   : > { %2950 = dma.vmem_to_hbm [thread:$0]  (%p3268_p5), %s3784_s0, 128, %s3782_s3, %s2273_s29  }
 0xdd0 PF: > { %p2956_p1 = scmp.ge.s32.totalorder %s3151_s28, 2  ;;  %s2298_s20 = sand.u32 1, %s3139_s25  }
 0xdd1   : > { %s2299_s22 = scalar_lea.sflag [#allocation3], %s2298_s20 }
 0xdd2   : > { %p2953_p2 = pnand %p2956_p1, %p3272_p6 }
 0xdd4   : > { %3134 = dma.done.wait (!%p2953_p2), %s2299_s22, 128  }
 0xdd5   : > { %3136 = vsyncadd (!%p2953_p2), %s2299_s22, 4294967168  ;;  %s3847_s21 = sld [smem:[#allocation5_spill]]  ;;  %p23_p3 = scmp.ge.s32.totalorder %s3255_s14, 4  }
 0xdd6   : > { %s3848_s25 = smov %s3143_s26  ;;  %s3849_s26 = smov %s3147_s27 }
 0xdd7   : > { %s3851_s28 = smov %s3255_s14  ;;  %25 = sbr.rel (!%p23_p3) target bundleno = 7 (0x7), region = 122 }
 0xddb   : > { %s3850_s27 = smov %s3847_s21 }
 0xdde   :  { %2304 = vsyncpa [#allocation3], 1 }
 0xddf   :  { %2306 = vsyncpa [#allocation3 + $0x1], 1 }

</bundles_post_ra>
